<compile_context>
chip_gen: v7x
topology: tpu7x:2x2x1
jax: 0.10.0
libtpu: 0.0.40
codegen_flags: <defaults>
</compile_context>

<pallas_src>
import functools
import math

import jax
import jax.numpy as jnp
from jax.experimental import pallas as pl
from jax.experimental.pallas import tpu as pltpu


def _default_vmem_limit():
    try:
        kind = jax.devices()[0].device_kind.lower()
    except Exception:
        kind = ""
    if "v5" in kind or "v6" in kind:
        return 100 * 1024 * 1024   # 128 MiB physical VMEM on v5e/v6e
    return 48 * 1024 * 1024        # v7x has only 64 MiB physical VMEM


_VMEM_LIMIT = _default_vmem_limit()


def _tile(dim, target):
    """Largest tile <= target (halving) that divides dim; fall back to the full dim."""
    if dim <= target:
        return dim
    t = target
    while t >= 8:
        if dim % t == 0:
            return t
        t //= 2
    return dim


# ----------------------------------------------------------------------------
# Pallas kernels
# ----------------------------------------------------------------------------
def _matmul_bias_kernel(x_ref, w_ref, b_ref, o_ref, acc_ref, *, gelu):
    k = pl.program_id(2)

    @pl.when(k == 0)
    def _():
        acc_ref[...] = jnp.zeros_like(acc_ref)

    acc_ref[...] += jnp.dot(x_ref[...], w_ref[...], preferred_element_type=jnp.float32)

    @pl.when(k == pl.num_programs(2) - 1)
    def _():
        h = acc_ref[...] + b_ref[...]
        if gelu:
            # tanh-approximation GELU (EUP-friendly on TPU)
            h = 0.5 * h * (1.0 + jnp.tanh(0.7978845608028654 * (h + 0.044715 * h * h * h)))
        o_ref[...] = h.astype(o_ref.dtype)


def _matmul_res_ln_kernel(x_ref, w_ref, b_ref, r_ref, g_ref, bb_ref, o_ref, acc_ref, *, eps):
    # Fused: y = LayerNorm(residual + (x @ w + b)); N (=hidden) is not tiled so LN sees full rows.
    k = pl.program_id(1)

    @pl.when(k == 0)
    def _():
        acc_ref[...] = jnp.zeros_like(acc_ref)

    acc_ref[...] += jnp.dot(x_ref[...], w_ref[...], preferred_element_type=jnp.float32)

    @pl.when(k == pl.num_programs(1) - 1)
    def _():
        h = acc_ref[...] + b_ref[...] + r_ref[...].astype(jnp.float32)
        mu = jnp.mean(h, axis=-1, keepdims=True)
        var = jnp.mean((h - mu) * (h - mu), axis=-1, keepdims=True)
        o_ref[...] = ((h - mu) * jax.lax.rsqrt(var + eps) * g_ref[...] + bb_ref[...]).astype(
            o_ref.dtype
        )


def _embed_ln_kernel(tok_ref, pos_ref, g_ref, b_ref, o_ref, *, eps):
    # Fused token-embedding + positional add + LayerNorm (bf16 in, bf16 out, f32 stats).
    x = tok_ref[0].astype(jnp.float32) + pos_ref[...].astype(jnp.float32)
    mu = jnp.mean(x, axis=-1, keepdims=True)
    var = jnp.mean((x - mu) * (x - mu), axis=-1, keepdims=True)
    o_ref[0] = ((x - mu) * jax.lax.rsqrt(var + eps) * g_ref[...] + b_ref[...]).astype(o_ref.dtype)


def _attn_heads(q, k, v, o_ref, *, n_heads, bias):
    # q: (Sq, H) bf16 pre-scaled by 1/sqrt(Dh); k, v: (Sk, H) bf16;
    # bias: (Sq, Sk) f32 additive mask or None (mask add skipped entirely).
    # Each head's context is stored directly into its lane slice of the output block
    # (no concatenation, no list of live per-head tensors).
    h_dim = q.shape[-1]
    dh = h_dim // n_heads
    for h in range(n_heads):
        qh = q[:, h * dh:(h + 1) * dh]
        kh = k[:, h * dh:(h + 1) * dh]
        vh = v[:, h * dh:(h + 1) * dh]
        s = jax.lax.dot_general(
            qh, kh, (((1,), (1,)), ((), ())), preferred_element_type=jnp.float32)
        if bias is not None:
            s = s + bias
        m = jnp.max(s, axis=-1, keepdims=True)
        p = jnp.exp(s - m)
        p = p * pl.reciprocal(jnp.sum(p, axis=-1, keepdims=True), approx=True)
        ctx = jnp.dot(p.astype(vh.dtype), vh, preferred_element_type=jnp.float32)
        o_ref[0, :, h * dh:(h + 1) * dh] = ctx.astype(o_ref.dtype)


def _self_attn_kernel(qkv_ref, o_ref, *, n_heads, scale, causal):
    # One grid step handles all heads of one batch element; q/k/v are static lane
    # slices of the fused QKV block (no XLA slicing of the projection output).
    qkv = qkv_ref[0]                  # (S, 3H) bf16
    seq = qkv.shape[0]
    h_dim = qkv.shape[1] // 3
    q = qkv[:, :h_dim] * scale        # fold 1/sqrt(Dh) into q once
    k = qkv[:, h_dim:2 * h_dim]
    v = qkv[:, 2 * h_dim:]
    bias = None
    if causal:
        rows = jax.lax.broadcasted_iota(jnp.int32, (seq, seq), 0)
        cols = jax.lax.broadcasted_iota(jnp.int32, (seq, seq), 1)
        bias = jnp.where(cols <= rows, 0.0, -1e30).astype(jnp.float32)
    _attn_heads(q, k, v, o_ref, n_heads=n_heads, bias=bias)


def _cross_attn_kernel(q_ref, kv_ref, o_ref, *, n_heads, scale):
    q = q_ref[0] * scale              # (Sq, H) bf16, pre-scaled
    kv = kv_ref[0]                    # (Sk, 2H) bf16
    h_dim = q.shape[-1]
    _attn_heads(q, kv[:, :h_dim], kv[:, h_dim:], o_ref, n_heads=n_heads, bias=None)


def _lm_head_ce_kernel(x_ref, w_ref, b_ref, lbl_ref, logits_ref, loss_ref,
                       m_scr, s_scr, c_scr, loss_scr, *, n_rows):
    # Fused LM head (full-K x panel, vocab streamed over j) + online-LSE cross entropy.
    i = pl.program_id(0)
    j = pl.program_id(1)
    nj = pl.num_programs(1)

    @pl.when(jnp.logical_and(i == 0, j == 0))
    def _():
        loss_scr[...] = jnp.zeros_like(loss_scr)

    @pl.when(j == 0)
    def _():
        m_scr[...] = jnp.full_like(m_scr, -1e30)
        s_scr[...] = jnp.zeros_like(s_scr)
        c_scr[...] = jnp.zeros_like(c_scr)

    logits = jnp.dot(x_ref[...], w_ref[...], preferred_element_type=jnp.float32) + b_ref[...]
    logits_ref[...] = logits.astype(logits_ref.dtype)

    # online logsumexp across vocab tiles
    m_old = m_scr[...]
    m_new = jnp.maximum(m_old, jnp.max(logits, axis=-1, keepdims=True))
    s_scr[...] = s_scr[...] * jnp.exp(m_old - m_new) + jnp.sum(
        jnp.exp(logits - m_new), axis=-1, keepdims=True)
    m_scr[...] = m_new

    # gather the correct-class logit when the label falls in this vocab tile
    tn = logits.shape[-1]
    cols = jax.lax.broadcasted_iota(jnp.int32, logits.shape, 1) + j * tn
    c_scr[...] += jnp.sum(jnp.where(cols == lbl_ref[...], logits, 0.0),
                          axis=-1, keepdims=True)

    @pl.when(j == nj - 1)
    def _():
        lse = m_scr[...] + jnp.log(s_scr[...])
        loss_scr[...] += jnp.sum(lse - c_scr[...], axis=0, keepdims=True)

    @pl.when(jnp.logical_and(i == pl.num_programs(0) - 1, j == nj - 1))
    def _():
        loss_ref[...] = loss_scr[...] * (1.0 / n_rows)


# ----------------------------------------------------------------------------
# Pallas wrappers
# ----------------------------------------------------------------------------
def pallas_linear(x2d, w, b, *, gelu=False, out_dtype=jnp.bfloat16,
                  tm=256, tn=512, tk=1024):
    M, K = x2d.shape
    Kw, N = w.shape
    assert K == Kw
    tm, tn, tk = _tile(M, tm), _tile(N, tn), _tile(K, tk)
    kern = functools.partial(_matmul_bias_kernel, gelu=gelu)
    return pl.pallas_call(
        kern,
        out_shape=jax.ShapeDtypeStruct((M, N), out_dtype),
        grid=(M // tm, N // tn, K // tk),
        in_specs=[
            pl.BlockSpec((tm, tk), lambda i, j, k: (i, k)),
            pl.BlockSpec((tk, tn), lambda i, j, k: (k, j)),
            pl.BlockSpec((1, tn), lambda i, j, k: (0, j)),
        ],
        out_specs=pl.BlockSpec((tm, tn), lambda i, j, k: (i, j)),
        scratch_shapes=[pltpu.VMEM((tm, tn), jnp.float32)],
        compiler_params=pltpu.CompilerParams(
            dimension_semantics=("parallel", "parallel", "arbitrary"),
            vmem_limit_bytes=_VMEM_LIMIT),
    )(x2d.astype(jnp.bfloat16), w.astype(jnp.bfloat16),
      b.reshape(1, N).astype(jnp.float32))


def pallas_linear_res_ln(x2d, w, b, residual, gamma, beta, *, eps=1e-12,
                         out_dtype=jnp.bfloat16, tm=256, tk=512):
    M, K = x2d.shape
    Kw, N = w.shape
    assert K == Kw
    tm, tk = _tile(M, tm), _tile(K, tk)
    kern = functools.partial(_matmul_res_ln_kernel, eps=eps)
    return pl.pallas_call(
        kern,
        out_shape=jax.ShapeDtypeStruct((M, N), out_dtype),
        grid=(M // tm, K // tk),
        in_specs=[
            pl.BlockSpec((tm, tk), lambda i, k: (i, k)),
            pl.BlockSpec((tk, N), lambda i, k: (k, 0)),
            pl.BlockSpec((1, N), lambda i, k: (0, 0)),
            pl.BlockSpec((tm, N), lambda i, k: (i, 0)),
            pl.BlockSpec((1, N), lambda i, k: (0, 0)),
            pl.BlockSpec((1, N), lambda i, k: (0, 0)),
        ],
        out_specs=pl.BlockSpec((tm, N), lambda i, k: (i, 0)),
        scratch_shapes=[pltpu.VMEM((tm, N), jnp.float32)],
        compiler_params=pltpu.CompilerParams(
            dimension_semantics=("parallel", "arbitrary"),
            vmem_limit_bytes=_VMEM_LIMIT),
    )(x2d.astype(jnp.bfloat16), w.astype(jnp.bfloat16),
      b.reshape(1, N).astype(jnp.float32),
      residual,
      gamma.reshape(1, N).astype(jnp.float32),
      beta.reshape(1, N).astype(jnp.float32))


def pallas_embed_ln(tok, pos, gamma, beta, *, eps=1e-12, ts=256, out_dtype=jnp.bfloat16):
    # tok: (B, S, H) bf16 gathered token embeddings; pos: (S, H) bf16 positional embeddings.
    B, S, H = tok.shape
    ts = _tile(S, ts)
    kern = functools.partial(_embed_ln_kernel, eps=eps)
    return pl.pallas_call(
        kern,
        out_shape=jax.ShapeDtypeStruct((B, S, H), out_dtype),
        grid=(B, S // ts),
        in_specs=[
            pl.BlockSpec((1, ts, H), lambda b, s: (b, s, 0)),
            pl.BlockSpec((ts, H), lambda b, s: (s, 0)),
            pl.BlockSpec((1, H), lambda b, s: (0, 0)),
            pl.BlockSpec((1, H), lambda b, s: (0, 0)),
        ],
        out_specs=pl.BlockSpec((1, ts, H), lambda b, s: (b, s, 0)),
        compiler_params=pltpu.CompilerParams(
            dimension_semantics=("parallel", "parallel"),
            vmem_limit_bytes=_VMEM_LIMIT),
    )(tok.astype(jnp.bfloat16), pos.astype(jnp.bfloat16),
      gamma.reshape(1, H).astype(jnp.float32), beta.reshape(1, H).astype(jnp.float32))


def pallas_self_attention(qkv, n_heads, *, causal):
    # qkv: (B, S, 3H) bf16 from the fused QKV projection. q/k/v are sliced in-kernel.
    # TODO(synk): flash-style KV tiling (online softmax) for long sequences; the current
    # kernel keeps one full (S, 3H) block per batch element resident in VMEM.
    B, S, threeH = qkv.shape
    H = threeH // 3
    scale = 1.0 / math.sqrt(H // n_heads)
    kern = functools.partial(_self_attn_kernel, n_heads=n_heads, scale=scale, causal=causal)
    return pl.pallas_call(
        kern,
        out_shape=jax.ShapeDtypeStruct((B, S, H), jnp.bfloat16),
        grid=(B,),
        in_specs=[pl.BlockSpec((1, S, threeH), lambda b: (b, 0, 0))],
        out_specs=pl.BlockSpec((1, S, H), lambda b: (b, 0, 0)),
        compiler_params=pltpu.CompilerParams(
            dimension_semantics=("parallel",),
            vmem_limit_bytes=_VMEM_LIMIT),
    )(qkv)


def pallas_cross_attention(q, kv, n_heads):
    # q: (B, Sq, H) bf16; kv: (B, Sk, 2H) bf16 (keys | values) — no mask (all-visible).
    B, Sq, H = q.shape
    Sk = kv.shape[1]
    scale = 1.0 / math.sqrt(H // n_heads)
    kern = functools.partial(_cross_attn_kernel, n_heads=n_heads, scale=scale)
    return pl.pallas_call(
        kern,
        out_shape=jax.ShapeDtypeStruct((B, Sq, H), jnp.bfloat16),
        grid=(B,),
        in_specs=[pl.BlockSpec((1, Sq, H), lambda b: (b, 0, 0)),
                  pl.BlockSpec((1, Sk, 2 * H), lambda b: (b, 0, 0))],
        out_specs=pl.BlockSpec((1, Sq, H), lambda b: (b, 0, 0)),
        compiler_params=pltpu.CompilerParams(
            dimension_semantics=("parallel",),
            vmem_limit_bytes=_VMEM_LIMIT),
    )(q, kv)


def pallas_lm_head_ce(x2d, w, b, labels, *, tm=256, tn=512):
    # Fused LM head + mean cross-entropy. bf16 logits are written back; the loss is
    # computed from the f32 pre-cast values inside the kernel (no logits re-read).
    # TODO(synk): no ignore-index / padding mask — all rows contribute equally, matching
    # the previous realization where masked_lm_labels = decoder_input_ids (no -100s).
    M, K = x2d.shape
    Kw, V = w.shape
    assert K == Kw
    tm = _tile(M, tm)
    tn = min(tn, V)
    Vp = ((V + tn - 1) // tn) * tn
    b = b.astype(jnp.float32)
    w = w.astype(jnp.bfloat16)
    if Vp != V:
        # Pad the vocab so tn always divides; padded columns get a -1e30 bias so they
        # never contribute to the logsumexp, and labels never point at them.
        w = jnp.pad(w, ((0, 0), (0, Vp - V)))
        b = jnp.pad(b, (0, Vp - V), constant_values=-1e30)
    kern = functools.partial(_lm_head_ce_kernel, n_rows=M)
    logits, loss = pl.pallas_call(
        kern,
        out_shape=(jax.ShapeDtypeStruct((M, Vp), jnp.bfloat16),
                   jax.ShapeDtypeStruct((1, 1), jnp.float32)),
        grid=(M // tm, Vp // tn),
        in_specs=[
            pl.BlockSpec((tm, K), lambda i, j: (i, 0)),   # full-K x panel, resident over j
            pl.BlockSpec((K, tn), lambda i, j: (0, j)),   # stream vocab-sized weight
            pl.BlockSpec((1, tn), lambda i, j: (0, j)),
            pl.BlockSpec((tm, 1), lambda i, j: (i, 0)),
        ],
        out_specs=(pl.BlockSpec((tm, tn), lambda i, j: (i, j)),
                   pl.BlockSpec((1, 1), lambda i, j: (0, 0))),
        scratch_shapes=[pltpu.VMEM((tm, 1), jnp.float32),   # running max
                        pltpu.VMEM((tm, 1), jnp.float32),   # running sum(exp)
                        pltpu.VMEM((tm, 1), jnp.float32),   # correct-class logit
                        pltpu.VMEM((1, 1), jnp.float32)],   # loss accumulator
        compiler_params=pltpu.CompilerParams(
            dimension_semantics=("arbitrary", "arbitrary"),
            vmem_limit_bytes=_VMEM_LIMIT),
    )(x2d.astype(jnp.bfloat16), w, b.reshape(1, Vp),
      labels.reshape(M, 1).astype(jnp.int32))
    if Vp != V:
        logits = logits[:, :V]
    return loss[0, 0], logits


# ----------------------------------------------------------------------------
# Model (embedding gathers / reshapes stay in plain JAX)
# ----------------------------------------------------------------------------
def encoder_forward(params, input_ids, n_heads):
    p = params["encoder"]
    B, S = input_ids.shape
    H = p["tok_emb"].shape[1]

    tok = jnp.take(p["tok_emb"], input_ids, axis=0)                         # (B,S,H) bf16
    x = pallas_embed_ln(tok, p["pos_emb"][:S], p["ln_emb_g"], p["ln_emb_b"]).reshape(B * S, H)

    # --- self attention (fused QKV projection, no mask) ---
    sa = p["self_attn"]
    qkv = pallas_linear(x, sa["w_qkv"], sa["b_qkv"]).reshape(B, S, 3 * H)
    ctx = pallas_self_attention(qkv, n_heads, causal=False).reshape(B * S, H)
    x = pallas_linear_res_ln(ctx, sa["wo"], sa["bo"], x, p["ln1_g"], p["ln1_b"])

    # --- feed-forward (GELU fused into FF1, residual+LN fused into FF2) ---
    h = pallas_linear(x, p["w_ff1"], p["b_ff1"], gelu=True)
    x = pallas_linear_res_ln(h, p["w_ff2"], p["b_ff2"], x, p["ln2_g"], p["ln2_b"])
    return x.reshape(B, S, H)   # encoder_hidden_states = encoder(...)[0]


def decoder_forward(params, input_ids, encoder_hidden_states, masked_lm_labels, n_heads):
    p = params["decoder"]
    B, S = input_ids.shape
    H = p["tok_emb"].shape[1]
    S_enc = encoder_hidden_states.shape[1]

    tok = jnp.take(p["tok_emb"], input_ids, axis=0)
    x = pallas_embed_ln(tok, p["pos_emb"][:S], p["ln_emb_g"], p["ln_emb_b"]).reshape(B * S, H)

    # --- masked (causal) self attention: mask generated in-kernel ---
    sa = p["self_attn"]
    qkv = pallas_linear(x, sa["w_qkv"], sa["b_qkv"]).reshape(B, S, 3 * H)
    ctx = pallas_self_attention(qkv, n_heads, causal=True).reshape(B * S, H)
    x = pallas_linear_res_ln(ctx, sa["wo"], sa["bo"], x, p["ln1_g"], p["ln1_b"])

    # --- cross attention over encoder hidden states (fused KV projection) ---
    ca = p["cross_attn"]
    enc_flat = encoder_hidden_states.reshape(B * S_enc, H)
    q = pallas_linear(x, ca["wq"], ca["bq"]).reshape(B, S, H)
    kv = pallas_linear(enc_flat, ca["w_kv"], ca["b_kv"]).reshape(B, S_enc, 2 * H)
    ctx = pallas_cross_attention(q, kv, n_heads).reshape(B * S, H)
    x = pallas_linear_res_ln(ctx, ca["wo"], ca["bo"], x, p["ln2_g"], p["ln2_b"])

    # --- feed-forward ---
    h = pallas_linear(x, p["w_ff1"], p["b_ff1"], gelu=True)
    x = pallas_linear_res_ln(h, p["w_ff2"], p["b_ff2"], x, p["ln3_g"], p["ln3_b"])

    # --- fused LM head + masked-LM cross-entropy (online LSE, bf16 logits) ---
    V = p["lm_w"].shape[1]
    loss, logits2d = pallas_lm_head_ce(x, p["lm_w"], p["lm_b"], masked_lm_labels.reshape(-1))
    return loss, logits2d.reshape(B, S, V)


def translation_model_forward(params, encoder_input_ids, decoder_input_ids, n_heads):
    encoder_hidden_states = encoder_forward(params, encoder_input_ids, n_heads)
    loss, logits = decoder_forward(
        params, decoder_input_ids,
        encoder_hidden_states=encoder_hidden_states,
        masked_lm_labels=decoder_input_ids,
        n_heads=n_heads)
    return loss, logits


# ----------------------------------------------------------------------------
# Deterministic parameter init (weights / embeddings stored in bf16 once)
# ----------------------------------------------------------------------------
def _bf16_normal(key, shape):
    return (0.02 * jax.random.normal(key, shape, jnp.float32)).astype(jnp.bfloat16)


def _self_attn_params(key, h):
    k1, k2 = jax.random.split(key)
    return {
        "w_qkv": _bf16_normal(k1, (h, 3 * h)),
        "b_qkv": jnp.zeros((3 * h,), jnp.float32),
        "wo": _bf16_normal(k2, (h, h)),
        "bo": jnp.zeros((h,), jnp.float32),
    }


def _cross_attn_params(key, h):
    k1, k2, k3 = jax.random.split(key, 3)
    return {
        "wq": _bf16_normal(k1, (h, h)),
        "bq": jnp.zeros((h,), jnp.float32),
        "w_kv": _bf16_normal(k2, (h, 2 * h)),
        "b_kv": jnp.zeros((2 * h,), jnp.float32),
        "wo": _bf16_normal(k3, (h, h)),
        "bo": jnp.zeros((h,), jnp.float32),
    }


def init_params(key, vocab, hidden, ffn, max_pos):
    ke, kd = jax.random.split(key)
    kes = jax.random.split(ke, 5)
    kds = jax.random.split(kd, 7)
    ones = jnp.ones((hidden,), jnp.float32)
    zeros = jnp.zeros((hidden,), jnp.float32)
    enc = {
        "tok_emb": _bf16_normal(kes[0], (vocab, hidden)),
        "pos_emb": _bf16_normal(kes[1], (max_pos, hidden)),
        "ln_emb_g": ones, "ln_emb_b": zeros,
        "self_attn": _self_attn_params(kes[2], hidden),
        "ln1_g": ones, "ln1_b": zeros,
        "w_ff1": _bf16_normal(kes[3], (hidden, ffn)),
        "b_ff1": jnp.zeros((ffn,), jnp.float32),
        "w_ff2": _bf16_normal(kes[4], (ffn, hidden)),
        "b_ff2": zeros,
        "ln2_g": ones, "ln2_b": zeros,
    }
    dec = {
        "tok_emb": _bf16_normal(kds[0], (vocab, hidden)),
        "pos_emb": _bf16_normal(kds[1], (max_pos, hidden)),
        "ln_emb_g": ones, "ln_emb_b": zeros,
        "self_attn": _self_attn_params(kds[2], hidden),
        "ln1_g": ones, "ln1_b": zeros,
        "cross_attn": _cross_attn_params(kds[3], hidden),
        "ln2_g": ones, "ln2_b": zeros,
        "w_ff1": _bf16_normal(kds[4], (hidden, ffn)),
        "b_ff1": jnp.zeros((ffn,), jnp.float32),
        "w_ff2": _bf16_normal(kds[5], (ffn, hidden)),
        "b_ff2": zeros,
        "ln3_g": ones, "ln3_b": zeros,
        "lm_w": _bf16_normal(kds[6], (hidden, vocab)),
        "lm_b": jnp.zeros((vocab,), jnp.float32),
    }
    return {"encoder": enc, "decoder": dec}


# ----------------------------------------------------------------------------
if __name__ == "__main__":
    B, S_ENC, S_DEC = 2, 8, 8
    HIDDEN, FFN, N_HEADS = 32, 64, 2
    VOCAB, MAX_POS = 64, 16

    key = jax.random.PRNGKey(0)
    k_params, k_enc_ids, k_dec_ids = jax.random.split(key, 3)
    params = init_params(k_params, VOCAB, HIDDEN, FFN, MAX_POS)

    encoder_input_ids = jax.random.randint(k_enc_ids, (B, S_ENC), 0, VOCAB, dtype=jnp.int32)
    decoder_input_ids = jax.random.randint(k_dec_ids, (B, S_DEC), 0, VOCAB, dtype=jnp.int32)

    fwd = jax.jit(functools.partial(translation_model_forward, n_heads=N_HEADS))
    loss, logits = fwd(params, encoder_input_ids, decoder_input_ids)
    jax.block_until_ready((loss, logits))

    assert logits.shape == (B, S_DEC, VOCAB)
    assert loss.shape == ()
    assert bool(jnp.isfinite(loss))
    print("KERNEL_OK")
</pallas_src>

<mosaic_0001>
module attributes {stable_mosaic.version = 11 : i64} {
  func.func @_embed_ln_kernel(%arg0: i32, %arg1: i32, %arg2: memref<1x8x32xbf16, #tpu.memory_space<vmem>>, %arg3: memref<8x32xbf16, #tpu.memory_space<vmem>>, %arg4: memref<1x32xf32, #tpu.memory_space<vmem>>, %arg5: memref<1x32xf32, #tpu.memory_space<vmem>>, %arg6: memref<1x8x32xbf16, #tpu.memory_space<vmem>>) attributes {dimension_semantics = [#tpu.dimension_semantics<parallel>, #tpu.dimension_semantics<parallel>], iteration_bounds = array<i64: 2, 1>, scalar_prefetch = 0 : i64, scratch_operands = 0 : i64, tpu.core_type = #tpu.core_type<tc>, window_params = [{transform_indices = @transform_0, window_bounds = array<i64: 1, 8, 32>}, {transform_indices = @transform_1, window_bounds = array<i64: 8, 32>}, {pipeline_mode = #tpu.pipeline_mode<synchronous>, transform_indices = @transform_2, window_bounds = array<i64: 1, 32>}, {pipeline_mode = #tpu.pipeline_mode<synchronous>, transform_indices = @transform_3, window_bounds = array<i64: 1, 32>}, {transform_indices = @transform_4, window_bounds = array<i64: 1, 8, 32>}]} {
    %c0 = arith.constant 0 : index
    %c0_0 = arith.constant 0 : index
    %c0_1 = arith.constant 0 : index
    %0 = vector.load %arg2[%c0, %c0_0, %c0_1] : memref<1x8x32xbf16, #tpu.memory_space<vmem>>, vector<1x8x32xbf16>
    %1 = vector.shape_cast %0 : vector<1x8x32xbf16> to vector<8x32xbf16>
    %2 = arith.extf %1 : vector<8x32xbf16> to vector<8x32xf32>
    %c0_2 = arith.constant 0 : index
    %c0_3 = arith.constant 0 : index
    %3 = vector.load %arg3[%c0_2, %c0_3] : memref<8x32xbf16, #tpu.memory_space<vmem>>, vector<8x32xbf16>
    %4 = arith.extf %3 : vector<8x32xbf16> to vector<8x32xf32>
    %5 = arith.addf %2, %4 : vector<8x32xf32>
    %cst = arith.constant dense<0.000000e+00> : vector<8xf32>
    %6 = vector.multi_reduction <add>, %5, %cst [1] : vector<8x32xf32> to vector<8xf32>
    %7 = vector.shape_cast %6 : vector<8xf32> to vector<8x1xf32>
    %cst_4 = arith.constant 3.200000e+01 : f32
    %8 = vector.broadcast %cst_4 : f32 to vector<8x1xf32>
    %9 = arith.divf %7, %8 : vector<8x1xf32>
    %10 = vector.broadcast %9 : vector<8x1xf32> to vector<8x32xf32>
    %11 = arith.subf %5, %10 : vector<8x32xf32>
    %12 = vector.broadcast %9 : vector<8x1xf32> to vector<8x32xf32>
    %13 = arith.subf %5, %12 : vector<8x32xf32>
    %14 = arith.mulf %11, %13 : vector<8x32xf32>
    %cst_5 = arith.constant dense<0.000000e+00> : vector<8xf32>
    %15 = vector.multi_reduction <add>, %14, %cst_5 [1] : vector<8x32xf32> to vector<8xf32>
    %16 = vector.shape_cast %15 : vector<8xf32> to vector<8x1xf32>
    %cst_6 = arith.constant 3.200000e+01 : f32
    %17 = vector.broadcast %cst_6 : f32 to vector<8x1xf32>
    %18 = arith.divf %16, %17 : vector<8x1xf32>
    %19 = vector.broadcast %9 : vector<8x1xf32> to vector<8x32xf32>
    %20 = arith.subf %5, %19 : vector<8x32xf32>
    %cst_7 = arith.constant 9.99999996E-13 : f32
    %21 = vector.broadcast %cst_7 : f32 to vector<8x1xf32>
    %22 = arith.addf %18, %21 : vector<8x1xf32>
    %23 = math.rsqrt %22 : vector<8x1xf32>
    %24 = vector.broadcast %23 : vector<8x1xf32> to vector<8x32xf32>
    %25 = arith.mulf %20, %24 : vector<8x32xf32>
    %c0_8 = arith.constant 0 : index
    %c0_9 = arith.constant 0 : index
    %26 = vector.load %arg4[%c0_8, %c0_9] : memref<1x32xf32, #tpu.memory_space<vmem>>, vector<1x32xf32>
    %27 = vector.broadcast %26 : vector<1x32xf32> to vector<8x32xf32>
    %28 = arith.mulf %25, %27 : vector<8x32xf32>
    %c0_10 = arith.constant 0 : index
    %c0_11 = arith.constant 0 : index
    %29 = vector.load %arg5[%c0_10, %c0_11] : memref<1x32xf32, #tpu.memory_space<vmem>>, vector<1x32xf32>
    %30 = vector.broadcast %29 : vector<1x32xf32> to vector<8x32xf32>
    %31 = arith.addf %28, %30 : vector<8x32xf32>
    %32 = arith.truncf %31 : vector<8x32xf32> to vector<8x32xbf16>
    %c0_12 = arith.constant 0 : index
    %c0_13 = arith.constant 0 : index
    %c0_14 = arith.constant 0 : index
    %33 = vector.load %arg6[%c0_12, %c0_13, %c0_14] : memref<1x8x32xbf16, #tpu.memory_space<vmem>>, vector<1x8x32xbf16>
    %34 = vector.shape_cast %33 : vector<1x8x32xbf16> to vector<8x32xbf16>
    %35 = vector.shape_cast %32 : vector<8x32xbf16> to vector<1x8x32xbf16>
    tpu.vector_store %arg6[%c0_12, %c0_13, %c0_14], %35 {strides = array<i32>} : memref<1x8x32xbf16, #tpu.memory_space<vmem>>, vector<1x8x32xbf16>,
    return
  }
  func.func @transform_0(%arg0: i32, %arg1: i32) -> (i32, i32, i32) {
    %c0_i32 = arith.constant 0 : i32
    %c0_i32_0 = arith.constant 0 : i32
    return %arg0, %arg1, %c0_i32 : i32, i32, i32
  }
  func.func @transform_1(%arg0: i32, %arg1: i32) -> (i32, i32) {
    %c0_i32 = arith.constant 0 : i32
    %c0_i32_0 = arith.constant 0 : i32
    return %arg1, %c0_i32 : i32, i32
  }
  func.func @transform_2(%arg0: i32, %arg1: i32) -> (i32, i32) {
    %c0_i32 = arith.constant 0 : i32
    %c0_i32_0 = arith.constant 0 : i32
    %c0_i32_1 = arith.constant 0 : i32
    return %c0_i32, %c0_i32_0 : i32, i32
  }
  func.func @transform_3(%arg0: i32, %arg1: i32) -> (i32, i32) {
    %c0_i32 = arith.constant 0 : i32
    %c0_i32_0 = arith.constant 0 : i32
    %c0_i32_1 = arith.constant 0 : i32
    return %c0_i32, %c0_i32_0 : i32, i32
  }
  func.func @transform_4(%arg0: i32, %arg1: i32) -> (i32, i32, i32) {
    %c0_i32 = arith.constant 0 : i32
    %c0_i32_0 = arith.constant 0 : i32
    return %arg0, %arg1, %c0_i32 : i32, i32, i32
  }
}

module attributes {stable_mosaic.version = 11 : i64} {
  func.func @_matmul_bias_kernel(%arg0: i32, %arg1: i32, %arg2: i32, %arg3: memref<16x32xbf16, #tpu.memory_space<vmem>>, %arg4: memref<32x96xbf16, #tpu.memory_space<vmem>>, %arg5: memref<1x96xf32, #tpu.memory_space<vmem>>, %arg6: memref<16x96xbf16, #tpu.memory_space<vmem>>, %arg7: memref<16x96xf32, #tpu.memory_space<vmem>>) attributes {dimension_semantics = [#tpu.dimension_semantics<parallel>, #tpu.dimension_semantics<parallel>, #tpu.dimension_semantics<arbitrary>], iteration_bounds = array<i64: 1, 1, 1>, scalar_prefetch = 0 : i64, scratch_operands = 1 : i64, tpu.core_type = #tpu.core_type<tc>, window_params = [{transform_indices = @transform_0, window_bounds = array<i64: 16, 32>}, {transform_indices = @transform_1, window_bounds = array<i64: 32, 96>}, {transform_indices = @transform_2, window_bounds = array<i64: 1, 96>}, {transform_indices = @transform_3, window_bounds = array<i64: 16, 96>}]} {
    %c0_i32 = arith.constant 0 : i32
    %0 = arith.cmpi eq, %arg2, %c0_i32 : i32
    %1 = arith.extui %0 : i1 to i32
    %c0_i32_0 = arith.constant 0 : i32
    %2 = arith.cmpi ne, %1, %c0_i32_0 : i32
    scf.if %2 {
      %cst_10 = arith.constant 0.000000e+00 : f32
      %12 = vector.broadcast %cst_10 : f32 to vector<16x96xf32>
      %c0_11 = arith.constant 0 : index
      %c0_12 = arith.constant 0 : index
      %13 = vector.load %arg7[%c0_11, %c0_12] : memref<16x96xf32, #tpu.memory_space<vmem>>, vector<16x96xf32>
      tpu.vector_store %arg7[%c0_11, %c0_12], %12 {strides = array<i32>} : memref<16x96xf32, #tpu.memory_space<vmem>>, vector<16x96xf32>,
    } else {
    }
    %c0 = arith.constant 0 : index
    %c0_1 = arith.constant 0 : index
    %3 = vector.load %arg7[%c0, %c0_1] : memref<16x96xf32, #tpu.memory_space<vmem>>, vector<16x96xf32>
    %c0_2 = arith.constant 0 : index
    %c0_3 = arith.constant 0 : index
    %4 = vector.load %arg3[%c0_2, %c0_3] : memref<16x32xbf16, #tpu.memory_space<vmem>>, vector<16x32xbf16>
    %c0_4 = arith.constant 0 : index
    %c0_5 = arith.constant 0 : index
    %5 = vector.load %arg4[%c0_4, %c0_5] : memref<32x96xbf16, #tpu.memory_space<vmem>>, vector<32x96xbf16>
    %cst = arith.constant dense<0.000000e+00> : vector<16x96xf32>
    %6 = tpu.matmul %4, %5, %cst {dimension_numbers = #tpu.dot_dimension_numbers<[1], [0], [0], [1], [0, 0, 1, 1], [], []>} : vector<16x32xbf16>, vector<32x96xbf16>, vector<16x96xf32> -> vector<16x96xf32>
    %7 = arith.addf %3, %6 : vector<16x96xf32>
    %c0_6 = arith.constant 0 : index
    %c0_7 = arith.constant 0 : index
    %8 = vector.load %arg7[%c0_6, %c0_7] : memref<16x96xf32, #tpu.memory_space<vmem>>, vector<16x96xf32>
    tpu.vector_store %arg7[%c0_6, %c0_7], %7 {strides = array<i32>} : memref<16x96xf32, #tpu.memory_space<vmem>>, vector<16x96xf32>,
    %c0_i32_8 = arith.constant 0 : i32
    %9 = arith.cmpi eq, %arg2, %c0_i32_8 : i32
    %10 = arith.extui %9 : i1 to i32
    %c0_i32_9 = arith.constant 0 : i32
    %11 = arith.cmpi ne, %10, %c0_i32_9 : i32
    scf.if %11 {
      %c0_10 = arith.constant 0 : index
      %c0_11 = arith.constant 0 : index
      %12 = vector.load %arg7[%c0_10, %c0_11] : memref<16x96xf32, #tpu.memory_space<vmem>>, vector<16x96xf32>
      %c0_12 = arith.constant 0 : index
      %c0_13 = arith.constant 0 : index
      %13 = vector.load %arg5[%c0_12, %c0_13] : memref<1x96xf32, #tpu.memory_space<vmem>>, vector<1x96xf32>
      %14 = vector.broadcast %13 : vector<1x96xf32> to vector<16x96xf32>
      %15 = arith.addf %12, %14 : vector<16x96xf32>
      %16 = arith.truncf %15 : vector<16x96xf32> to vector<16x96xbf16>
      %c0_14 = arith.constant 0 : index
      %c0_15 = arith.constant 0 : index
      %17 = vector.load %arg6[%c0_14, %c0_15] : memref<16x96xbf16, #tpu.memory_space<vmem>>, vector<16x96xbf16>
      tpu.vector_store %arg6[%c0_14, %c0_15], %16 {strides = array<i32>} : memref<16x96xbf16, #tpu.memory_space<vmem>>, vector<16x96xbf16>,
    } else {
    }
    return
  }
  func.func @transform_0(%arg0: i32, %arg1: i32, %arg2: i32) -> (i32, i32) {
    %c0_i32 = arith.constant 0 : i32
    return %arg0, %arg2 : i32, i32
  }
  func.func @transform_1(%arg0: i32, %arg1: i32, %arg2: i32) -> (i32, i32) {
    %c0_i32 = arith.constant 0 : i32
    return %arg2, %arg1 : i32, i32
  }
  func.func @transform_2(%arg0: i32, %arg1: i32, %arg2: i32) -> (i32, i32) {
    %c0_i32 = arith.constant 0 : i32
    %c0_i32_0 = arith.constant 0 : i32
    return %c0_i32, %arg1 : i32, i32
  }
  func.func @transform_3(%arg0: i32, %arg1: i32, %arg2: i32) -> (i32, i32) {
    %c0_i32 = arith.constant 0 : i32
    return %arg0, %arg1 : i32, i32
  }
}

module attributes {stable_mosaic.version = 11 : i64} {
  func.func @_self_attn_kernel(%arg0: i32, %arg1: memref<1x8x96xbf16, #tpu.memory_space<vmem>>, %arg2: memref<1x8x32xbf16, #tpu.memory_space<vmem>>) attributes {dimension_semantics = [#tpu.dimension_semantics<parallel>], iteration_bounds = array<i64: 2>, scalar_prefetch = 0 : i64, scratch_operands = 0 : i64, tpu.core_type = #tpu.core_type<tc>, window_params = [{transform_indices = @transform_0, window_bounds = array<i64: 1, 8, 96>}, {transform_indices = @transform_1, window_bounds = array<i64: 1, 8, 32>}]} {
    %c0 = arith.constant 0 : index
    %c0_0 = arith.constant 0 : index
    %c0_1 = arith.constant 0 : index
    %0 = vector.load %arg1[%c0, %c0_0, %c0_1] : memref<1x8x96xbf16, #tpu.memory_space<vmem>>, vector<1x8x96xbf16>
    %1 = vector.shape_cast %0 : vector<1x8x96xbf16> to vector<8x96xbf16>
    %2 = vector.extract_strided_slice %1 {offsets = [0, 0], sizes = [8, 32], strides = [1, 1]} : vector<8x96xbf16> to vector<8x32xbf16>
    %cst = arith.constant 2.500000e-01 : bf16
    %3 = vector.broadcast %cst : bf16 to vector<8x32xbf16>
    %4 = arith.mulf %2, %3 : vector<8x32xbf16>
    %5 = vector.extract_strided_slice %1 {offsets = [0, 32], sizes = [8, 32], strides = [1, 1]} : vector<8x96xbf16> to vector<8x32xbf16>
    %6 = vector.extract_strided_slice %1 {offsets = [0, 64], sizes = [8, 32], strides = [1, 1]} : vector<8x96xbf16> to vector<8x32xbf16>
    %7 = vector.extract_strided_slice %4 {offsets = [0, 0], sizes = [8, 16], strides = [1, 1]} : vector<8x32xbf16> to vector<8x16xbf16>
    %8 = vector.extract_strided_slice %5 {offsets = [0, 0], sizes = [8, 16], strides = [1, 1]} : vector<8x32xbf16> to vector<8x16xbf16>
    %9 = vector.extract_strided_slice %6 {offsets = [0, 0], sizes = [8, 16], strides = [1, 1]} : vector<8x32xbf16> to vector<8x16xbf16>
    %cst_2 = arith.constant dense<0.000000e+00> : vector<8x8xf32>
    %10 = tpu.matmul %7, %8, %cst_2 {dimension_numbers = #tpu.dot_dimension_numbers<[1], [1], [0], [0], [0, 0, 1, 0], [], []>} : vector<8x16xbf16>, vector<8x16xbf16>, vector<8x8xf32> -> vector<8x8xf32>
    %cst_3 = arith.constant dense<0xFF800000> : vector<8xf32>
    %11 = vector.multi_reduction <maximumf>, %10, %cst_3 [1] : vector<8x8xf32> to vector<8xf32>
    %12 = vector.shape_cast %11 : vector<8xf32> to vector<8x1xf32>
    %13 = vector.broadcast %12 : vector<8x1xf32> to vector<8x8xf32>
    %14 = arith.subf %10, %13 : vector<8x8xf32>
    %15 = math.exp %14 : vector<8x8xf32>
    %cst_4 = arith.constant dense<0.000000e+00> : vector<8xf32>
    %16 = vector.multi_reduction <add>, %15, %cst_4 [1] : vector<8x8xf32> to vector<8xf32>
    %17 = vector.shape_cast %16 : vector<8xf32> to vector<8x1xf32>
    %18 = tpu.reciprocal %17 {approx = true} : vector<8x1xf32> -> vector<8x1xf32>
    %19 = vector.broadcast %18 : vector<8x1xf32> to vector<8x8xf32>
    %20 = arith.mulf %15, %19 : vector<8x8xf32>
    %21 = arith.truncf %20 : vector<8x8xf32> to vector<8x8xbf16>
    %cst_5 = arith.constant dense<0.000000e+00> : vector<8x16xf32>
    %22 = tpu.matmul %21, %9, %cst_5 {dimension_numbers = #tpu.dot_dimension_numbers<[1], [0], [0], [1], [0, 0, 1, 1], [], []>} : vector<8x8xbf16>, vector<8x16xbf16>, vector<8x16xf32> -> vector<8x16xf32>
    %23 = arith.truncf %22 : vector<8x16xf32> to vector<8x16xbf16>
    %c0_6 = arith.constant 0 : index
    %c0_7 = arith.constant 0 : index
    %c0_8 = arith.constant 0 : index
    %24 = vector.load %arg2[%c0_6, %c0_7, %c0_8] : memref<1x8x32xbf16, #tpu.memory_space<vmem>>, vector<1x8x16xbf16>
    %25 = vector.shape_cast %24 : vector<1x8x16xbf16> to vector<8x16xbf16>
    %26 = vector.shape_cast %23 : vector<8x16xbf16> to vector<1x8x16xbf16>
    tpu.vector_store %arg2[%c0_6, %c0_7, %c0_8], %26 {strides = array<i32>} : memref<1x8x32xbf16, #tpu.memory_space<vmem>>, vector<1x8x16xbf16>,
    %27 = vector.extract_strided_slice %4 {offsets = [0, 16], sizes = [8, 16], strides = [1, 1]} : vector<8x32xbf16> to vector<8x16xbf16>
    %28 = vector.extract_strided_slice %5 {offsets = [0, 16], sizes = [8, 16], strides = [1, 1]} : vector<8x32xbf16> to vector<8x16xbf16>
    %29 = vector.extract_strided_slice %6 {offsets = [0, 16], sizes = [8, 16], strides = [1, 1]} : vector<8x32xbf16> to vector<8x16xbf16>
    %cst_9 = arith.constant dense<0.000000e+00> : vector<8x8xf32>
    %30 = tpu.matmul %27, %28, %cst_9 {dimension_numbers = #tpu.dot_dimension_numbers<[1], [1], [0], [0], [0, 0, 1, 0], [], []>} : vector<8x16xbf16>, vector<8x16xbf16>, vector<8x8xf32> -> vector<8x8xf32>
    %cst_10 = arith.constant dense<0xFF800000> : vector<8xf32>
    %31 = vector.multi_reduction <maximumf>, %30, %cst_10 [1] : vector<8x8xf32> to vector<8xf32>
    %32 = vector.shape_cast %31 : vector<8xf32> to vector<8x1xf32>
    %33 = vector.broadcast %32 : vector<8x1xf32> to vector<8x8xf32>
    %34 = arith.subf %30, %33 : vector<8x8xf32>
    %35 = math.exp %34 : vector<8x8xf32>
    %cst_11 = arith.constant dense<0.000000e+00> : vector<8xf32>
    %36 = vector.multi_reduction <add>, %35, %cst_11 [1] : vector<8x8xf32> to vector<8xf32>
    %37 = vector.shape_cast %36 : vector<8xf32> to vector<8x1xf32>
    %38 = tpu.reciprocal %37 {approx = true} : vector<8x1xf32> -> vector<8x1xf32>
    %39 = vector.broadcast %38 : vector<8x1xf32> to vector<8x8xf32>
    %40 = arith.mulf %35, %39 : vector<8x8xf32>
    %41 = arith.truncf %40 : vector<8x8xf32> to vector<8x8xbf16>
    %cst_12 = arith.constant dense<0.000000e+00> : vector<8x16xf32>
    %42 = tpu.matmul %41, %29, %cst_12 {dimension_numbers = #tpu.dot_dimension_numbers<[1], [0], [0], [1], [0, 0, 1, 1], [], []>} : vector<8x8xbf16>, vector<8x16xbf16>, vector<8x16xf32> -> vector<8x16xf32>
    %43 = arith.truncf %42 : vector<8x16xf32> to vector<8x16xbf16>
    %c0_13 = arith.constant 0 : index
    %c0_14 = arith.constant 0 : index
    %c16 = arith.constant 16 : index
    %44 = vector.load %arg2[%c0_13, %c0_14, %c16] : memref<1x8x32xbf16, #tpu.memory_space<vmem>>, vector<1x8x16xbf16>
    %45 = vector.shape_cast %44 : vector<1x8x16xbf16> to vector<8x16xbf16>
    %46 = vector.shape_cast %43 : vector<8x16xbf16> to vector<1x8x16xbf16>
    tpu.vector_store %arg2[%c0_13, %c0_14, %c16], %46 {strides = array<i32>} : memref<1x8x32xbf16, #tpu.memory_space<vmem>>, vector<1x8x16xbf16>,
    return
  }
  func.func @transform_0(%arg0: i32) -> (i32, i32, i32) {
    %c0_i32 = arith.constant 0 : i32
    %c0_i32_0 = arith.constant 0 : i32
    %c0_i32_1 = arith.constant 0 : i32
    return %arg0, %c0_i32, %c0_i32_0 : i32, i32, i32
  }
  func.func @transform_1(%arg0: i32) -> (i32, i32, i32) {
    %c0_i32 = arith.constant 0 : i32
    %c0_i32_0 = arith.constant 0 : i32
    %c0_i32_1 = arith.constant 0 : i32
    return %arg0, %c0_i32, %c0_i32_0 : i32, i32, i32
  }
}

module attributes {stable_mosaic.version = 11 : i64} {
  func.func @_matmul_res_ln_kernel(%arg0: i32, %arg1: i32, %arg2: memref<16x32xbf16, #tpu.memory_space<vmem>>, %arg3: memref<32x32xbf16, #tpu.memory_space<vmem>>, %arg4: memref<1x32xf32, #tpu.memory_space<vmem>>, %arg5: memref<16x32xbf16, #tpu.memory_space<vmem>>, %arg6: memref<1x32xf32, #tpu.memory_space<vmem>>, %arg7: memref<1x32xf32, #tpu.memory_space<vmem>>, %arg8: memref<16x32xbf16, #tpu.memory_space<vmem>>, %arg9: memref<16x32xf32, #tpu.memory_space<vmem>>) attributes {dimension_semantics = [#tpu.dimension_semantics<parallel>, #tpu.dimension_semantics<arbitrary>], iteration_bounds = array<i64: 1, 1>, scalar_prefetch = 0 : i64, scratch_operands = 1 : i64, tpu.core_type = #tpu.core_type<tc>, window_params = [{transform_indices = @transform_0, window_bounds = array<i64: 16, 32>}, {transform_indices = @transform_1, window_bounds = array<i64: 32, 32>}, {pipeline_mode = #tpu.pipeline_mode<synchronous>, transform_indices = @transform_2, window_bounds = array<i64: 1, 32>}, {transform_indices = @transform_3, window_bounds = array<i64: 16, 32>}, {pipeline_mode = #tpu.pipeline_mode<synchronous>, transform_indices = @transform_4, window_bounds = array<i64: 1, 32>}, {pipeline_mode = #tpu.pipeline_mode<synchronous>, transform_indices = @transform_5, window_bounds = array<i64: 1, 32>}, {transform_indices = @transform_6, window_bounds = array<i64: 16, 32>}]} {
    %c0_i32 = arith.constant 0 : i32
    %0 = arith.cmpi eq, %arg1, %c0_i32 : i32
    %1 = arith.extui %0 : i1 to i32
    %c0_i32_0 = arith.constant 0 : i32
    %2 = arith.cmpi ne, %1, %c0_i32_0 : i32
    scf.if %2 {
      %cst_10 = arith.constant 0.000000e+00 : f32
      %12 = vector.broadcast %cst_10 : f32 to vector<16x32xf32>
      %c0_11 = arith.constant 0 : index
      %c0_12 = arith.constant 0 : index
      %13 = vector.load %arg9[%c0_11, %c0_12] : memref<16x32xf32, #tpu.memory_space<vmem>>, vector<16x32xf32>
      tpu.vector_store %arg9[%c0_11, %c0_12], %12 {strides = array<i32>} : memref<16x32xf32, #tpu.memory_space<vmem>>, vector<16x32xf32>,
    } else {
    }
    %c0 = arith.constant 0 : index
    %c0_1 = arith.constant 0 : index
    %3 = vector.load %arg9[%c0, %c0_1] : memref<16x32xf32, #tpu.memory_space<vmem>>, vector<16x32xf32>
    %c0_2 = arith.constant 0 : index
    %c0_3 = arith.constant 0 : index
    %4 = vector.load %arg2[%c0_2, %c0_3] : memref<16x32xbf16, #tpu.memory_space<vmem>>, vector<16x32xbf16>
    %c0_4 = arith.constant 0 : index
    %c0_5 = arith.constant 0 : index
    %5 = vector.load %arg3[%c0_4, %c0_5] : memref<32x32xbf16, #tpu.memory_space<vmem>>, vector<32x32xbf16>
    %cst = arith.constant dense<0.000000e+00> : vector<16x32xf32>
    %6 = tpu.matmul %4, %5, %cst {dimension_numbers = #tpu.dot_dimension_numbers<[1], [0], [0], [1], [0, 0, 1, 1], [], []>} : vector<16x32xbf16>, vector<32x32xbf16>, vector<16x32xf32> -> vector<16x32xf32>
    %7 = arith.addf %3, %6 : vector<16x32xf32>
    %c0_6 = arith.constant 0 : index
    %c0_7 = arith.constant 0 : index
    %8 = vector.load %arg9[%c0_6, %c0_7] : memref<16x32xf32, #tpu.memory_space<vmem>>, vector<16x32xf32>
    tpu.vector_store %arg9[%c0_6, %c0_7], %7 {strides = array<i32>} : memref<16x32xf32, #tpu.memory_space<vmem>>, vector<16x32xf32>,
    %c0_i32_8 = arith.constant 0 : i32
    %9 = arith.cmpi eq, %arg1, %c0_i32_8 : i32
    %10 = arith.extui %9 : i1 to i32
    %c0_i32_9 = arith.constant 0 : i32
    %11 = arith.cmpi ne, %10, %c0_i32_9 : i32
    scf.if %11 {
      %c0_10 = arith.constant 0 : index
      %c0_11 = arith.constant 0 : index
      %12 = vector.load %arg9[%c0_10, %c0_11] : memref<16x32xf32, #tpu.memory_space<vmem>>, vector<16x32xf32>
      %c0_12 = arith.constant 0 : index
      %c0_13 = arith.constant 0 : index
      %13 = vector.load %arg4[%c0_12, %c0_13] : memref<1x32xf32, #tpu.memory_space<vmem>>, vector<1x32xf32>
      %14 = vector.broadcast %13 : vector<1x32xf32> to vector<16x32xf32>
      %15 = arith.addf %12, %14 : vector<16x32xf32>
      %c0_14 = arith.constant 0 : index
      %c0_15 = arith.constant 0 : index
      %16 = vector.load %arg5[%c0_14, %c0_15] : memref<16x32xbf16, #tpu.memory_space<vmem>>, vector<16x32xbf16>
      %17 = arith.extf %16 : vector<16x32xbf16> to vector<16x32xf32>
      %18 = arith.addf %15, %17 : vector<16x32xf32>
      %cst_16 = arith.constant dense<0.000000e+00> : vector<16xf32>
      %19 = vector.multi_reduction <add>, %18, %cst_16 [1] : vector<16x32xf32> to vector<16xf32>
      %20 = vector.shape_cast %19 : vector<16xf32> to vector<16x1xf32>
      %cst_17 = arith.constant 3.200000e+01 : f32
      %21 = vector.broadcast %cst_17 : f32 to vector<16x1xf32>
      %22 = arith.divf %20, %21 : vector<16x1xf32>
      %23 = vector.broadcast %22 : vector<16x1xf32> to vector<16x32xf32>
      %24 = arith.subf %18, %23 : vector<16x32xf32>
      %25 = vector.broadcast %22 : vector<16x1xf32> to vector<16x32xf32>
      %26 = arith.subf %18, %25 : vector<16x32xf32>
      %27 = arith.mulf %24, %26 : vector<16x32xf32>
      %cst_18 = arith.constant dense<0.000000e+00> : vector<16xf32>
      %28 = vector.multi_reduction <add>, %27, %cst_18 [1] : vector<16x32xf32> to vector<16xf32>
      %29 = vector.shape_cast %28 : vector<16xf32> to vector<16x1xf32>
      %cst_19 = arith.constant 3.200000e+01 : f32
      %30 = vector.broadcast %cst_19 : f32 to vector<16x1xf32>
      %31 = arith.divf %29, %30 : vector<16x1xf32>
      %32 = vector.broadcast %22 : vector<16x1xf32> to vector<16x32xf32>
      %33 = arith.subf %18, %32 : vector<16x32xf32>
      %cst_20 = arith.constant 9.99999996E-13 : f32
      %34 = vector.broadcast %cst_20 : f32 to vector<16x1xf32>
      %35 = arith.addf %31, %34 : vector<16x1xf32>
      %36 = math.rsqrt %35 : vector<16x1xf32>
      %37 = vector.broadcast %36 : vector<16x1xf32> to vector<16x32xf32>
      %38 = arith.mulf %33, %37 : vector<16x32xf32>
      %c0_21 = arith.constant 0 : index
      %c0_22 = arith.constant 0 : index
      %39 = vector.load %arg6[%c0_21, %c0_22] : memref<1x32xf32, #tpu.memory_space<vmem>>, vector<1x32xf32>
      %40 = vector.broadcast %39 : vector<1x32xf32> to vector<16x32xf32>
      %41 = arith.mulf %38, %40 : vector<16x32xf32>
      %c0_23 = arith.constant 0 : index
      %c0_24 = arith.constant 0 : index
      %42 = vector.load %arg7[%c0_23, %c0_24] : memref<1x32xf32, #tpu.memory_space<vmem>>, vector<1x32xf32>
      %43 = vector.broadcast %42 : vector<1x32xf32> to vector<16x32xf32>
      %44 = arith.addf %41, %43 : vector<16x32xf32>
      %45 = arith.truncf %44 : vector<16x32xf32> to vector<16x32xbf16>
      %c0_25 = arith.constant 0 : index
      %c0_26 = arith.constant 0 : index
      %46 = vector.load %arg8[%c0_25, %c0_26] : memref<16x32xbf16, #tpu.memory_space<vmem>>, vector<16x32xbf16>
      tpu.vector_store %arg8[%c0_25, %c0_26], %45 {strides = array<i32>} : memref<16x32xbf16, #tpu.memory_space<vmem>>, vector<16x32xbf16>,
    } else {
    }
    return
  }
  func.func @transform_0(%arg0: i32, %arg1: i32) -> (i32, i32) {
    %c0_i32 = arith.constant 0 : i32
    return %arg0, %arg1 : i32, i32
  }
  func.func @transform_1(%arg0: i32, %arg1: i32) -> (i32, i32) {
    %c0_i32 = arith.constant 0 : i32
    %c0_i32_0 = arith.constant 0 : i32
    return %arg1, %c0_i32 : i32, i32
  }
  func.func @transform_2(%arg0: i32, %arg1: i32) -> (i32, i32) {
    %c0_i32 = arith.constant 0 : i32
    %c0_i32_0 = arith.constant 0 : i32
    %c0_i32_1 = arith.constant 0 : i32
    return %c0_i32, %c0_i32_0 : i32, i32
  }
  func.func @transform_3(%arg0: i32, %arg1: i32) -> (i32, i32) {
    %c0_i32 = arith.constant 0 : i32
    %c0_i32_0 = arith.constant 0 : i32
    return %arg0, %c0_i32 : i32, i32
  }
  func.func @transform_4(%arg0: i32, %arg1: i32) -> (i32, i32) {
    %c0_i32 = arith.constant 0 : i32
    %c0_i32_0 = arith.constant 0 : i32
    %c0_i32_1 = arith.constant 0 : i32
    return %c0_i32, %c0_i32_0 : i32, i32
  }
  func.func @transform_5(%arg0: i32, %arg1: i32) -> (i32, i32) {
    %c0_i32 = arith.constant 0 : i32
    %c0_i32_0 = arith.constant 0 : i32
    %c0_i32_1 = arith.constant 0 : i32
    return %c0_i32, %c0_i32_0 : i32, i32
  }
  func.func @transform_6(%arg0: i32, %arg1: i32) -> (i32, i32) {
    %c0_i32 = arith.constant 0 : i32
    %c0_i32_0 = arith.constant 0 : i32
    return %arg0, %c0_i32 : i32, i32
  }
}

module attributes {stable_mosaic.version = 11 : i64} {
  func.func @_matmul_res_ln_kernel(%arg0: i32, %arg1: i32, %arg2: memref<16x64xbf16, #tpu.memory_space<vmem>>, %arg3: memref<64x32xbf16, #tpu.memory_space<vmem>>, %arg4: memref<1x32xf32, #tpu.memory_space<vmem>>, %arg5: memref<16x32xbf16, #tpu.memory_space<vmem>>, %arg6: memref<1x32xf32, #tpu.memory_space<vmem>>, %arg7: memref<1x32xf32, #tpu.memory_space<vmem>>, %arg8: memref<16x32xbf16, #tpu.memory_space<vmem>>, %arg9: memref<16x32xf32, #tpu.memory_space<vmem>>) attributes {dimension_semantics = [#tpu.dimension_semantics<parallel>, #tpu.dimension_semantics<arbitrary>], iteration_bounds = array<i64: 1, 1>, scalar_prefetch = 0 : i64, scratch_operands = 1 : i64, tpu.core_type = #tpu.core_type<tc>, window_params = [{transform_indices = @transform_0, window_bounds = array<i64: 16, 64>}, {transform_indices = @transform_1, window_bounds = array<i64: 64, 32>}, {pipeline_mode = #tpu.pipeline_mode<synchronous>, transform_indices = @transform_2, window_bounds = array<i64: 1, 32>}, {transform_indices = @transform_3, window_bounds = array<i64: 16, 32>}, {pipeline_mode = #tpu.pipeline_mode<synchronous>, transform_indices = @transform_4, window_bounds = array<i64: 1, 32>}, {pipeline_mode = #tpu.pipeline_mode<synchronous>, transform_indices = @transform_5, window_bounds = array<i64: 1, 32>}, {transform_indices = @transform_6, window_bounds = array<i64: 16, 32>}]} {
    %c0_i32 = arith.constant 0 : i32
    %0 = arith.cmpi eq, %arg1, %c0_i32 : i32
    %1 = arith.extui %0 : i1 to i32
    %c0_i32_0 = arith.constant 0 : i32
    %2 = arith.cmpi ne, %1, %c0_i32_0 : i32
    scf.if %2 {
      %cst_10 = arith.constant 0.000000e+00 : f32
      %12 = vector.broadcast %cst_10 : f32 to vector<16x32xf32>
      %c0_11 = arith.constant 0 : index
      %c0_12 = arith.constant 0 : index
      %13 = vector.load %arg9[%c0_11, %c0_12] : memref<16x32xf32, #tpu.memory_space<vmem>>, vector<16x32xf32>
      tpu.vector_store %arg9[%c0_11, %c0_12], %12 {strides = array<i32>} : memref<16x32xf32, #tpu.memory_space<vmem>>, vector<16x32xf32>,
    } else {
    }
    %c0 = arith.constant 0 : index
    %c0_1 = arith.constant 0 : index
    %3 = vector.load %arg9[%c0, %c0_1] : memref<16x32xf32, #tpu.memory_space<vmem>>, vector<16x32xf32>
    %c0_2 = arith.constant 0 : index
    %c0_3 = arith.constant 0 : index
    %4 = vector.load %arg2[%c0_2, %c0_3] : memref<16x64xbf16, #tpu.memory_space<vmem>>, vector<16x64xbf16>
    %c0_4 = arith.constant 0 : index
    %c0_5 = arith.constant 0 : index
    %5 = vector.load %arg3[%c0_4, %c0_5] : memref<64x32xbf16, #tpu.memory_space<vmem>>, vector<64x32xbf16>
    %cst = arith.constant dense<0.000000e+00> : vector<16x32xf32>
    %6 = tpu.matmul %4, %5, %cst {dimension_numbers = #tpu.dot_dimension_numbers<[1], [0], [0], [1], [0, 0, 1, 1], [], []>} : vector<16x64xbf16>, vector<64x32xbf16>, vector<16x32xf32> -> vector<16x32xf32>
    %7 = arith.addf %3, %6 : vector<16x32xf32>
    %c0_6 = arith.constant 0 : index
    %c0_7 = arith.constant 0 : index
    %8 = vector.load %arg9[%c0_6, %c0_7] : memref<16x32xf32, #tpu.memory_space<vmem>>, vector<16x32xf32>
    tpu.vector_store %arg9[%c0_6, %c0_7], %7 {strides = array<i32>} : memref<16x32xf32, #tpu.memory_space<vmem>>, vector<16x32xf32>,
    %c0_i32_8 = arith.constant 0 : i32
    %9 = arith.cmpi eq, %arg1, %c0_i32_8 : i32
    %10 = arith.extui %9 : i1 to i32
    %c0_i32_9 = arith.constant 0 : i32
    %11 = arith.cmpi ne, %10, %c0_i32_9 : i32
    scf.if %11 {
      %c0_10 = arith.constant 0 : index
      %c0_11 = arith.constant 0 : index
      %12 = vector.load %arg9[%c0_10, %c0_11] : memref<16x32xf32, #tpu.memory_space<vmem>>, vector<16x32xf32>
      %c0_12 = arith.constant 0 : index
      %c0_13 = arith.constant 0 : index
      %13 = vector.load %arg4[%c0_12, %c0_13] : memref<1x32xf32, #tpu.memory_space<vmem>>, vector<1x32xf32>
      %14 = vector.broadcast %13 : vector<1x32xf32> to vector<16x32xf32>
      %15 = arith.addf %12, %14 : vector<16x32xf32>
      %c0_14 = arith.constant 0 : index
      %c0_15 = arith.constant 0 : index
      %16 = vector.load %arg5[%c0_14, %c0_15] : memref<16x32xbf16, #tpu.memory_space<vmem>>, vector<16x32xbf16>
      %17 = arith.extf %16 : vector<16x32xbf16> to vector<16x32xf32>
      %18 = arith.addf %15, %17 : vector<16x32xf32>
      %cst_16 = arith.constant dense<0.000000e+00> : vector<16xf32>
      %19 = vector.multi_reduction <add>, %18, %cst_16 [1] : vector<16x32xf32> to vector<16xf32>
      %20 = vector.shape_cast %19 : vector<16xf32> to vector<16x1xf32>
      %cst_17 = arith.constant 3.200000e+01 : f32
      %21 = vector.broadcast %cst_17 : f32 to vector<16x1xf32>
      %22 = arith.divf %20, %21 : vector<16x1xf32>
      %23 = vector.broadcast %22 : vector<16x1xf32> to vector<16x32xf32>
      %24 = arith.subf %18, %23 : vector<16x32xf32>
      %25 = vector.broadcast %22 : vector<16x1xf32> to vector<16x32xf32>
      %26 = arith.subf %18, %25 : vector<16x32xf32>
      %27 = arith.mulf %24, %26 : vector<16x32xf32>
      %cst_18 = arith.constant dense<0.000000e+00> : vector<16xf32>
      %28 = vector.multi_reduction <add>, %27, %cst_18 [1] : vector<16x32xf32> to vector<16xf32>
      %29 = vector.shape_cast %28 : vector<16xf32> to vector<16x1xf32>
      %cst_19 = arith.constant 3.200000e+01 : f32
      %30 = vector.broadcast %cst_19 : f32 to vector<16x1xf32>
      %31 = arith.divf %29, %30 : vector<16x1xf32>
      %32 = vector.broadcast %22 : vector<16x1xf32> to vector<16x32xf32>
      %33 = arith.subf %18, %32 : vector<16x32xf32>
      %cst_20 = arith.constant 9.99999996E-13 : f32
      %34 = vector.broadcast %cst_20 : f32 to vector<16x1xf32>
      %35 = arith.addf %31, %34 : vector<16x1xf32>
      %36 = math.rsqrt %35 : vector<16x1xf32>
      %37 = vector.broadcast %36 : vector<16x1xf32> to vector<16x32xf32>
      %38 = arith.mulf %33, %37 : vector<16x32xf32>
      %c0_21 = arith.constant 0 : index
      %c0_22 = arith.constant 0 : index
      %39 = vector.load %arg6[%c0_21, %c0_22] : memref<1x32xf32, #tpu.memory_space<vmem>>, vector<1x32xf32>
      %40 = vector.broadcast %39 : vector<1x32xf32> to vector<16x32xf32>
      %41 = arith.mulf %38, %40 : vector<16x32xf32>
      %c0_23 = arith.constant 0 : index
      %c0_24 = arith.constant 0 : index
      %42 = vector.load %arg7[%c0_23, %c0_24] : memref<1x32xf32, #tpu.memory_space<vmem>>, vector<1x32xf32>
      %43 = vector.broadcast %42 : vector<1x32xf32> to vector<16x32xf32>
      %44 = arith.addf %41, %43 : vector<16x32xf32>
      %45 = arith.truncf %44 : vector<16x32xf32> to vector<16x32xbf16>
      %c0_25 = arith.constant 0 : index
      %c0_26 = arith.constant 0 : index
      %46 = vector.load %arg8[%c0_25, %c0_26] : memref<16x32xbf16, #tpu.memory_space<vmem>>, vector<16x32xbf16>
      tpu.vector_store %arg8[%c0_25, %c0_26], %45 {strides = array<i32>} : memref<16x32xbf16, #tpu.memory_space<vmem>>, vector<16x32xbf16>,
    } else {
    }
    return
  }
  func.func @transform_0(%arg0: i32, %arg1: i32) -> (i32, i32) {
    %c0_i32 = arith.constant 0 : i32
    return %arg0, %arg1 : i32, i32
  }
  func.func @transform_1(%arg0: i32, %arg1: i32) -> (i32, i32) {
    %c0_i32 = arith.constant 0 : i32
    %c0_i32_0 = arith.constant 0 : i32
    return %arg1, %c0_i32 : i32, i32
  }
  func.func @transform_2(%arg0: i32, %arg1: i32) -> (i32, i32) {
    %c0_i32 = arith.constant 0 : i32
    %c0_i32_0 = arith.constant 0 : i32
    %c0_i32_1 = arith.constant 0 : i32
    return %c0_i32, %c0_i32_0 : i32, i32
  }
  func.func @transform_3(%arg0: i32, %arg1: i32) -> (i32, i32) {
    %c0_i32 = arith.constant 0 : i32
    %c0_i32_0 = arith.constant 0 : i32
    return %arg0, %c0_i32 : i32, i32
  }
  func.func @transform_4(%arg0: i32, %arg1: i32) -> (i32, i32) {
    %c0_i32 = arith.constant 0 : i32
    %c0_i32_0 = arith.constant 0 : i32
    %c0_i32_1 = arith.constant 0 : i32
    return %c0_i32, %c0_i32_0 : i32, i32
  }
  func.func @transform_5(%arg0: i32, %arg1: i32) -> (i32, i32) {
    %c0_i32 = arith.constant 0 : i32
    %c0_i32_0 = arith.constant 0 : i32
    %c0_i32_1 = arith.constant 0 : i32
    return %c0_i32, %c0_i32_0 : i32, i32
  }
  func.func @transform_6(%arg0: i32, %arg1: i32) -> (i32, i32) {
    %c0_i32 = arith.constant 0 : i32
    %c0_i32_0 = arith.constant 0 : i32
    return %arg0, %c0_i32 : i32, i32
  }
}

module attributes {stable_mosaic.version = 11 : i64} {
  func.func @_matmul_bias_kernel(%arg0: i32, %arg1: i32, %arg2: i32, %arg3: memref<16x32xbf16, #tpu.memory_space<vmem>>, %arg4: memref<32x64xbf16, #tpu.memory_space<vmem>>, %arg5: memref<1x64xf32, #tpu.memory_space<vmem>>, %arg6: memref<16x64xbf16, #tpu.memory_space<vmem>>, %arg7: memref<16x64xf32, #tpu.memory_space<vmem>>) attributes {dimension_semantics = [#tpu.dimension_semantics<parallel>, #tpu.dimension_semantics<parallel>, #tpu.dimension_semantics<arbitrary>], iteration_bounds = array<i64: 1, 1, 1>, scalar_prefetch = 0 : i64, scratch_operands = 1 : i64, tpu.core_type = #tpu.core_type<tc>, window_params = [{transform_indices = @transform_0, window_bounds = array<i64: 16, 32>}, {transform_indices = @transform_1, window_bounds = array<i64: 32, 64>}, {transform_indices = @transform_2, window_bounds = array<i64: 1, 64>}, {transform_indices = @transform_3, window_bounds = array<i64: 16, 64>}]} {
    %c0_i32 = arith.constant 0 : i32
    %0 = arith.cmpi eq, %arg2, %c0_i32 : i32
    %1 = arith.extui %0 : i1 to i32
    %c0_i32_0 = arith.constant 0 : i32
    %2 = arith.cmpi ne, %1, %c0_i32_0 : i32
    scf.if %2 {
      %cst_10 = arith.constant 0.000000e+00 : f32
      %12 = vector.broadcast %cst_10 : f32 to vector<16x64xf32>
      %c0_11 = arith.constant 0 : index
      %c0_12 = arith.constant 0 : index
      %13 = vector.load %arg7[%c0_11, %c0_12] : memref<16x64xf32, #tpu.memory_space<vmem>>, vector<16x64xf32>
      tpu.vector_store %arg7[%c0_11, %c0_12], %12 {strides = array<i32>} : memref<16x64xf32, #tpu.memory_space<vmem>>, vector<16x64xf32>,
    } else {
    }
    %c0 = arith.constant 0 : index
    %c0_1 = arith.constant 0 : index
    %3 = vector.load %arg7[%c0, %c0_1] : memref<16x64xf32, #tpu.memory_space<vmem>>, vector<16x64xf32>
    %c0_2 = arith.constant 0 : index
    %c0_3 = arith.constant 0 : index
    %4 = vector.load %arg3[%c0_2, %c0_3] : memref<16x32xbf16, #tpu.memory_space<vmem>>, vector<16x32xbf16>
    %c0_4 = arith.constant 0 : index
    %c0_5 = arith.constant 0 : index
    %5 = vector.load %arg4[%c0_4, %c0_5] : memref<32x64xbf16, #tpu.memory_space<vmem>>, vector<32x64xbf16>
    %cst = arith.constant dense<0.000000e+00> : vector<16x64xf32>
    %6 = tpu.matmul %4, %5, %cst {dimension_numbers = #tpu.dot_dimension_numbers<[1], [0], [0], [1], [0, 0, 1, 1], [], []>} : vector<16x32xbf16>, vector<32x64xbf16>, vector<16x64xf32> -> vector<16x64xf32>
    %7 = arith.addf %3, %6 : vector<16x64xf32>
    %c0_6 = arith.constant 0 : index
    %c0_7 = arith.constant 0 : index
    %8 = vector.load %arg7[%c0_6, %c0_7] : memref<16x64xf32, #tpu.memory_space<vmem>>, vector<16x64xf32>
    tpu.vector_store %arg7[%c0_6, %c0_7], %7 {strides = array<i32>} : memref<16x64xf32, #tpu.memory_space<vmem>>, vector<16x64xf32>,
    %c0_i32_8 = arith.constant 0 : i32
    %9 = arith.cmpi eq, %arg2, %c0_i32_8 : i32
    %10 = arith.extui %9 : i1 to i32
    %c0_i32_9 = arith.constant 0 : i32
    %11 = arith.cmpi ne, %10, %c0_i32_9 : i32
    scf.if %11 {
      %c0_10 = arith.constant 0 : index
      %c0_11 = arith.constant 0 : index
      %12 = vector.load %arg7[%c0_10, %c0_11] : memref<16x64xf32, #tpu.memory_space<vmem>>, vector<16x64xf32>
      %c0_12 = arith.constant 0 : index
      %c0_13 = arith.constant 0 : index
      %13 = vector.load %arg5[%c0_12, %c0_13] : memref<1x64xf32, #tpu.memory_space<vmem>>, vector<1x64xf32>
      %14 = vector.broadcast %13 : vector<1x64xf32> to vector<16x64xf32>
      %15 = arith.addf %12, %14 : vector<16x64xf32>
      %cst_14 = arith.constant 5.000000e-01 : f32
      %16 = vector.broadcast %cst_14 : f32 to vector<16x64xf32>
      %17 = arith.mulf %16, %15 : vector<16x64xf32>
      %cst_15 = arith.constant 4.471500e-02 : f32
      %18 = vector.broadcast %cst_15 : f32 to vector<16x64xf32>
      %19 = arith.mulf %18, %15 : vector<16x64xf32>
      %20 = arith.mulf %19, %15 : vector<16x64xf32>
      %21 = arith.mulf %20, %15 : vector<16x64xf32>
      %22 = arith.addf %15, %21 : vector<16x64xf32>
      %cst_16 = arith.constant 0.797884583 : f32
      %23 = vector.broadcast %cst_16 : f32 to vector<16x64xf32>
      %24 = arith.mulf %23, %22 : vector<16x64xf32>
      %25 = math.tanh %24 : vector<16x64xf32>
      %cst_17 = arith.constant 1.000000e+00 : f32
      %26 = vector.broadcast %cst_17 : f32 to vector<16x64xf32>
      %27 = arith.addf %26, %25 : vector<16x64xf32>
      %28 = arith.mulf %17, %27 : vector<16x64xf32>
      %29 = arith.truncf %28 : vector<16x64xf32> to vector<16x64xbf16>
      %c0_18 = arith.constant 0 : index
      %c0_19 = arith.constant 0 : index
      %30 = vector.load %arg6[%c0_18, %c0_19] : memref<16x64xbf16, #tpu.memory_space<vmem>>, vector<16x64xbf16>
      tpu.vector_store %arg6[%c0_18, %c0_19], %29 {strides = array<i32>} : memref<16x64xbf16, #tpu.memory_space<vmem>>, vector<16x64xbf16>,
    } else {
    }
    return
  }
  func.func @transform_0(%arg0: i32, %arg1: i32, %arg2: i32) -> (i32, i32) {
    %c0_i32 = arith.constant 0 : i32
    return %arg0, %arg2 : i32, i32
  }
  func.func @transform_1(%arg0: i32, %arg1: i32, %arg2: i32) -> (i32, i32) {
    %c0_i32 = arith.constant 0 : i32
    return %arg2, %arg1 : i32, i32
  }
  func.func @transform_2(%arg0: i32, %arg1: i32, %arg2: i32) -> (i32, i32) {
    %c0_i32 = arith.constant 0 : i32
    %c0_i32_0 = arith.constant 0 : i32
    return %c0_i32, %arg1 : i32, i32
  }
  func.func @transform_3(%arg0: i32, %arg1: i32, %arg2: i32) -> (i32, i32) {
    %c0_i32 = arith.constant 0 : i32
    return %arg0, %arg1 : i32, i32
  }
}

module attributes {stable_mosaic.version = 11 : i64} {
  func.func @_self_attn_kernel(%arg0: i32, %arg1: memref<1x8x96xbf16, #tpu.memory_space<vmem>>, %arg2: memref<1x8x32xbf16, #tpu.memory_space<vmem>>) attributes {dimension_semantics = [#tpu.dimension_semantics<parallel>], iteration_bounds = array<i64: 2>, scalar_prefetch = 0 : i64, scratch_operands = 0 : i64, tpu.core_type = #tpu.core_type<tc>, window_params = [{transform_indices = @transform_0, window_bounds = array<i64: 1, 8, 96>}, {transform_indices = @transform_1, window_bounds = array<i64: 1, 8, 32>}]} {
    %c0 = arith.constant 0 : index
    %c0_0 = arith.constant 0 : index
    %c0_1 = arith.constant 0 : index
    %0 = vector.load %arg1[%c0, %c0_0, %c0_1] : memref<1x8x96xbf16, #tpu.memory_space<vmem>>, vector<1x8x96xbf16>
    %1 = vector.shape_cast %0 : vector<1x8x96xbf16> to vector<8x96xbf16>
    %2 = vector.extract_strided_slice %1 {offsets = [0, 0], sizes = [8, 32], strides = [1, 1]} : vector<8x96xbf16> to vector<8x32xbf16>
    %cst = arith.constant 2.500000e-01 : bf16
    %3 = vector.broadcast %cst : bf16 to vector<8x32xbf16>
    %4 = arith.mulf %2, %3 : vector<8x32xbf16>
    %5 = vector.extract_strided_slice %1 {offsets = [0, 32], sizes = [8, 32], strides = [1, 1]} : vector<8x96xbf16> to vector<8x32xbf16>
    %6 = vector.extract_strided_slice %1 {offsets = [0, 64], sizes = [8, 32], strides = [1, 1]} : vector<8x96xbf16> to vector<8x32xbf16>
    %7 = tpu.iota {dimensions = array<i32: 0>} : vector<8x8xi32>
    %8 = tpu.iota {dimensions = array<i32: 1>} : vector<8x8xi32>
    %9 = arith.cmpi sle, %8, %7 : vector<8x8xi32>
    %cst_2 = arith.constant 0.000000e+00 : f32
    %cst_3 = arith.constant -1.000000e+30 : f32
    %10 = vector.broadcast %cst_2 : f32 to vector<8x8xf32>
    %11 = vector.broadcast %cst_3 : f32 to vector<8x8xf32>
    %12 = arith.select %9, %10, %11 : vector<8x8xi1>, vector<8x8xf32>
    %13 = vector.extract_strided_slice %4 {offsets = [0, 0], sizes = [8, 16], strides = [1, 1]} : vector<8x32xbf16> to vector<8x16xbf16>
    %14 = vector.extract_strided_slice %5 {offsets = [0, 0], sizes = [8, 16], strides = [1, 1]} : vector<8x32xbf16> to vector<8x16xbf16>
    %15 = vector.extract_strided_slice %6 {offsets = [0, 0], sizes = [8, 16], strides = [1, 1]} : vector<8x32xbf16> to vector<8x16xbf16>
    %cst_4 = arith.constant dense<0.000000e+00> : vector<8x8xf32>
    %16 = tpu.matmul %13, %14, %cst_4 {dimension_numbers = #tpu.dot_dimension_numbers<[1], [1], [0], [0], [0, 0, 1, 0], [], []>} : vector<8x16xbf16>, vector<8x16xbf16>, vector<8x8xf32> -> vector<8x8xf32>
    %17 = arith.addf %16, %12 : vector<8x8xf32>
    %cst_5 = arith.constant dense<0xFF800000> : vector<8xf32>
    %18 = vector.multi_reduction <maximumf>, %17, %cst_5 [1] : vector<8x8xf32> to vector<8xf32>
    %19 = vector.shape_cast %18 : vector<8xf32> to vector<8x1xf32>
    %20 = vector.broadcast %19 : vector<8x1xf32> to vector<8x8xf32>
    %21 = arith.subf %17, %20 : vector<8x8xf32>
    %22 = math.exp %21 : vector<8x8xf32>
    %cst_6 = arith.constant dense<0.000000e+00> : vector<8xf32>
    %23 = vector.multi_reduction <add>, %22, %cst_6 [1] : vector<8x8xf32> to vector<8xf32>
    %24 = vector.shape_cast %23 : vector<8xf32> to vector<8x1xf32>
    %25 = tpu.reciprocal %24 {approx = true} : vector<8x1xf32> -> vector<8x1xf32>
    %26 = vector.broadcast %25 : vector<8x1xf32> to vector<8x8xf32>
    %27 = arith.mulf %22, %26 : vector<8x8xf32>
    %28 = arith.truncf %27 : vector<8x8xf32> to vector<8x8xbf16>
    %cst_7 = arith.constant dense<0.000000e+00> : vector<8x16xf32>
    %29 = tpu.matmul %28, %15, %cst_7 {dimension_numbers = #tpu.dot_dimension_numbers<[1], [0], [0], [1], [0, 0, 1, 1], [], []>} : vector<8x8xbf16>, vector<8x16xbf16>, vector<8x16xf32> -> vector<8x16xf32>
    %30 = arith.truncf %29 : vector<8x16xf32> to vector<8x16xbf16>
    %c0_8 = arith.constant 0 : index
    %c0_9 = arith.constant 0 : index
    %c0_10 = arith.constant 0 : index
    %31 = vector.load %arg2[%c0_8, %c0_9, %c0_10] : memref<1x8x32xbf16, #tpu.memory_space<vmem>>, vector<1x8x16xbf16>
    %32 = vector.shape_cast %31 : vector<1x8x16xbf16> to vector<8x16xbf16>
    %33 = vector.shape_cast %30 : vector<8x16xbf16> to vector<1x8x16xbf16>
    tpu.vector_store %arg2[%c0_8, %c0_9, %c0_10], %33 {strides = array<i32>} : memref<1x8x32xbf16, #tpu.memory_space<vmem>>, vector<1x8x16xbf16>,
    %34 = vector.extract_strided_slice %4 {offsets = [0, 16], sizes = [8, 16], strides = [1, 1]} : vector<8x32xbf16> to vector<8x16xbf16>
    %35 = vector.extract_strided_slice %5 {offsets = [0, 16], sizes = [8, 16], strides = [1, 1]} : vector<8x32xbf16> to vector<8x16xbf16>
    %36 = vector.extract_strided_slice %6 {offsets = [0, 16], sizes = [8, 16], strides = [1, 1]} : vector<8x32xbf16> to vector<8x16xbf16>
    %cst_11 = arith.constant dense<0.000000e+00> : vector<8x8xf32>
    %37 = tpu.matmul %34, %35, %cst_11 {dimension_numbers = #tpu.dot_dimension_numbers<[1], [1], [0], [0], [0, 0, 1, 0], [], []>} : vector<8x16xbf16>, vector<8x16xbf16>, vector<8x8xf32> -> vector<8x8xf32>
    %38 = arith.addf %37, %12 : vector<8x8xf32>
    %cst_12 = arith.constant dense<0xFF800000> : vector<8xf32>
    %39 = vector.multi_reduction <maximumf>, %38, %cst_12 [1] : vector<8x8xf32> to vector<8xf32>
    %40 = vector.shape_cast %39 : vector<8xf32> to vector<8x1xf32>
    %41 = vector.broadcast %40 : vector<8x1xf32> to vector<8x8xf32>
    %42 = arith.subf %38, %41 : vector<8x8xf32>
    %43 = math.exp %42 : vector<8x8xf32>
    %cst_13 = arith.constant dense<0.000000e+00> : vector<8xf32>
    %44 = vector.multi_reduction <add>, %43, %cst_13 [1] : vector<8x8xf32> to vector<8xf32>
    %45 = vector.shape_cast %44 : vector<8xf32> to vector<8x1xf32>
    %46 = tpu.reciprocal %45 {approx = true} : vector<8x1xf32> -> vector<8x1xf32>
    %47 = vector.broadcast %46 : vector<8x1xf32> to vector<8x8xf32>
    %48 = arith.mulf %43, %47 : vector<8x8xf32>
    %49 = arith.truncf %48 : vector<8x8xf32> to vector<8x8xbf16>
    %cst_14 = arith.constant dense<0.000000e+00> : vector<8x16xf32>
    %50 = tpu.matmul %49, %36, %cst_14 {dimension_numbers = #tpu.dot_dimension_numbers<[1], [0], [0], [1], [0, 0, 1, 1], [], []>} : vector<8x8xbf16>, vector<8x16xbf16>, vector<8x16xf32> -> vector<8x16xf32>
    %51 = arith.truncf %50 : vector<8x16xf32> to vector<8x16xbf16>
    %c0_15 = arith.constant 0 : index
    %c0_16 = arith.constant 0 : index
    %c16 = arith.constant 16 : index
    %52 = vector.load %arg2[%c0_15, %c0_16, %c16] : memref<1x8x32xbf16, #tpu.memory_space<vmem>>, vector<1x8x16xbf16>
    %53 = vector.shape_cast %52 : vector<1x8x16xbf16> to vector<8x16xbf16>
    %54 = vector.shape_cast %51 : vector<8x16xbf16> to vector<1x8x16xbf16>
    tpu.vector_store %arg2[%c0_15, %c0_16, %c16], %54 {strides = array<i32>} : memref<1x8x32xbf16, #tpu.memory_space<vmem>>, vector<1x8x16xbf16>,
    return
  }
  func.func @transform_0(%arg0: i32) -> (i32, i32, i32) {
    %c0_i32 = arith.constant 0 : i32
    %c0_i32_0 = arith.constant 0 : i32
    %c0_i32_1 = arith.constant 0 : i32
    return %arg0, %c0_i32, %c0_i32_0 : i32, i32, i32
  }
  func.func @transform_1(%arg0: i32) -> (i32, i32, i32) {
    %c0_i32 = arith.constant 0 : i32
    %c0_i32_0 = arith.constant 0 : i32
    %c0_i32_1 = arith.constant 0 : i32
    return %arg0, %c0_i32, %c0_i32_0 : i32, i32, i32
  }
}

module attributes {stable_mosaic.version = 11 : i64} {
  func.func @_matmul_bias_kernel(%arg0: i32, %arg1: i32, %arg2: i32, %arg3: memref<16x32xbf16, #tpu.memory_space<vmem>>, %arg4: memref<32x64xbf16, #tpu.memory_space<vmem>>, %arg5: memref<1x64xf32, #tpu.memory_space<vmem>>, %arg6: memref<16x64xbf16, #tpu.memory_space<vmem>>, %arg7: memref<16x64xf32, #tpu.memory_space<vmem>>) attributes {dimension_semantics = [#tpu.dimension_semantics<parallel>, #tpu.dimension_semantics<parallel>, #tpu.dimension_semantics<arbitrary>], iteration_bounds = array<i64: 1, 1, 1>, scalar_prefetch = 0 : i64, scratch_operands = 1 : i64, tpu.core_type = #tpu.core_type<tc>, window_params = [{transform_indices = @transform_0, window_bounds = array<i64: 16, 32>}, {transform_indices = @transform_1, window_bounds = array<i64: 32, 64>}, {transform_indices = @transform_2, window_bounds = array<i64: 1, 64>}, {transform_indices = @transform_3, window_bounds = array<i64: 16, 64>}]} {
    %c0_i32 = arith.constant 0 : i32
    %0 = arith.cmpi eq, %arg2, %c0_i32 : i32
    %1 = arith.extui %0 : i1 to i32
    %c0_i32_0 = arith.constant 0 : i32
    %2 = arith.cmpi ne, %1, %c0_i32_0 : i32
    scf.if %2 {
      %cst_10 = arith.constant 0.000000e+00 : f32
      %12 = vector.broadcast %cst_10 : f32 to vector<16x64xf32>
      %c0_11 = arith.constant 0 : index
      %c0_12 = arith.constant 0 : index
      %13 = vector.load %arg7[%c0_11, %c0_12] : memref<16x64xf32, #tpu.memory_space<vmem>>, vector<16x64xf32>
      tpu.vector_store %arg7[%c0_11, %c0_12], %12 {strides = array<i32>} : memref<16x64xf32, #tpu.memory_space<vmem>>, vector<16x64xf32>,
    } else {
    }
    %c0 = arith.constant 0 : index
    %c0_1 = arith.constant 0 : index
    %3 = vector.load %arg7[%c0, %c0_1] : memref<16x64xf32, #tpu.memory_space<vmem>>, vector<16x64xf32>
    %c0_2 = arith.constant 0 : index
    %c0_3 = arith.constant 0 : index
    %4 = vector.load %arg3[%c0_2, %c0_3] : memref<16x32xbf16, #tpu.memory_space<vmem>>, vector<16x32xbf16>
    %c0_4 = arith.constant 0 : index
    %c0_5 = arith.constant 0 : index
    %5 = vector.load %arg4[%c0_4, %c0_5] : memref<32x64xbf16, #tpu.memory_space<vmem>>, vector<32x64xbf16>
    %cst = arith.constant dense<0.000000e+00> : vector<16x64xf32>
    %6 = tpu.matmul %4, %5, %cst {dimension_numbers = #tpu.dot_dimension_numbers<[1], [0], [0], [1], [0, 0, 1, 1], [], []>} : vector<16x32xbf16>, vector<32x64xbf16>, vector<16x64xf32> -> vector<16x64xf32>
    %7 = arith.addf %3, %6 : vector<16x64xf32>
    %c0_6 = arith.constant 0 : index
    %c0_7 = arith.constant 0 : index
    %8 = vector.load %arg7[%c0_6, %c0_7] : memref<16x64xf32, #tpu.memory_space<vmem>>, vector<16x64xf32>
    tpu.vector_store %arg7[%c0_6, %c0_7], %7 {strides = array<i32>} : memref<16x64xf32, #tpu.memory_space<vmem>>, vector<16x64xf32>,
    %c0_i32_8 = arith.constant 0 : i32
    %9 = arith.cmpi eq, %arg2, %c0_i32_8 : i32
    %10 = arith.extui %9 : i1 to i32
    %c0_i32_9 = arith.constant 0 : i32
    %11 = arith.cmpi ne, %10, %c0_i32_9 : i32
    scf.if %11 {
      %c0_10 = arith.constant 0 : index
      %c0_11 = arith.constant 0 : index
      %12 = vector.load %arg7[%c0_10, %c0_11] : memref<16x64xf32, #tpu.memory_space<vmem>>, vector<16x64xf32>
      %c0_12 = arith.constant 0 : index
      %c0_13 = arith.constant 0 : index
      %13 = vector.load %arg5[%c0_12, %c0_13] : memref<1x64xf32, #tpu.memory_space<vmem>>, vector<1x64xf32>
      %14 = vector.broadcast %13 : vector<1x64xf32> to vector<16x64xf32>
      %15 = arith.addf %12, %14 : vector<16x64xf32>
      %16 = arith.truncf %15 : vector<16x64xf32> to vector<16x64xbf16>
      %c0_14 = arith.constant 0 : index
      %c0_15 = arith.constant 0 : index
      %17 = vector.load %arg6[%c0_14, %c0_15] : memref<16x64xbf16, #tpu.memory_space<vmem>>, vector<16x64xbf16>
      tpu.vector_store %arg6[%c0_14, %c0_15], %16 {strides = array<i32>} : memref<16x64xbf16, #tpu.memory_space<vmem>>, vector<16x64xbf16>,
    } else {
    }
    return
  }
  func.func @transform_0(%arg0: i32, %arg1: i32, %arg2: i32) -> (i32, i32) {
    %c0_i32 = arith.constant 0 : i32
    return %arg0, %arg2 : i32, i32
  }
  func.func @transform_1(%arg0: i32, %arg1: i32, %arg2: i32) -> (i32, i32) {
    %c0_i32 = arith.constant 0 : i32
    return %arg2, %arg1 : i32, i32
  }
  func.func @transform_2(%arg0: i32, %arg1: i32, %arg2: i32) -> (i32, i32) {
    %c0_i32 = arith.constant 0 : i32
    %c0_i32_0 = arith.constant 0 : i32
    return %c0_i32, %arg1 : i32, i32
  }
  func.func @transform_3(%arg0: i32, %arg1: i32, %arg2: i32) -> (i32, i32) {
    %c0_i32 = arith.constant 0 : i32
    return %arg0, %arg1 : i32, i32
  }
}

module attributes {stable_mosaic.version = 11 : i64} {
  func.func @_matmul_bias_kernel(%arg0: i32, %arg1: i32, %arg2: i32, %arg3: memref<16x32xbf16, #tpu.memory_space<vmem>>, %arg4: memref<32x32xbf16, #tpu.memory_space<vmem>>, %arg5: memref<1x32xf32, #tpu.memory_space<vmem>>, %arg6: memref<16x32xbf16, #tpu.memory_space<vmem>>, %arg7: memref<16x32xf32, #tpu.memory_space<vmem>>) attributes {dimension_semantics = [#tpu.dimension_semantics<parallel>, #tpu.dimension_semantics<parallel>, #tpu.dimension_semantics<arbitrary>], iteration_bounds = array<i64: 1, 1, 1>, scalar_prefetch = 0 : i64, scratch_operands = 1 : i64, tpu.core_type = #tpu.core_type<tc>, window_params = [{transform_indices = @transform_0, window_bounds = array<i64: 16, 32>}, {transform_indices = @transform_1, window_bounds = array<i64: 32, 32>}, {transform_indices = @transform_2, window_bounds = array<i64: 1, 32>}, {transform_indices = @transform_3, window_bounds = array<i64: 16, 32>}]} {
    %c0_i32 = arith.constant 0 : i32
    %0 = arith.cmpi eq, %arg2, %c0_i32 : i32
    %1 = arith.extui %0 : i1 to i32
    %c0_i32_0 = arith.constant 0 : i32
    %2 = arith.cmpi ne, %1, %c0_i32_0 : i32
    scf.if %2 {
      %cst_10 = arith.constant 0.000000e+00 : f32
      %12 = vector.broadcast %cst_10 : f32 to vector<16x32xf32>
      %c0_11 = arith.constant 0 : index
      %c0_12 = arith.constant 0 : index
      %13 = vector.load %arg7[%c0_11, %c0_12] : memref<16x32xf32, #tpu.memory_space<vmem>>, vector<16x32xf32>
      tpu.vector_store %arg7[%c0_11, %c0_12], %12 {strides = array<i32>} : memref<16x32xf32, #tpu.memory_space<vmem>>, vector<16x32xf32>,
    } else {
    }
    %c0 = arith.constant 0 : index
    %c0_1 = arith.constant 0 : index
    %3 = vector.load %arg7[%c0, %c0_1] : memref<16x32xf32, #tpu.memory_space<vmem>>, vector<16x32xf32>
    %c0_2 = arith.constant 0 : index
    %c0_3 = arith.constant 0 : index
    %4 = vector.load %arg3[%c0_2, %c0_3] : memref<16x32xbf16, #tpu.memory_space<vmem>>, vector<16x32xbf16>
    %c0_4 = arith.constant 0 : index
    %c0_5 = arith.constant 0 : index
    %5 = vector.load %arg4[%c0_4, %c0_5] : memref<32x32xbf16, #tpu.memory_space<vmem>>, vector<32x32xbf16>
    %cst = arith.constant dense<0.000000e+00> : vector<16x32xf32>
    %6 = tpu.matmul %4, %5, %cst {dimension_numbers = #tpu.dot_dimension_numbers<[1], [0], [0], [1], [0, 0, 1, 1], [], []>} : vector<16x32xbf16>, vector<32x32xbf16>, vector<16x32xf32> -> vector<16x32xf32>
    %7 = arith.addf %3, %6 : vector<16x32xf32>
    %c0_6 = arith.constant 0 : index
    %c0_7 = arith.constant 0 : index
    %8 = vector.load %arg7[%c0_6, %c0_7] : memref<16x32xf32, #tpu.memory_space<vmem>>, vector<16x32xf32>
    tpu.vector_store %arg7[%c0_6, %c0_7], %7 {strides = array<i32>} : memref<16x32xf32, #tpu.memory_space<vmem>>, vector<16x32xf32>,
    %c0_i32_8 = arith.constant 0 : i32
    %9 = arith.cmpi eq, %arg2, %c0_i32_8 : i32
    %10 = arith.extui %9 : i1 to i32
    %c0_i32_9 = arith.constant 0 : i32
    %11 = arith.cmpi ne, %10, %c0_i32_9 : i32
    scf.if %11 {
      %c0_10 = arith.constant 0 : index
      %c0_11 = arith.constant 0 : index
      %12 = vector.load %arg7[%c0_10, %c0_11] : memref<16x32xf32, #tpu.memory_space<vmem>>, vector<16x32xf32>
      %c0_12 = arith.constant 0 : index
      %c0_13 = arith.constant 0 : index
      %13 = vector.load %arg5[%c0_12, %c0_13] : memref<1x32xf32, #tpu.memory_space<vmem>>, vector<1x32xf32>
      %14 = vector.broadcast %13 : vector<1x32xf32> to vector<16x32xf32>
      %15 = arith.addf %12, %14 : vector<16x32xf32>
      %16 = arith.truncf %15 : vector<16x32xf32> to vector<16x32xbf16>
      %c0_14 = arith.constant 0 : index
      %c0_15 = arith.constant 0 : index
      %17 = vector.load %arg6[%c0_14, %c0_15] : memref<16x32xbf16, #tpu.memory_space<vmem>>, vector<16x32xbf16>
      tpu.vector_store %arg6[%c0_14, %c0_15], %16 {strides = array<i32>} : memref<16x32xbf16, #tpu.memory_space<vmem>>, vector<16x32xbf16>,
    } else {
    }
    return
  }
  func.func @transform_0(%arg0: i32, %arg1: i32, %arg2: i32) -> (i32, i32) {
    %c0_i32 = arith.constant 0 : i32
    return %arg0, %arg2 : i32, i32
  }
  func.func @transform_1(%arg0: i32, %arg1: i32, %arg2: i32) -> (i32, i32) {
    %c0_i32 = arith.constant 0 : i32
    return %arg2, %arg1 : i32, i32
  }
  func.func @transform_2(%arg0: i32, %arg1: i32, %arg2: i32) -> (i32, i32) {
    %c0_i32 = arith.constant 0 : i32
    %c0_i32_0 = arith.constant 0 : i32
    return %c0_i32, %arg1 : i32, i32
  }
  func.func @transform_3(%arg0: i32, %arg1: i32, %arg2: i32) -> (i32, i32) {
    %c0_i32 = arith.constant 0 : i32
    return %arg0, %arg1 : i32, i32
  }
}

module attributes {stable_mosaic.version = 11 : i64} {
  func.func @_cross_attn_kernel(%arg0: i32, %arg1: memref<1x8x32xbf16, #tpu.memory_space<vmem>>, %arg2: memref<1x8x64xbf16, #tpu.memory_space<vmem>>, %arg3: memref<1x8x32xbf16, #tpu.memory_space<vmem>>) attributes {dimension_semantics = [#tpu.dimension_semantics<parallel>], iteration_bounds = array<i64: 2>, scalar_prefetch = 0 : i64, scratch_operands = 0 : i64, tpu.core_type = #tpu.core_type<tc>, window_params = [{transform_indices = @transform_0, window_bounds = array<i64: 1, 8, 32>}, {transform_indices = @transform_1, window_bounds = array<i64: 1, 8, 64>}, {transform_indices = @transform_2, window_bounds = array<i64: 1, 8, 32>}]} {
    %c0 = arith.constant 0 : index
    %c0_0 = arith.constant 0 : index
    %c0_1 = arith.constant 0 : index
    %0 = vector.load %arg1[%c0, %c0_0, %c0_1] : memref<1x8x32xbf16, #tpu.memory_space<vmem>>, vector<1x8x32xbf16>
    %1 = vector.shape_cast %0 : vector<1x8x32xbf16> to vector<8x32xbf16>
    %cst = arith.constant 2.500000e-01 : bf16
    %2 = vector.broadcast %cst : bf16 to vector<8x32xbf16>
    %3 = arith.mulf %1, %2 : vector<8x32xbf16>
    %c0_2 = arith.constant 0 : index
    %c0_3 = arith.constant 0 : index
    %c0_4 = arith.constant 0 : index
    %4 = vector.load %arg2[%c0_2, %c0_3, %c0_4] : memref<1x8x64xbf16, #tpu.memory_space<vmem>>, vector<1x8x64xbf16>
    %5 = vector.shape_cast %4 : vector<1x8x64xbf16> to vector<8x64xbf16>
    %6 = vector.extract_strided_slice %5 {offsets = [0, 0], sizes = [8, 32], strides = [1, 1]} : vector<8x64xbf16> to vector<8x32xbf16>
    %7 = vector.extract_strided_slice %5 {offsets = [0, 32], sizes = [8, 32], strides = [1, 1]} : vector<8x64xbf16> to vector<8x32xbf16>
    %8 = vector.extract_strided_slice %3 {offsets = [0, 0], sizes = [8, 16], strides = [1, 1]} : vector<8x32xbf16> to vector<8x16xbf16>
    %9 = vector.extract_strided_slice %6 {offsets = [0, 0], sizes = [8, 16], strides = [1, 1]} : vector<8x32xbf16> to vector<8x16xbf16>
    %10 = vector.extract_strided_slice %7 {offsets = [0, 0], sizes = [8, 16], strides = [1, 1]} : vector<8x32xbf16> to vector<8x16xbf16>
    %cst_5 = arith.constant dense<0.000000e+00> : vector<8x8xf32>
    %11 = tpu.matmul %8, %9, %cst_5 {dimension_numbers = #tpu.dot_dimension_numbers<[1], [1], [0], [0], [0, 0, 1, 0], [], []>} : vector<8x16xbf16>, vector<8x16xbf16>, vector<8x8xf32> -> vector<8x8xf32>
    %cst_6 = arith.constant dense<0xFF800000> : vector<8xf32>
    %12 = vector.multi_reduction <maximumf>, %11, %cst_6 [1] : vector<8x8xf32> to vector<8xf32>
    %13 = vector.shape_cast %12 : vector<8xf32> to vector<8x1xf32>
    %14 = vector.broadcast %13 : vector<8x1xf32> to vector<8x8xf32>
    %15 = arith.subf %11, %14 : vector<8x8xf32>
    %16 = math.exp %15 : vector<8x8xf32>
    %cst_7 = arith.constant dense<0.000000e+00> : vector<8xf32>
    %17 = vector.multi_reduction <add>, %16, %cst_7 [1] : vector<8x8xf32> to vector<8xf32>
    %18 = vector.shape_cast %17 : vector<8xf32> to vector<8x1xf32>
    %19 = tpu.reciprocal %18 {approx = true} : vector<8x1xf32> -> vector<8x1xf32>
    %20 = vector.broadcast %19 : vector<8x1xf32> to vector<8x8xf32>
    %21 = arith.mulf %16, %20 : vector<8x8xf32>
    %22 = arith.truncf %21 : vector<8x8xf32> to vector<8x8xbf16>
    %cst_8 = arith.constant dense<0.000000e+00> : vector<8x16xf32>
    %23 = tpu.matmul %22, %10, %cst_8 {dimension_numbers = #tpu.dot_dimension_numbers<[1], [0], [0], [1], [0, 0, 1, 1], [], []>} : vector<8x8xbf16>, vector<8x16xbf16>, vector<8x16xf32> -> vector<8x16xf32>
    %24 = arith.truncf %23 : vector<8x16xf32> to vector<8x16xbf16>
    %c0_9 = arith.constant 0 : index
    %c0_10 = arith.constant 0 : index
    %c0_11 = arith.constant 0 : index
    %25 = vector.load %arg3[%c0_9, %c0_10, %c0_11] : memref<1x8x32xbf16, #tpu.memory_space<vmem>>, vector<1x8x16xbf16>
    %26 = vector.shape_cast %25 : vector<1x8x16xbf16> to vector<8x16xbf16>
    %27 = vector.shape_cast %24 : vector<8x16xbf16> to vector<1x8x16xbf16>
    tpu.vector_store %arg3[%c0_9, %c0_10, %c0_11], %27 {strides = array<i32>} : memref<1x8x32xbf16, #tpu.memory_space<vmem>>, vector<1x8x16xbf16>,
    %28 = vector.extract_strided_slice %3 {offsets = [0, 16], sizes = [8, 16], strides = [1, 1]} : vector<8x32xbf16> to vector<8x16xbf16>
    %29 = vector.extract_strided_slice %6 {offsets = [0, 16], sizes = [8, 16], strides = [1, 1]} : vector<8x32xbf16> to vector<8x16xbf16>
    %30 = vector.extract_strided_slice %7 {offsets = [0, 16], sizes = [8, 16], strides = [1, 1]} : vector<8x32xbf16> to vector<8x16xbf16>
    %cst_12 = arith.constant dense<0.000000e+00> : vector<8x8xf32>
    %31 = tpu.matmul %28, %29, %cst_12 {dimension_numbers = #tpu.dot_dimension_numbers<[1], [1], [0], [0], [0, 0, 1, 0], [], []>} : vector<8x16xbf16>, vector<8x16xbf16>, vector<8x8xf32> -> vector<8x8xf32>
    %cst_13 = arith.constant dense<0xFF800000> : vector<8xf32>
    %32 = vector.multi_reduction <maximumf>, %31, %cst_13 [1] : vector<8x8xf32> to vector<8xf32>
    %33 = vector.shape_cast %32 : vector<8xf32> to vector<8x1xf32>
    %34 = vector.broadcast %33 : vector<8x1xf32> to vector<8x8xf32>
    %35 = arith.subf %31, %34 : vector<8x8xf32>
    %36 = math.exp %35 : vector<8x8xf32>
    %cst_14 = arith.constant dense<0.000000e+00> : vector<8xf32>
    %37 = vector.multi_reduction <add>, %36, %cst_14 [1] : vector<8x8xf32> to vector<8xf32>
    %38 = vector.shape_cast %37 : vector<8xf32> to vector<8x1xf32>
    %39 = tpu.reciprocal %38 {approx = true} : vector<8x1xf32> -> vector<8x1xf32>
    %40 = vector.broadcast %39 : vector<8x1xf32> to vector<8x8xf32>
    %41 = arith.mulf %36, %40 : vector<8x8xf32>
    %42 = arith.truncf %41 : vector<8x8xf32> to vector<8x8xbf16>
    %cst_15 = arith.constant dense<0.000000e+00> : vector<8x16xf32>
    %43 = tpu.matmul %42, %30, %cst_15 {dimension_numbers = #tpu.dot_dimension_numbers<[1], [0], [0], [1], [0, 0, 1, 1], [], []>} : vector<8x8xbf16>, vector<8x16xbf16>, vector<8x16xf32> -> vector<8x16xf32>
    %44 = arith.truncf %43 : vector<8x16xf32> to vector<8x16xbf16>
    %c0_16 = arith.constant 0 : index
    %c0_17 = arith.constant 0 : index
    %c16 = arith.constant 16 : index
    %45 = vector.load %arg3[%c0_16, %c0_17, %c16] : memref<1x8x32xbf16, #tpu.memory_space<vmem>>, vector<1x8x16xbf16>
    %46 = vector.shape_cast %45 : vector<1x8x16xbf16> to vector<8x16xbf16>
    %47 = vector.shape_cast %44 : vector<8x16xbf16> to vector<1x8x16xbf16>
    tpu.vector_store %arg3[%c0_16, %c0_17, %c16], %47 {strides = array<i32>} : memref<1x8x32xbf16, #tpu.memory_space<vmem>>, vector<1x8x16xbf16>,
    return
  }
  func.func @transform_0(%arg0: i32) -> (i32, i32, i32) {
    %c0_i32 = arith.constant 0 : i32
    %c0_i32_0 = arith.constant 0 : i32
    %c0_i32_1 = arith.constant 0 : i32
    return %arg0, %c0_i32, %c0_i32_0 : i32, i32, i32
  }
  func.func @transform_1(%arg0: i32) -> (i32, i32, i32) {
    %c0_i32 = arith.constant 0 : i32
    %c0_i32_0 = arith.constant 0 : i32
    %c0_i32_1 = arith.constant 0 : i32
    return %arg0, %c0_i32, %c0_i32_0 : i32, i32, i32
  }
  func.func @transform_2(%arg0: i32) -> (i32, i32, i32) {
    %c0_i32 = arith.constant 0 : i32
    %c0_i32_0 = arith.constant 0 : i32
    %c0_i32_1 = arith.constant 0 : i32
    return %arg0, %c0_i32, %c0_i32_0 : i32, i32, i32
  }
}

module attributes {stable_mosaic.version = 11 : i64} {
  func.func @_lm_head_ce_kernel(%arg0: i32, %arg1: i32, %arg2: memref<16x32xbf16, #tpu.memory_space<vmem>>, %arg3: memref<32x64xbf16, #tpu.memory_space<vmem>>, %arg4: memref<1x64xf32, #tpu.memory_space<vmem>>, %arg5: memref<16x1xi32, #tpu.memory_space<vmem>>, %arg6: memref<16x64xbf16, #tpu.memory_space<vmem>>, %arg7: memref<1x1xf32, #tpu.memory_space<vmem>>, %arg8: memref<16x1xf32, #tpu.memory_space<vmem>>, %arg9: memref<16x1xf32, #tpu.memory_space<vmem>>, %arg10: memref<16x1xf32, #tpu.memory_space<vmem>>, %arg11: memref<1x1xf32, #tpu.memory_space<vmem>>) attributes {dimension_semantics = [#tpu.dimension_semantics<arbitrary>, #tpu.dimension_semantics<arbitrary>], iteration_bounds = array<i64: 1, 1>, scalar_prefetch = 0 : i64, scratch_operands = 4 : i64, tpu.core_type = #tpu.core_type<tc>, window_params = [{transform_indices = @transform_0, window_bounds = array<i64: 16, 32>}, {transform_indices = @transform_1, window_bounds = array<i64: 32, 64>}, {transform_indices = @transform_2, window_bounds = array<i64: 1, 64>}, {transform_indices = @transform_3, window_bounds = array<i64: 16, 1>}, {transform_indices = @transform_4, window_bounds = array<i64: 16, 64>}, {pipeline_mode = #tpu.pipeline_mode<synchronous>, transform_indices = @transform_5, window_bounds = array<i64: 1, 1>}]} {
    %c0_i32 = arith.constant 0 : i32
    %0 = arith.cmpi eq, %arg0, %c0_i32 : i32
    %c0_i32_0 = arith.constant 0 : i32
    %1 = arith.cmpi eq, %arg1, %c0_i32_0 : i32
    %2 = arith.andi %0, %1 : i1
    %3 = arith.extui %2 : i1 to i32
    %c0_i32_1 = arith.constant 0 : i32
    %4 = arith.cmpi ne, %3, %c0_i32_1 : i32
    scf.if %4 {
      %cst_34 = arith.constant 0.000000e+00 : f32
      %54 = vector.broadcast %cst_34 : f32 to vector<1x1xf32>
      %c0_35 = arith.constant 0 : index
      %c0_36 = arith.constant 0 : index
      %55 = vector.load %arg11[%c0_35, %c0_36] : memref<1x1xf32, #tpu.memory_space<vmem>>, vector<1x1xf32>
      tpu.vector_store %arg11[%c0_35, %c0_36], %54 {strides = array<i32>} : memref<1x1xf32, #tpu.memory_space<vmem>>, vector<1x1xf32>,
    } else {
    }
    %c0_i32_2 = arith.constant 0 : i32
    %5 = arith.cmpi eq, %arg1, %c0_i32_2 : i32
    %6 = arith.extui %5 : i1 to i32
    %c0_i32_3 = arith.constant 0 : i32
    %7 = arith.cmpi ne, %6, %c0_i32_3 : i32
    scf.if %7 {
      %cst_34 = arith.constant -1.000000e+30 : f32
      %54 = vector.broadcast %cst_34 : f32 to vector<16x1xf32>
      %c0_35 = arith.constant 0 : index
      %c0_36 = arith.constant 0 : index
      %55 = vector.load %arg8[%c0_35, %c0_36] : memref<16x1xf32, #tpu.memory_space<vmem>>, vector<16x1xf32>
      tpu.vector_store %arg8[%c0_35, %c0_36], %54 {strides = array<i32>} : memref<16x1xf32, #tpu.memory_space<vmem>>, vector<16x1xf32>,
      %cst_37 = arith.constant 0.000000e+00 : f32
      %56 = vector.broadcast %cst_37 : f32 to vector<16x1xf32>
      %c0_38 = arith.constant 0 : index
      %c0_39 = arith.constant 0 : index
      %57 = vector.load %arg9[%c0_38, %c0_39] : memref<16x1xf32, #tpu.memory_space<vmem>>, vector<16x1xf32>
      tpu.vector_store %arg9[%c0_38, %c0_39], %56 {strides = array<i32>} : memref<16x1xf32, #tpu.memory_space<vmem>>, vector<16x1xf32>,
      %cst_40 = arith.constant 0.000000e+00 : f32
      %58 = vector.broadcast %cst_40 : f32 to vector<16x1xf32>
      %c0_41 = arith.constant 0 : index
      %c0_42 = arith.constant 0 : index
      %59 = vector.load %arg10[%c0_41, %c0_42] : memref<16x1xf32, #tpu.memory_space<vmem>>, vector<16x1xf32>
      tpu.vector_store %arg10[%c0_41, %c0_42], %58 {strides = array<i32>} : memref<16x1xf32, #tpu.memory_space<vmem>>, vector<16x1xf32>,
    } else {
    }
    %c0 = arith.constant 0 : index
    %c0_4 = arith.constant 0 : index
    %8 = vector.load %arg2[%c0, %c0_4] : memref<16x32xbf16, #tpu.memory_space<vmem>>, vector<16x32xbf16>
    %c0_5 = arith.constant 0 : index
    %c0_6 = arith.constant 0 : index
    %9 = vector.load %arg3[%c0_5, %c0_6] : memref<32x64xbf16, #tpu.memory_space<vmem>>, vector<32x64xbf16>
    %cst = arith.constant dense<0.000000e+00> : vector<16x64xf32>
    %10 = tpu.matmul %8, %9, %cst {dimension_numbers = #tpu.dot_dimension_numbers<[1], [0], [0], [1], [0, 0, 1, 1], [], []>} : vector<16x32xbf16>, vector<32x64xbf16>, vector<16x64xf32> -> vector<16x64xf32>
    %c0_7 = arith.constant 0 : index
    %c0_8 = arith.constant 0 : index
    %11 = vector.load %arg4[%c0_7, %c0_8] : memref<1x64xf32, #tpu.memory_space<vmem>>, vector<1x64xf32>
    %12 = vector.broadcast %11 : vector<1x64xf32> to vector<16x64xf32>
    %13 = arith.addf %10, %12 : vector<16x64xf32>
    %14 = arith.truncf %13 : vector<16x64xf32> to vector<16x64xbf16>
    %c0_9 = arith.constant 0 : index
    %c0_10 = arith.constant 0 : index
    %15 = vector.load %arg6[%c0_9, %c0_10] : memref<16x64xbf16, #tpu.memory_space<vmem>>, vector<16x64xbf16>
    tpu.vector_store %arg6[%c0_9, %c0_10], %14 {strides = array<i32>} : memref<16x64xbf16, #tpu.memory_space<vmem>>, vector<16x64xbf16>,
    %c0_11 = arith.constant 0 : index
    %c0_12 = arith.constant 0 : index
    %16 = vector.load %arg8[%c0_11, %c0_12] : memref<16x1xf32, #tpu.memory_space<vmem>>, vector<16x1xf32>
    %cst_13 = arith.constant dense<0xFF800000> : vector<16xf32>
    %17 = vector.multi_reduction <maximumf>, %13, %cst_13 [1] : vector<16x64xf32> to vector<16xf32>
    %18 = vector.shape_cast %17 : vector<16xf32> to vector<16x1xf32>
    %19 = arith.maximumf %16, %18 : vector<16x1xf32>
    %c0_14 = arith.constant 0 : index
    %c0_15 = arith.constant 0 : index
    %20 = vector.load %arg9[%c0_14, %c0_15] : memref<16x1xf32, #tpu.memory_space<vmem>>, vector<16x1xf32>
    %21 = arith.subf %16, %19 : vector<16x1xf32>
    %22 = math.exp %21 : vector<16x1xf32>
    %23 = arith.mulf %20, %22 : vector<16x1xf32>
    %24 = vector.broadcast %19 : vector<16x1xf32> to vector<16x64xf32>
    %25 = arith.subf %13, %24 : vector<16x64xf32>
    %26 = math.exp %25 : vector<16x64xf32>
    %cst_16 = arith.constant dense<0.000000e+00> : vector<16xf32>
    %27 = vector.multi_reduction <add>, %26, %cst_16 [1] : vector<16x64xf32> to vector<16xf32>
    %28 = vector.shape_cast %27 : vector<16xf32> to vector<16x1xf32>
    %29 = arith.addf %23, %28 : vector<16x1xf32>
    %c0_17 = arith.constant 0 : index
    %c0_18 = arith.constant 0 : index
    %30 = vector.load %arg9[%c0_17, %c0_18] : memref<16x1xf32, #tpu.memory_space<vmem>>, vector<16x1xf32>
    tpu.vector_store %arg9[%c0_17, %c0_18], %29 {strides = array<i32>} : memref<16x1xf32, #tpu.memory_space<vmem>>, vector<16x1xf32>,
    %c0_19 = arith.constant 0 : index
    %c0_20 = arith.constant 0 : index
    %31 = vector.load %arg8[%c0_19, %c0_20] : memref<16x1xf32, #tpu.memory_space<vmem>>, vector<16x1xf32>
    tpu.vector_store %arg8[%c0_19, %c0_20], %19 {strides = array<i32>} : memref<16x1xf32, #tpu.memory_space<vmem>>, vector<16x1xf32>,
    %32 = tpu.iota {dimensions = array<i32: 1>} : vector<16x64xi32>
    %c64_i32 = arith.constant 64 : i32
    %33 = arith.muli %arg1, %c64_i32 : i32
    %34 = vector.broadcast %33 : i32 to vector<16x64xi32>
    %35 = arith.addi %32, %34 : vector<16x64xi32>
    %c0_21 = arith.constant 0 : index
    %c0_22 = arith.constant 0 : index
    %36 = vector.load %arg10[%c0_21, %c0_22] : memref<16x1xf32, #tpu.memory_space<vmem>>, vector<16x1xf32>
    %c0_23 = arith.constant 0 : index
    %c0_24 = arith.constant 0 : index
    %37 = vector.load %arg5[%c0_23, %c0_24] : memref<16x1xi32, #tpu.memory_space<vmem>>, vector<16x1xi32>
    %38 = vector.broadcast %37 : vector<16x1xi32> to vector<16x64xi32>
    %39 = arith.cmpi eq, %35, %38 : vector<16x64xi32>
    %cst_25 = arith.constant 0.000000e+00 : f32
    %40 = vector.broadcast %cst_25 : f32 to vector<16x64xf32>
    %41 = arith.select %39, %13, %40 : vector<16x64xi1>, vector<16x64xf32>
    %cst_26 = arith.constant dense<0.000000e+00> : vector<16xf32>
    %42 = vector.multi_reduction <add>, %41, %cst_26 [1] : vector<16x64xf32> to vector<16xf32>
    %43 = vector.shape_cast %42 : vector<16xf32> to vector<16x1xf32>
    %44 = arith.addf %36, %43 : vector<16x1xf32>
    %c0_27 = arith.constant 0 : index
    %c0_28 = arith.constant 0 : index
    %45 = vector.load %arg10[%c0_27, %c0_28] : memref<16x1xf32, #tpu.memory_space<vmem>>, vector<16x1xf32>
    tpu.vector_store %arg10[%c0_27, %c0_28], %44 {strides = array<i32>} : memref<16x1xf32, #tpu.memory_space<vmem>>, vector<16x1xf32>,
    %c0_i32_29 = arith.constant 0 : i32
    %46 = arith.cmpi eq, %arg1, %c0_i32_29 : i32
    %47 = arith.extui %46 : i1 to i32
    %c0_i32_30 = arith.constant 0 : i32
    %48 = arith.cmpi ne, %47, %c0_i32_30 : i32
    scf.if %48 {
      %c0_34 = arith.constant 0 : index
      %c0_35 = arith.constant 0 : index
      %54 = vector.load %arg8[%c0_34, %c0_35] : memref<16x1xf32, #tpu.memory_space<vmem>>, vector<16x1xf32>
      %c0_36 = arith.constant 0 : index
      %c0_37 = arith.constant 0 : index
      %55 = vector.load %arg9[%c0_36, %c0_37] : memref<16x1xf32, #tpu.memory_space<vmem>>, vector<16x1xf32>
      %56 = math.log %55 : vector<16x1xf32>
      %57 = arith.addf %54, %56 : vector<16x1xf32>
      %c0_38 = arith.constant 0 : index
      %c0_39 = arith.constant 0 : index
      %58 = vector.load %arg11[%c0_38, %c0_39] : memref<1x1xf32, #tpu.memory_space<vmem>>, vector<1x1xf32>
      %c0_40 = arith.constant 0 : index
      %c0_41 = arith.constant 0 : index
      %59 = vector.load %arg10[%c0_40, %c0_41] : memref<16x1xf32, #tpu.memory_space<vmem>>, vector<16x1xf32>
      %60 = arith.subf %57, %59 : vector<16x1xf32>
      %cst_42 = arith.constant dense<0.000000e+00> : vector<1xf32>
      %61 = vector.multi_reduction <add>, %60, %cst_42 [0] : vector<16x1xf32> to vector<1xf32>
      %62 = vector.shape_cast %61 : vector<1xf32> to vector<1x1xf32>
      %63 = arith.addf %58, %62 : vector<1x1xf32>
      %c0_43 = arith.constant 0 : index
      %c0_44 = arith.constant 0 : index
      %64 = vector.load %arg11[%c0_43, %c0_44] : memref<1x1xf32, #tpu.memory_space<vmem>>, vector<1x1xf32>
      tpu.vector_store %arg11[%c0_43, %c0_44], %63 {strides = array<i32>} : memref<1x1xf32, #tpu.memory_space<vmem>>, vector<1x1xf32>,
    } else {
    }
    %c0_i32_31 = arith.constant 0 : i32
    %49 = arith.cmpi eq, %arg0, %c0_i32_31 : i32
    %c0_i32_32 = arith.constant 0 : i32
    %50 = arith.cmpi eq, %arg1, %c0_i32_32 : i32
    %51 = arith.andi %49, %50 : i1
    %52 = arith.extui %51 : i1 to i32
    %c0_i32_33 = arith.constant 0 : i32
    %53 = arith.cmpi ne, %52, %c0_i32_33 : i32
    scf.if %53 {
      %c0_34 = arith.constant 0 : index
      %c0_35 = arith.constant 0 : index
      %54 = vector.load %arg11[%c0_34, %c0_35] : memref<1x1xf32, #tpu.memory_space<vmem>>, vector<1x1xf32>
      %cst_36 = arith.constant 6.250000e-02 : f32
      %55 = vector.broadcast %cst_36 : f32 to vector<1x1xf32>
      %56 = arith.mulf %54, %55 : vector<1x1xf32>
      %c0_37 = arith.constant 0 : index
      %c0_38 = arith.constant 0 : index
      %57 = vector.load %arg7[%c0_37, %c0_38] : memref<1x1xf32, #tpu.memory_space<vmem>>, vector<1x1xf32>
      tpu.vector_store %arg7[%c0_37, %c0_38], %56 {strides = array<i32>} : memref<1x1xf32, #tpu.memory_space<vmem>>, vector<1x1xf32>,
    } else {
    }
    return
  }
  func.func @transform_0(%arg0: i32, %arg1: i32) -> (i32, i32) {
    %c0_i32 = arith.constant 0 : i32
    %c0_i32_0 = arith.constant 0 : i32
    return %arg0, %c0_i32 : i32, i32
  }
  func.func @transform_1(%arg0: i32, %arg1: i32) -> (i32, i32) {
    %c0_i32 = arith.constant 0 : i32
    %c0_i32_0 = arith.constant 0 : i32
    return %c0_i32, %arg1 : i32, i32
  }
  func.func @transform_2(%arg0: i32, %arg1: i32) -> (i32, i32) {
    %c0_i32 = arith.constant 0 : i32
    %c0_i32_0 = arith.constant 0 : i32
    return %c0_i32, %arg1 : i32, i32
  }
  func.func @transform_3(%arg0: i32, %arg1: i32) -> (i32, i32) {
    %c0_i32 = arith.constant 0 : i32
    %c0_i32_0 = arith.constant 0 : i32
    return %arg0, %c0_i32 : i32, i32
  }
  func.func @transform_4(%arg0: i32, %arg1: i32) -> (i32, i32) {
    %c0_i32 = arith.constant 0 : i32
    return %arg0, %arg1 : i32, i32
  }
  func.func @transform_5(%arg0: i32, %arg1: i32) -> (i32, i32) {
    %c0_i32 = arith.constant 0 : i32
    %c0_i32_0 = arith.constant 0 : i32
    %c0_i32_1 = arith.constant 0 : i32
    return %c0_i32, %c0_i32_0 : i32, i32
  }
}

</mosaic_0001>

<bundles_post_ra>
// kernel: translation_model_forward.17
= control target key start
LH: loop header
LB: loop body
LE: loop exit
PB: predicated region body
PF: predicated region fallthrough
CT: control target
= control target key end

     0   :  { %s457_s15 = smov 0   ;;  %s459_s16 = smov 0   ;;  %s499_s0 = inlined_call_operand.vmem [shape: bf16[2,8,32], index: 0, kind: input, shape index: {}]   ;;  %s500_s1 = inlined_call_operand.vmem [shape: bf16[8,32], index: 1, kind: input, shape index: {}]   ;;  %s501_s2 = inlined_call_operand.vmem [shape: f32[1,32], index: 2, kind: input, shape index: {}]   ;;  %s502_s3 = inlined_call_operand.vmem [shape: f32[1,32], index: 3, kind: input, shape index: {}]   ;;  %s503_s4 = inlined_call_operand.vmem [shape: bf16[2,8,32], index: 4, kind: output, shape index: {}]  }
   0x1   :  { %s461_s17 = smov 0  }
   0x2 LB: > { %s26_s18 = sadd.s32 1, %s426_s16  ;;  %p375_p0 = scmp.ge.s32.totalorder %s430_s17, 1  ;;  %s430_s17 = sphi %s461_s17, %s14_s17   ;;  %s426_s16 = sphi %s459_s16, %s505_s16   ;;  %s422_s15 = sphi %s457_s15, %s504_s15  }
   0x3   : > { %p28_p1 = scmp.ge.s32.totalorder %s26_s18, 2  ;;  %p189_p2 = scmp.lt.s32.totalorder %s430_s17, 3 }
   0x5   : > { %s507_s18 = smov (%p28_p1, %s26_s18), 0  ;;  %p190_p3 = pnand %p375_p0, %p189_p2 }
   0x6   : > { %p223_p4 = scmp.lt.s32.totalorder (!%p190_p3), %s422_s15, 1  ;;  %v243_v0 = vld [vmem:[%s500_s1] sm:$0xf] (!%p190_p3)  ;;  %vm246_vm0 = vcmask (!%p190_p3), 261120   ;;  %vm278_vm1 = vcmask (!%p190_p3), 257024  }
   0x7   : > { %193 = sbr.rel (%p190_p3) target bundleno = 338 (0x152), region = 36  ;;  %v244_v1 = vunpack.c.l.bf16 (!%p190_p3), %v243_v0  ;;  %v378_v15 = vld [vmem:[%s501_s2] ss:$0 sm:$0xff] (!%p190_p3) }
   0x8   : > { %v379_v17 = vld [vmem:[%s502_s3] ss:$0 sm:$0xff] (!%p190_p3) }
   0xe   : > { %s509_s15 = smov (!%p223_p4, %s422_s15), 1 }
   0xf   : > { %s376_s21 = sshll.u32 %s509_s15, 2 }
  0x10   : > { %s229_s24 = scalar_lea.vmem %s499_s0, %s376_s21  ;;  %s240_s5 = scalar_lea.vmem %s503_s4, %s376_s21 }
  0x11   : > { %v241_v2 = vld [vmem:[%s229_s24] sm:$0xf] }
  0x12   : > { %v242_v3 = vunpack.c.l.bf16 %v241_v2 }
  0x14   : > { %v245_v4 = vadd.f32 %v244_v1, %v242_v3 }
  0x16   : > { %v247_v5 = vsel %vm246_vm0, %v245_v4, 0.0 }
  0x17   : > { %248 = vadd.xlane.f32.xlu0 %v247_v5 }
  0xa4   : > { %v249_v6 = vpop.xlane.xlu0 %248 }
  0xa5   : > { %v251_v7 = vmul.f32 0.03125, %v249_v6 }
  0xa7   : > { %v252_v8 = vsub.f32 %v245_v4, %v251_v7 }
  0xa9   : > { %v253_v9 = vmul.f32 %v252_v8, %v252_v8 }
  0xab   : > { %v254_v10 = vsel %vm246_vm0, %v253_v9, 0.0 }
  0xac   : > { %255 = vadd.xlane.f32.xlu0 %v254_v10 }
 0x139   : > { %v256_v11 = vpop.xlane.xlu0 %255 }
 0x13a   : > { %v257_v12 = vmul.f32 0.03125, %v256_v11 }
 0x13c   : > { %v258_v13 = vadd.f32 1e-12, %v257_v12 }
 0x13e   : > { %406 = vrsqrt.f32 %v258_v13 }
 0x148   : > { %v407_v14 = vpop.eup %406 }
 0x149   : > { %v260_v16 = vmul.f32 %v407_v14, %v252_v8 }
 0x14b   : > { %v268_v18 = vmul.f32 %v378_v15, %v260_v16 }
 0x14d   : > { %v276_v19 = vadd.f32 %v379_v17, %v268_v18 }
 0x14f   : > { %v277_v20 = vpack.c.bf16 %v276_v19, %v276_v19 }
 0x151   : > { %279 = vst.msk [vmem:[%s240_s5] sm:$0xf] %vm278_vm1, %v277_v20 }
 0x152 PF: > { %s14_s17 = sadd.s32 1, %s430_s17   ;;  %s504_s15 = smov %s426_s16 }
 0x153   : > { %p11_p5 = scmp.ge.s32.totalorder %s14_s17, 4   ;;  %s505_s16 = smov %s507_s18 }
 0x155   :  { %13 = sbr.rel (!%p11_p5) target bundleno = 2 (0x2), region = 69 }

// kernel: translation_model_forward.18
= control target key start
LH: loop header
LB: loop body
LE: loop exit
PB: predicated region body
PF: predicated region fallthrough
CT: control target
= control target key end

     0   :  { %vm19_vm0 = vcmask 785408   ;;  %v151_v0 = vmov 0.0   ;;  %vm152_vm1 = vmmov 0   ;;  %vm47_vm2 = vcmask 261120   ;;  %s195_s1 = inlined_call_operand.vmem [shape: bf16[32,96], index: 1, kind: input, shape index: {}]   ;;  %s196_s0 = inlined_call_operand.vmem [shape: bf16[16,32], index: 0, kind: input, shape index: {}]   ;;  %s197_s2 = inlined_call_operand.vmem [shape: f32[1,96], index: 2, kind: input, shape index: {}]   ;;  %s198_s3 = inlined_call_operand.vmem [shape: bf16[16,96], index: 3, kind: output, shape index: {}]  }
   0x1   :  { %138 = vmatprep.subr.bf16.mxu0 %v151_v0  ;;  %v148_v1 = vld [vmem:[%s195_s1] sm:$0xff]   ;;  %142 = vmatprep.mubr.msk.bf16.mxu0 %vm152_vm1, %v151_v0  ;;  %20 = vst.msk [vmem:[#allocation2] sm:$0xff] %vm19_vm0, %v151_v0  ;;  %21 = vst.msk [vmem:[#allocation2 + $0x8] sm:$0xff] %vm19_vm0, %v151_v0  ;;  %v149_v2 = vld [vmem:[%s195_s1 + $0x8] sm:$0xff]   ;;  %vm119_vm3 = vcmask 781312  }
   0x2   :  { %139 = vmatpush3.bf16.msra.mxu0 %v148_v1  ;;  %v150_v3 = vld [vmem:[%s196_s0] sm:$0xff]  }
   0x3   :  { %140 = vmatprep.subr.bf16.mxu0 %v151_v0  ;;  %v130_v12 = vld [vmem:[%s197_s2] ss:$0 sm:$0xff] }
   0x6   :  { %141 = vmatpush3.bf16.msra.mxu0 %v149_v2 }
   0x8   :  { %v22_v4 = vld [vmem:[#allocation2] sm:$0xff]  ;;  %v23_v6 = vld [vmem:[#allocation2 + $0x8] sm:$0xff] }
   0x9   :  { %143 = vmatmul.mubr.msk.bf16.vlgmr.msra.gmra.mrb[0].mxu0 %vm47_vm2, %v150_v3 }
  0xdc   :  { %v85_v5 = vpop.f32.mrb[0].mxu0 }
  0xdd   :  { %v92_v7 = vadd.f32 %v85_v5, %v22_v4  ;;  %v144_v8 = vpop.f32.mrb[1].mxu0 }
  0xde   :  { %v88_v9 = vpop.f32.mrb[2].mxu0 }
  0xdf   :  { %95 = vst.msk [vmem:[#allocation2] sm:$0xff] %vm19_vm0, %v92_v7  ;;  %v93_v10 = vadd.f32 %v88_v9, %v23_v6  ;;  %v145_v11 = vpop.f32.mrb[3].mxu0 }
  0xe1   :  { %96 = vst.msk [vmem:[#allocation2 + $0x8] sm:$0xff] %vm19_vm0, %v93_v10 }
  0xe6   :  { %v100_v13 = vld [vmem:[#allocation2] sm:$0xff] }
  0xe7   :  { %v109_v14 = vadd.f32 %v130_v12, %v100_v13 }
  0xe8   :  { %v101_v15 = vld [vmem:[#allocation2 + $0x8] sm:$0xff] }
  0xe9   :  { %v133_v16 = vpack.c.bf16 %v109_v14, %v109_v14  ;;  %v110_v17 = vadd.f32 %v130_v12, %v101_v15 }
  0xeb   :  { %120 = vst.msk [vmem:[%s198_s3] sm:$0xf] %vm119_vm3, %v133_v16  ;;  %v134_v18 = vpack.c.bf16 %v110_v17, %v110_v17 }
  0xed   :  { %121 = vst.msk [vmem:[%s198_s3 + $0x4] sm:$0xf] %vm119_vm3, %v134_v18 }

// kernel: translation_model_forward.19
= control target key start
LH: loop header
LB: loop body
LE: loop exit
PB: predicated region body
PF: predicated region fallthrough
CT: control target
= control target key end

     0   :  { %s508_s6 = smov 0   ;;  %s558_s0 = inlined_call_operand.vmem [shape: bf16[2,8,96], index: 0, kind: input, shape index: {}]   ;;  %s559_s1 = inlined_call_operand.vmem [shape: bf16[2,8,32], index: 1, kind: output, shape index: {}]  }
   0x1 LB: > { %s408_s7 = sadd.s32 4294967295, %s488_s6   ;;  %p412_p0 = scmp.ge.s32.totalorder %s488_s6, 1  ;;  %s488_s6 = sphi %s508_s6, %s11_s6  }
   0x2   : > { %p86_p1 = scmp.lt.s32.totalorder %s488_s6, 3 }
   0x4   : > { %p87_p2 = pnand %p412_p0, %p86_p1 }
   0x5   : > { %p104_p3 = scmp.lt.s32.totalorder (!%p87_p2), %s408_s7, 1  ;;  %v490_v0 = vmov (!%p87_p2), 0.0   ;;  %vm491_vm0 = vmmov (!%p87_p2), 0   ;;  %s492_s12 = smov (!%p87_p2), 96   ;;  %vm121_vm1 = vcmask (!%p87_p2), 130048   ;;  %vm168_vm2 = vcmask (!%p87_p2), 64512  }
   0x6   : > { %90 = sbr.rel (%p87_p2) target bundleno = 1536 (0x600), region = 24  ;;  %433 = vmatprep.subr.bf16.mxu0 (!%p87_p2), %v490_v0  ;;  %435 = vmatprep.mubr.msk.bf16.mxu0 (!%p87_p2), %vm491_vm0, %v490_v0  ;;  %s493_s13 = smov (!%p87_p2), 64   ;;  %vm186_vm3 = vcmask (!%p87_p2), 1043456   ;;  %vm231_vm4 = vcmask (!%p87_p2), 125952   ;;  %vm353_vm5 = vcmask (!%p87_p2), 257152  }
   0x7   : > { %439 = vmatprep.subr.bf16.mxu1 (!%p87_p2), %v490_v0  ;;  %441 = vmatprep.mubr.msk.bf16.mxu1 (!%p87_p2), %vm491_vm0, %v490_v0  ;;  %s494_s14 = smov (!%p87_p2), 80   ;;  %s495_s15 = smov (!%p87_p2), 112  }
   0x8   : > { %s496_s19 = smov (!%p87_p2), 48   ;;  %s497_s20 = smov (!%p87_p2), 16  }
   0xd   : > { %s561_s7 = smov (!%p104_p3, %s408_s7), 1 }
   0xe   : > { %s413_s8 = sshll.u32 %s561_s7, 2 }
   0xf   : > { %s107_s11 = scalar_lea.vmem %s558_s0, %s413_s8  ;;  %s546_s18 = scalar_lea.vmem %s559_s1, %s413_s8 }
  0x10   : > { %v114_v1 = vld [vmem:[%s107_s11] sm:$0xf] }
  0x11   : > { %v526_v2 = vcombine.low %v114_v1, %v114_v1  ;;  %v115_v5 = vmul.bf16 1048592000, %v114_v1 }
  0x13   : > { %119 = vrot.lane.b32.xlu0 %v526_v2, %s492_s12  ;;  %181 = vrot.lane.b32.xlu1 %v526_v2, %s493_s13  ;;  %v418_v18 = vcombine.low %v115_v5, %v115_v5 }
  0x85   : > { %v120_v3 = vpop.permute.xlu0 %119  ;;  %v182_v11 = vpop.permute.xlu1 %181 }
  0x86   : > { %v126_v4 = vsel %vm121_vm1, %v120_v3, 0  ;;  %v188_v12 = vsel %vm186_vm3, %v182_v11, 0 }
  0x87   : > { %434 = vmatpush3.bf16.xpose.msra.mxu0 %v126_v4  ;;  %440 = vmatpush3.bf16.msra.mxu1 %v188_v12 }
  0x88   : > { %451 = vmatprep.subr.bf16.mxu0 %v490_v0  ;;  %445 = vmatprep.subr.bf16.mxu1 %v490_v0 }
  0x8e   : > { %436 = vmatmul.mubr.msk.bf16.vlgmr.msra.gmra.mrb[0].mxu0 %vm121_vm1, %v115_v5 }
  0x8f   : > { %453 = vmatprep.mubr.msk.bf16.mxu0 %vm491_vm0, %v490_v0 }
 0x161   : > { %v162_v6 = vpop.f32.mrb[0].mxu0 }
 0x162   : > { %v437_v7 = vpop.f32.mrb[1].mxu0  ;;  %v169_v8 = vsel %vm168_vm2, %v162_v6, -inf }
 0x163   : > { %170 = vmax.xlane.f32.xlu0 %v169_v8  ;;  %v165_v9 = vpop.f32.mrb[2].mxu0 }
 0x164   : > { %v438_v10 = vpop.f32.mrb[3].mxu0 }
 0x1f0   : > { %v171_v13 = vpop.xlane.xlu0 %170 }
 0x1f1   : > { %v172_v14 = vsub.f32 %v162_v6, %v171_v13 }
 0x1f3   : > { %v173_v15 = vmul.f32 1.442695, %v172_v14 }
 0x1f5   : > { %474 = vpow2.f32 %v173_v15 }
 0x1ff   : > { %v475_v16 = vpop.eup %474 }
 0x200   : > { %v175_v17 = vsel %vm168_vm2, %v475_v16, 0.0 }
 0x201   : > { %176 = vadd.xlane.f32.xlu1 %v175_v17 }
 0x212   : > { %238 = vrot.lane.b32.xlu1 %v526_v2, %s494_s14 }
 0x216   : > { %236 = vrot.lane.b32.xlu1 %v418_v18, %s495_s15 }
 0x28e   : > { %v177_v19 = vpop.xlane.xlu1 %176 }
 0x28f   : > { %476 = vrcp.f32 %v177_v19 }
 0x292   : > { %v239_v21 = vpop.permute.xlu1 %238 }
 0x293   : > { %v244_v23 = vsel %vm121_vm1, %v239_v21, 0 }
 0x296   : > { %v237_v25 = vpop.permute.xlu1 %236 }
 0x299   : > { %v477_v20 = vpop.eup %476 }
 0x29a   : > { %v179_v22 = vmul.f32 %v477_v20, %v475_v16 }
 0x29c   : > { %v180_v24 = vpack.c.bf16 %v179_v22, %v179_v22 }
 0x29e   : > { %442 = vmatmul.mubr.msk.bf16.vlgmr.msra.gmra.mrb[0].mxu1 %vm168_vm2, %v180_v24 }
 0x29f   : > { %446 = vmatpush3.bf16.xpose.msra.mxu1 %v244_v23  ;;  %447 = vmatprep.mubr.msk.bf16.mxu1 %vm491_vm0, %v490_v0 }
 0x2a6   : > { %448 = vmatmul.mubr.msk.bf16.vlgmr.msra.gmra.mrb[4].mxu1 %vm121_vm1, %v237_v25 }
 0x371   : > { %v224_v26 = vpop.f32.mrb[0].mxu1 }
 0x372   : > { %v230_v27 = vpack.c.bf16 %v224_v26, %v224_v26  ;;  %v443_v28 = vpop.f32.mrb[1].mxu1 }
 0x373   : > { %v227_v29 = vpop.f32.mrb[2].mxu1 }
 0x374   : > { %232 = vst.msk [vmem:[%s546_s18] sm:$0xf] %vm231_vm4, %v230_v27  ;;  %v444_v30 = vpop.f32.mrb[3].mxu1 }
 0x379   : > { %v280_v31 = vpop.f32.mrb[4].mxu1 }
 0x37a   : > { %v449_v32 = vpop.f32.mrb[5].mxu1  ;;  %v286_v33 = vsel %vm168_vm2, %v280_v31, -inf }
 0x37b   : > { %287 = vmax.xlane.f32.xlu1 %v286_v33  ;;  %v283_v34 = vpop.f32.mrb[6].mxu1 }
 0x37c   : > { %v450_v35 = vpop.f32.mrb[7].mxu1 }
 0x408   : > { %v288_v36 = vpop.xlane.xlu1 %287 }
 0x409   : > { %v289_v37 = vsub.f32 %v280_v31, %v288_v36 }
 0x40b   : > { %v290_v38 = vmul.f32 1.442695, %v289_v37 }
 0x40d   : > { %478 = vpow2.f32 %v290_v38 }
 0x417   : > { %v479_v39 = vpop.eup %478 }
 0x418   : > { %v292_v40 = vsel %vm168_vm2, %v479_v39, 0.0 }
 0x419   : > { %293 = vadd.xlane.f32.xlu0 %v292_v40 }
 0x42f   : > { %298 = vrot.lane.b32.xlu0 %v526_v2, %s496_s19 }
 0x4a6   : > { %v294_v41 = vpop.xlane.xlu0 %293 }
 0x4a7   : > { %480 = vrcp.f32 %v294_v41 }
 0x4aa   : > { %v299_v42 = vpop.permute.xlu0 %298 }
 0x4ab   : > { %v304_v43 = vsel %vm186_vm3, %v299_v42, 0 }
 0x4ac   : > { %452 = vmatpush3.bf16.msra.mxu0 %v304_v43 }
 0x4b1   : > { %v481_v44 = vpop.eup %480 }
 0x4b2   : > { %v296_v45 = vmul.f32 %v481_v44, %v479_v39 }
 0x4b4   : > { %v297_v46 = vpack.c.bf16 %v296_v45, %v296_v45 }
 0x4b6   : > { %454 = vmatmul.mubr.msk.bf16.vlgmr.msra.gmra.mrb[4].mxu0 %vm168_vm2, %v297_v46 }
 0x589   : > { %v340_v47 = vpop.f32.mrb[4].mxu0 }
 0x58a   : > { %v424_v48 = vpack.c.bf16 %v340_v47, %v340_v47  ;;  %v455_v49 = vpop.f32.mrb[5].mxu0 }
 0x58b   : > { %v343_v50 = vpop.f32.mrb[6].mxu0 }
 0x58c   : > { %350 = vrot.lane.b32.xlu0 %v424_v48, %s497_s20  ;;  %v456_v51 = vpop.f32.mrb[7].mxu0 }
 0x5fe   : > { %v351_v52 = vpop.permute.xlu0 %350 }
 0x5ff   : > { %354 = vst.msk [vmem:[%s546_s18] sm:$0xf] %vm353_vm5, %v351_v52 }
 0x600 PF: > { %s11_s6 = sadd.s32 1, %s488_s6  }
 0x601   : > { %p8_p4 = scmp.ge.s32.totalorder %s11_s6, 4  }
 0x603   :  { %10 = sbr.rel (!%p8_p4) target bundleno = 1 (0x1), region = 54 }

// kernel: translation_model_forward.20
= control target key start
LH: loop header
LB: loop body
LE: loop exit
PB: predicated region body
PF: predicated region fallthrough
CT: control target
= control target key end

     0   :  { %vm28_vm0 = vcmask 261120   ;;  %v220_v0 = vmov 0.0   ;;  %vm221_vm1 = vmmov 0   ;;  %vm178_vm2 = vcmask 257024   ;;  %s293_s1 = inlined_call_operand.vmem [shape: bf16[32,32], index: 1, kind: input, shape index: {}]   ;;  %s294_s0 = inlined_call_operand.vmem [shape: bf16[16,32], index: 0, kind: input, shape index: {}]   ;;  %s295_s3 = inlined_call_operand.vmem [shape: bf16[16,32], index: 3, kind: input, shape index: {}]   ;;  %s296_s2 = inlined_call_operand.vmem [shape: f32[1,32], index: 2, kind: input, shape index: {}]   ;;  %s297_s4 = inlined_call_operand.vmem [shape: f32[1,32], index: 4, kind: input, shape index: {}]   ;;  %s298_s5 = inlined_call_operand.vmem [shape: f32[1,32], index: 5, kind: input, shape index: {}]   ;;  %s299_s6 = inlined_call_operand.vmem [shape: bf16[16,32], index: 6, kind: output, shape index: {}]  }
   0x1   :  { %203 = vmatprep.subr.bf16.mxu0 %v220_v0  ;;  %v213_v1 = vld [vmem:[%s293_s1] sm:$0xff]   ;;  %207 = vmatprep.mubr.msk.bf16.mxu0 %vm221_vm1, %v220_v0  ;;  %29 = vst.msk [vmem:[#allocation2] sm:$0xff] %vm28_vm0, %v220_v0  ;;  %30 = vst.msk [vmem:[#allocation2 + $0x8] sm:$0xff] %vm28_vm0, %v220_v0  ;;  %v214_v2 = vld [vmem:[%s293_s1 + $0x8] sm:$0xff]  }
   0x2   :  { %204 = vmatpush3.bf16.msra.mxu0 %v213_v1  ;;  %v215_v3 = vld [vmem:[%s294_s0] sm:$0xff]  }
   0x3   :  { %205 = vmatprep.subr.bf16.mxu0 %v220_v0  ;;  %v197_v12 = vld [vmem:[%s295_s3] sm:$0xff]  }
   0x4   :  { %v189_v13 = vld [vmem:[%s296_s2] ss:$0 sm:$0xff]  ;;  %v198_v14 = vunpack.c.l.bf16 %v197_v12  ;;  %v199_v17 = vunpack.c.h.bf16 %v197_v12 }
   0x5   :  { %v190_v41 = vld [vmem:[%s297_s4] ss:$0 sm:$0xff] }
   0x6   :  { %206 = vmatpush3.bf16.msra.mxu0 %v214_v2  ;;  %v191_v43 = vld [vmem:[%s298_s5] ss:$0 sm:$0xff] }
   0x8   :  { %v31_v4 = vld [vmem:[#allocation2] sm:$0xff]  ;;  %v32_v6 = vld [vmem:[#allocation2 + $0x8] sm:$0xff] }
   0x9   :  { %208 = vmatmul.mubr.msk.bf16.vlgmr.msra.gmra.mrb[0].mxu0 %vm28_vm0, %v215_v3 }
  0xdc   :  { %v94_v5 = vpop.f32.mrb[0].mxu0 }
  0xdd   :  { %v101_v7 = vadd.f32 %v94_v5, %v31_v4  ;;  %v209_v8 = vpop.f32.mrb[1].mxu0 }
  0xde   :  { %v97_v9 = vpop.f32.mrb[2].mxu0 }
  0xdf   :  { %103 = vst.msk [vmem:[#allocation2] sm:$0xff] %vm28_vm0, %v101_v7  ;;  %v102_v10 = vadd.f32 %v97_v9, %v32_v6  ;;  %v210_v11 = vpop.f32.mrb[3].mxu0 }
  0xe1   :  { %104 = vst.msk [vmem:[#allocation2 + $0x8] sm:$0xff] %vm28_vm0, %v102_v10 }
  0xe6   :  { %v108_v15 = vld [vmem:[#allocation2] sm:$0xff] }
  0xe7   :  { %v117_v16 = vadd.f32 %v189_v13, %v108_v15 }
  0xe8   :  { %v109_v18 = vld [vmem:[#allocation2 + $0x8] sm:$0xff] }
  0xe9   :  { %v123_v19 = vadd.f32 %v198_v14, %v117_v16  ;;  %v118_v20 = vadd.f32 %v189_v13, %v109_v18 }
  0xeb   :  { %v125_v21 = vsel %vm28_vm0, %v123_v19, 0.0  ;;  %v124_v22 = vadd.f32 %v199_v17, %v118_v20 }
  0xec   :  { %126 = vadd.xlane.f32.xlu0 %v125_v21 }
  0xed   :  { %v128_v23 = vsel %vm28_vm0, %v124_v22, 0.0 }
  0xf0   :  { %129 = vadd.xlane.f32.xlu0 %v128_v23 }
 0x179   :  { %v127_v24 = vpop.xlane.xlu0 %126 }
 0x17a   :  { %v132_v25 = vmul.f32 0.03125, %v127_v24 }
 0x17c   :  { %v134_v26 = vsub.f32 %v123_v19, %v132_v25 }
 0x17d   :  { %v130_v27 = vpop.xlane.xlu0 %129 }
 0x17e   :  { %v133_v28 = vmul.f32 0.03125, %v130_v27  ;;  %v136_v29 = vmul.f32 %v134_v26, %v134_v26 }
 0x180   :  { %v135_v30 = vsub.f32 %v124_v22, %v133_v28  ;;  %v138_v31 = vsel %vm28_vm0, %v136_v29, 0.0 }
 0x181   :  { %139 = vadd.xlane.f32.xlu1 %v138_v31 }
 0x182   :  { %v137_v32 = vmul.f32 %v135_v30, %v135_v30 }
 0x184   :  { %v141_v33 = vsel %vm28_vm0, %v137_v32, 0.0 }
 0x185   :  { %142 = vadd.xlane.f32.xlu1 %v141_v33 }
 0x20e   :  { %v140_v34 = vpop.xlane.xlu1 %139 }
 0x20f   :  { %v144_v35 = vmul.f32 0.03125, %v140_v34 }
 0x211   :  { %v146_v36 = vadd.f32 1e-12, %v144_v35 }
 0x212   :  { %v143_v37 = vpop.xlane.xlu1 %142 }
 0x213   :  { %216 = vrsqrt.f32 %v146_v36  ;;  %v145_v38 = vmul.f32 0.03125, %v143_v37 }
 0x215   :  { %v147_v39 = vadd.f32 1e-12, %v145_v38 }
 0x217   :  { %218 = vrsqrt.f32 %v147_v39 }
 0x21d   :  { %v217_v40 = vpop.eup %216 }
 0x21e   :  { %v150_v42 = vmul.f32 %v217_v40, %v134_v26 }
 0x220   :  { %v159_v44 = vmul.f32 %v190_v41, %v150_v42 }
 0x221   :  { %v219_v45 = vpop.eup %218 }
 0x222   :  { %v168_v46 = vadd.f32 %v191_v43, %v159_v44  ;;  %v151_v47 = vmul.f32 %v219_v45, %v135_v30 }
 0x224   :  { %v194_v48 = vpack.c.bf16 %v168_v46, %v168_v46  ;;  %v160_v49 = vmul.f32 %v190_v41, %v151_v47 }
 0x226   :  { %179 = vst.msk [vmem:[%s299_s6] sm:$0xf] %vm178_vm2, %v194_v48  ;;  %v169_v50 = vadd.f32 %v191_v43, %v160_v49 }
 0x228   :  { %v195_v51 = vpack.c.bf16 %v169_v50, %v169_v50 }
 0x22a   :  { %180 = vst.msk [vmem:[%s299_s6 + $0x4] sm:$0xf] %vm178_vm2, %v195_v51 }

// kernel: translation_model_forward.21
= control target key start
LH: loop header
LB: loop body
LE: loop exit
PB: predicated region body
PF: predicated region fallthrough
CT: control target
= control target key end

     0   :  { %vm19_vm0 = vcmask 523264   ;;  %v173_v0 = vmov 0.0   ;;  %vm174_vm1 = vmmov 0   ;;  %vm47_vm2 = vcmask 261120   ;;  %s217_s1 = inlined_call_operand.vmem [shape: bf16[32,64], index: 1, kind: input, shape index: {}]   ;;  %s218_s0 = inlined_call_operand.vmem [shape: bf16[16,32], index: 0, kind: input, shape index: {}]   ;;  %s219_s2 = inlined_call_operand.vmem [shape: f32[1,64], index: 2, kind: input, shape index: {}]   ;;  %s220_s3 = inlined_call_operand.vmem [shape: bf16[16,64], index: 3, kind: output, shape index: {}]  }
   0x1   :  { %156 = vmatprep.subr.bf16.mxu0 %v173_v0  ;;  %v166_v1 = vld [vmem:[%s217_s1] sm:$0xff]   ;;  %160 = vmatprep.mubr.msk.bf16.mxu0 %vm174_vm1, %v173_v0  ;;  %20 = vst.msk [vmem:[#allocation2] sm:$0xff] %vm19_vm0, %v173_v0  ;;  %21 = vst.msk [vmem:[#allocation2 + $0x8] sm:$0xff] %vm19_vm0, %v173_v0  ;;  %v167_v2 = vld [vmem:[%s217_s1 + $0x8] sm:$0xff]   ;;  %vm137_vm3 = vcmask 519168  }
   0x2   :  { %157 = vmatpush3.bf16.msra.mxu0 %v166_v1  ;;  %v168_v3 = vld [vmem:[%s218_s0] sm:$0xff]  }
   0x3   :  { %158 = vmatprep.subr.bf16.mxu0 %v173_v0  ;;  %v148_v12 = vld [vmem:[%s219_s2] ss:$0 sm:$0xff] }
   0x6   :  { %159 = vmatpush3.bf16.msra.mxu0 %v167_v2 }
   0x8   :  { %v22_v4 = vld [vmem:[#allocation2] sm:$0xff]  ;;  %v23_v6 = vld [vmem:[#allocation2 + $0x8] sm:$0xff] }
   0x9   :  { %161 = vmatmul.mubr.msk.bf16.vlgmr.msra.gmra.mrb[0].mxu0 %vm47_vm2, %v168_v3 }
  0xdc   :  { %v85_v5 = vpop.f32.mrb[0].mxu0 }
  0xdd   :  { %v92_v7 = vadd.f32 %v85_v5, %v22_v4  ;;  %v162_v8 = vpop.f32.mrb[1].mxu0 }
  0xde   :  { %v88_v9 = vpop.f32.mrb[2].mxu0 }
  0xdf   :  { %95 = vst.msk [vmem:[#allocation2] sm:$0xff] %vm19_vm0, %v92_v7  ;;  %v93_v10 = vadd.f32 %v88_v9, %v23_v6  ;;  %v163_v11 = vpop.f32.mrb[3].mxu0 }
  0xe1   :  { %96 = vst.msk [vmem:[#allocation2 + $0x8] sm:$0xff] %vm19_vm0, %v93_v10 }
  0xe6   :  { %v100_v13 = vld [vmem:[#allocation2] sm:$0xff] }
  0xe7   :  { %v109_v14 = vadd.f32 %v148_v12, %v100_v13 }
  0xe8   :  { %v101_v15 = vld [vmem:[#allocation2 + $0x8] sm:$0xff] }
  0xe9   :  { %v113_v16 = vmul.f32 0.044715, %v109_v14  ;;  %v110_v17 = vadd.f32 %v148_v12, %v101_v15  ;;  %v111_v28 = vmul.f32 0.5, %v109_v14 }
  0xeb   :  { %v115_v18 = vmul.f32 %v113_v16, %v109_v14  ;;  %v114_v19 = vmul.f32 0.044715, %v110_v17  ;;  %v112_v32 = vmul.f32 0.5, %v110_v17 }
  0xed   :  { %v117_v20 = vmul.f32 %v115_v18, %v109_v14  ;;  %v116_v21 = vmul.f32 %v114_v19, %v110_v17 }
  0xef   :  { %v119_v22 = vadd.f32 %v117_v20, %v109_v14  ;;  %v118_v23 = vmul.f32 %v116_v21, %v110_v17 }
  0xf1   :  { %v121_v24 = vmul.f32 0.7978846, %v119_v22  ;;  %v120_v25 = vadd.f32 %v118_v23, %v110_v17 }
  0xf3   :  { %169 = vtanh.f32 %v121_v24  ;;  %v122_v26 = vmul.f32 0.7978846, %v120_v25 }
  0xf5   :  { %171 = vtanh.f32 %v122_v26 }
  0xfd   :  { %v170_v27 = vpop.eup %169 }
  0xfe   :  { %v125_v29 = vadd.f32 1.0, %v170_v27 }
  0xff   :  { %v172_v30 = vpop.eup %171 }
 0x100   :  { %v127_v31 = vmul.f32 %v125_v29, %v111_v28  ;;  %v126_v33 = vadd.f32 1.0, %v172_v30 }
 0x102   :  { %v151_v34 = vpack.c.bf16 %v127_v31, %v127_v31  ;;  %v128_v35 = vmul.f32 %v126_v33, %v112_v32 }
 0x104   :  { %138 = vst.msk [vmem:[%s220_s3] sm:$0xf] %vm137_vm3, %v151_v34  ;;  %v152_v36 = vpack.c.bf16 %v128_v35, %v128_v35 }
 0x106   :  { %139 = vst.msk [vmem:[%s220_s3 + $0x4] sm:$0xf] %vm137_vm3, %v152_v36 }

// kernel: translation_model_forward.22
= control target key start
LH: loop header
LB: loop body
LE: loop exit
PB: predicated region body
PF: predicated region fallthrough
CT: control target
= control target key end

     0   :  { %vm28_vm0 = vcmask 261120   ;;  %v247_v0 = vmov 0.0   ;;  %vm248_vm1 = vmmov 0   ;;  %vm72_vm2 = vcmask 523264   ;;  %s325_s1 = inlined_call_operand.vmem [shape: bf16[64,32], index: 1, kind: input, shape index: {}]   ;;  %s326_s0 = inlined_call_operand.vmem [shape: bf16[16,64], index: 0, kind: input, shape index: {}]   ;;  %s327_s3 = inlined_call_operand.vmem [shape: bf16[16,32], index: 3, kind: input, shape index: {}]   ;;  %s328_s2 = inlined_call_operand.vmem [shape: f32[1,32], index: 2, kind: input, shape index: {}]   ;;  %s329_s4 = inlined_call_operand.vmem [shape: f32[1,32], index: 4, kind: input, shape index: {}]   ;;  %s330_s5 = inlined_call_operand.vmem [shape: f32[1,32], index: 5, kind: input, shape index: {}]   ;;  %s331_s6 = inlined_call_operand.vmem [shape: bf16[16,32], index: 6, kind: output, shape index: {}]  }
   0x1   :  { %224 = vmatprep.subr.bf16.mxu0 %v247_v0  ;;  %v238_v1 = vld [vmem:[%s325_s1] sm:$0xff]   ;;  %232 = vmatprep.mubr.msk.bf16.mxu0 %vm248_vm1, %v247_v0  ;;  %29 = vst.msk [vmem:[#allocation2] sm:$0xff] %vm28_vm0, %v247_v0  ;;  %30 = vst.msk [vmem:[#allocation2 + $0x8] sm:$0xff] %vm28_vm0, %v247_v0  ;;  %v239_v2 = vld [vmem:[%s325_s1 + $0x8] sm:$0xff]   ;;  %vm195_vm3 = vcmask 257024  }
   0x2   :  { %225 = vmatpush3.bf16.msra.mxu0 %v238_v1  ;;  %v240_v3 = vld [vmem:[%s325_s1 + $0x10] sm:$0xff]   ;;  %v241_v4 = vld [vmem:[%s325_s1 + $0x18] sm:$0xff]   ;;  %v242_v5 = vld [vmem:[%s326_s0] sm:$0xff]  }
   0x3   :  { %226 = vmatprep.subr.bf16.mxu0 %v247_v0  ;;  %v216_v14 = vld [vmem:[%s327_s3] sm:$0xff]  }
   0x4   :  { %v208_v15 = vld [vmem:[%s328_s2] ss:$0 sm:$0xff]  ;;  %v217_v16 = vunpack.c.l.bf16 %v216_v14  ;;  %v218_v19 = vunpack.c.h.bf16 %v216_v14 }
   0x5   :  { %v209_v43 = vld [vmem:[%s329_s4] ss:$0 sm:$0xff] }
   0x6   :  { %227 = vmatpush3.bf16.msra.mxu0 %v239_v2  ;;  %v210_v45 = vld [vmem:[%s330_s5] ss:$0 sm:$0xff] }
   0x7   :  { %228 = vmatprep.subr.bf16.mxu0 %v247_v0 }
   0x8   :  { %v31_v6 = vld [vmem:[#allocation2] sm:$0xff]  ;;  %v32_v8 = vld [vmem:[#allocation2 + $0x8] sm:$0xff] }
   0xa   :  { %229 = vmatpush3.bf16.msra.mxu0 %v240_v3 }
   0xb   :  { %230 = vmatprep.subr.bf16.mxu0 %v247_v0 }
   0xe   :  { %231 = vmatpush3.bf16.msra.mxu0 %v241_v4 }
  0x11   :  { %233 = vmatmul.mubr.msk.bf16.vlgmr.msra.gmra.mrb[0].mxu0 %vm72_vm2, %v242_v5 }
  0xe4   :  { %v110_v7 = vpop.f32.mrb[0].mxu0 }
  0xe5   :  { %v117_v9 = vadd.f32 %v110_v7, %v31_v6  ;;  %v234_v10 = vpop.f32.mrb[1].mxu0 }
  0xe6   :  { %v113_v11 = vpop.f32.mrb[2].mxu0 }
  0xe7   :  { %120 = vst.msk [vmem:[#allocation2] sm:$0xff] %vm28_vm0, %v117_v9  ;;  %v118_v12 = vadd.f32 %v113_v11, %v32_v8  ;;  %v235_v13 = vpop.f32.mrb[3].mxu0 }
  0xe9   :  { %121 = vst.msk [vmem:[#allocation2 + $0x8] sm:$0xff] %vm28_vm0, %v118_v12 }
  0xee   :  { %v125_v17 = vld [vmem:[#allocation2] sm:$0xff] }
  0xef   :  { %v134_v18 = vadd.f32 %v208_v15, %v125_v17 }
  0xf0   :  { %v126_v20 = vld [vmem:[#allocation2 + $0x8] sm:$0xff] }
  0xf1   :  { %v140_v21 = vadd.f32 %v217_v16, %v134_v18  ;;  %v135_v22 = vadd.f32 %v208_v15, %v126_v20 }
  0xf3   :  { %v142_v23 = vsel %vm28_vm0, %v140_v21, 0.0  ;;  %v141_v24 = vadd.f32 %v218_v19, %v135_v22 }
  0xf4   :  { %143 = vadd.xlane.f32.xlu0 %v142_v23 }
  0xf5   :  { %v145_v25 = vsel %vm28_vm0, %v141_v24, 0.0 }
  0xf8   :  { %146 = vadd.xlane.f32.xlu0 %v145_v25 }
 0x181   :  { %v144_v26 = vpop.xlane.xlu0 %143 }
 0x182   :  { %v149_v27 = vmul.f32 0.03125, %v144_v26 }
 0x184   :  { %v151_v28 = vsub.f32 %v140_v21, %v149_v27 }
 0x185   :  { %v147_v29 = vpop.xlane.xlu0 %146 }
 0x186   :  { %v150_v30 = vmul.f32 0.03125, %v147_v29  ;;  %v153_v31 = vmul.f32 %v151_v28, %v151_v28 }
 0x188   :  { %v152_v32 = vsub.f32 %v141_v24, %v150_v30  ;;  %v155_v33 = vsel %vm28_vm0, %v153_v31, 0.0 }
 0x189   :  { %156 = vadd.xlane.f32.xlu1 %v155_v33 }
 0x18a   :  { %v154_v34 = vmul.f32 %v152_v32, %v152_v32 }
 0x18c   :  { %v158_v35 = vsel %vm28_vm0, %v154_v34, 0.0 }
 0x18d   :  { %159 = vadd.xlane.f32.xlu1 %v158_v35 }
 0x216   :  { %v157_v36 = vpop.xlane.xlu1 %156 }
 0x217   :  { %v161_v37 = vmul.f32 0.03125, %v157_v36 }
 0x219   :  { %v163_v38 = vadd.f32 1e-12, %v161_v37 }
 0x21a   :  { %v160_v39 = vpop.xlane.xlu1 %159 }
 0x21b   :  { %243 = vrsqrt.f32 %v163_v38  ;;  %v162_v40 = vmul.f32 0.03125, %v160_v39 }
 0x21d   :  { %v164_v41 = vadd.f32 1e-12, %v162_v40 }
 0x21f   :  { %245 = vrsqrt.f32 %v164_v41 }
 0x225   :  { %v244_v42 = vpop.eup %243 }
 0x226   :  { %v167_v44 = vmul.f32 %v244_v42, %v151_v28 }
 0x228   :  { %v176_v46 = vmul.f32 %v209_v43, %v167_v44 }
 0x229   :  { %v246_v47 = vpop.eup %245 }
 0x22a   :  { %v185_v48 = vadd.f32 %v210_v45, %v176_v46  ;;  %v168_v49 = vmul.f32 %v246_v47, %v152_v32 }
 0x22c   :  { %v213_v50 = vpack.c.bf16 %v185_v48, %v185_v48  ;;  %v177_v51 = vmul.f32 %v209_v43, %v168_v49 }
 0x22e   :  { %196 = vst.msk [vmem:[%s331_s6] sm:$0xf] %vm195_vm3, %v213_v50  ;;  %v186_v52 = vadd.f32 %v210_v45, %v177_v51 }
 0x230   :  { %v214_v53 = vpack.c.bf16 %v186_v52, %v186_v52 }
 0x232   :  { %197 = vst.msk [vmem:[%s331_s6 + $0x4] sm:$0xf] %vm195_vm3, %v214_v53 }

// kernel: translation_model_forward.25
= control target key start
LH: loop header
LB: loop body
LE: loop exit
PB: predicated region body
PF: predicated region fallthrough
CT: control target
= control target key end

     0   :  { %s516_s6 = smov 0   ;;  %s574_s0 = inlined_call_operand.vmem [shape: bf16[2,8,96], index: 0, kind: input, shape index: {}]   ;;  %s575_s1 = inlined_call_operand.vmem [shape: bf16[2,8,32], index: 1, kind: output, shape index: {}]  }
   0x1 LB: > { %s414_s7 = sadd.s32 4294967295, %s495_s6   ;;  %p418_p0 = scmp.ge.s32.totalorder %s495_s6, 1  ;;  %s495_s6 = sphi %s516_s6, %s11_s6  }
   0x2   : > { %p86_p1 = scmp.lt.s32.totalorder %s495_s6, 3 }
   0x4   : > { %p87_p2 = pnand %p418_p0, %p86_p1 }
   0x5   : > { %p104_p3 = scmp.lt.s32.totalorder (!%p87_p2), %s414_s7, 1  ;;  %v497_v0 = vmov (!%p87_p2), 0.0   ;;  %vm498_vm0 = vmmov (!%p87_p2), 0   ;;  %s499_s12 = smov (!%p87_p2), 96   ;;  %vm127_vm1 = vcmask (!%p87_p2), 130048   ;;  %v116_v6 = vlaneseq (!%p87_p2) }
   0x6   : > { %90 = sbr.rel (%p87_p2) target bundleno = 1540 (0x604), region = 24  ;;  %439 = vmatprep.subr.bf16.mxu0 (!%p87_p2), %v497_v0  ;;  %441 = vmatprep.mubr.msk.bf16.mxu0 (!%p87_p2), %vm498_vm0, %v497_v0  ;;  %s500_s13 = smov (!%p87_p2), 64   ;;  %v501_v9 = vmov (!%p87_p2), -1e+30   ;;  %vm174_vm3 = vcmask (!%p87_p2), 64512   ;;  %vm192_vm4 = vcmask (!%p87_p2), 1043456  }
   0x7   : > { %445 = vmatprep.subr.bf16.mxu1 (!%p87_p2), %v497_v0  ;;  %447 = vmatprep.mubr.msk.bf16.mxu1 (!%p87_p2), %vm498_vm0, %v497_v0  ;;  %v117_v7 = vshrl.u32 (!%p87_p2), %v116_v6, 7  ;;  %v119_v8 = vand.u32 (!%p87_p2), 127, %v116_v6  ;;  %s502_s14 = smov (!%p87_p2), 80   ;;  %s503_s15 = smov (!%p87_p2), 112   ;;  %vm237_vm5 = vcmask (!%p87_p2), 125952   ;;  %vm359_vm6 = vcmask (!%p87_p2), 257152  }
   0x8   : > { %s504_s19 = smov (!%p87_p2), 48   ;;  %s505_s20 = smov (!%p87_p2), 16  }
   0x9   : > { %vm120_vm2 = vcmp.le.s32.totalorder (!%p87_p2), %v119_v8, %v117_v7 }
   0xa   : > { %v121_v10 = vsel (!%p87_p2), %vm120_vm2, 0.0, %v501_v9 }
   0xd   : > { %s577_s7 = smov (!%p104_p3, %s414_s7), 1 }
   0xe   : > { %s419_s8 = sshll.u32 %s577_s7, 2 }
   0xf   : > { %s107_s11 = scalar_lea.vmem %s574_s0, %s419_s8  ;;  %s562_s18 = scalar_lea.vmem %s575_s1, %s419_s8 }
  0x10   : > { %v114_v1 = vld [vmem:[%s107_s11] sm:$0xf] }
  0x11   : > { %v538_v2 = vcombine.low %v114_v1, %v114_v1  ;;  %v115_v5 = vmul.bf16 1048592000, %v114_v1 }
  0x13   : > { %125 = vrot.lane.b32.xlu0 %v538_v2, %s499_s12  ;;  %187 = vrot.lane.b32.xlu1 %v538_v2, %s500_s13  ;;  %v424_v24 = vcombine.low %v115_v5, %v115_v5 }
  0x85   : > { %v126_v3 = vpop.permute.xlu0 %125  ;;  %v188_v17 = vpop.permute.xlu1 %187 }
  0x86   : > { %v132_v4 = vsel %vm127_vm1, %v126_v3, 0  ;;  %v194_v18 = vsel %vm192_vm4, %v188_v17, 0 }
  0x87   : > { %440 = vmatpush3.bf16.xpose.msra.mxu0 %v132_v4  ;;  %446 = vmatpush3.bf16.msra.mxu1 %v194_v18 }
  0x88   : > { %457 = vmatprep.subr.bf16.mxu0 %v497_v0  ;;  %451 = vmatprep.subr.bf16.mxu1 %v497_v0 }
  0x8e   : > { %442 = vmatmul.mubr.msk.bf16.vlgmr.msra.gmra.mrb[0].mxu0 %vm127_vm1, %v115_v5 }
  0x8f   : > { %459 = vmatprep.mubr.msk.bf16.mxu0 %vm498_vm0, %v497_v0 }
 0x161   : > { %v168_v11 = vpop.f32.mrb[0].mxu0 }
 0x162   : > { %v169_v12 = vadd.f32 %v168_v11, %v121_v10  ;;  %v443_v13 = vpop.f32.mrb[1].mxu0 }
 0x163   : > { %v171_v14 = vpop.f32.mrb[2].mxu0 }
 0x164   : > { %v444_v15 = vpop.f32.mrb[3].mxu0  ;;  %v175_v16 = vsel %vm174_vm3, %v169_v12, -inf }
 0x165   : > { %176 = vmax.xlane.f32.xlu0 %v175_v16 }
 0x1f2   : > { %v177_v19 = vpop.xlane.xlu0 %176 }
 0x1f3   : > { %v178_v20 = vsub.f32 %v169_v12, %v177_v19 }
 0x1f5   : > { %v179_v21 = vmul.f32 1.442695, %v178_v20 }
 0x1f7   : > { %481 = vpow2.f32 %v179_v21 }
 0x201   : > { %v482_v22 = vpop.eup %481 }
 0x202   : > { %v181_v23 = vsel %vm174_vm3, %v482_v22, 0.0 }
 0x203   : > { %182 = vadd.xlane.f32.xlu1 %v181_v23 }
 0x214   : > { %244 = vrot.lane.b32.xlu1 %v538_v2, %s502_s14 }
 0x218   : > { %242 = vrot.lane.b32.xlu1 %v424_v24, %s503_s15 }
 0x290   : > { %v183_v25 = vpop.xlane.xlu1 %182 }
 0x291   : > { %483 = vrcp.f32 %v183_v25 }
 0x294   : > { %v245_v27 = vpop.permute.xlu1 %244 }
 0x295   : > { %v250_v29 = vsel %vm127_vm1, %v245_v27, 0 }
 0x298   : > { %v243_v31 = vpop.permute.xlu1 %242 }
 0x29b   : > { %v484_v26 = vpop.eup %483 }
 0x29c   : > { %v185_v28 = vmul.f32 %v484_v26, %v482_v22 }
 0x29e   : > { %v186_v30 = vpack.c.bf16 %v185_v28, %v185_v28 }
 0x2a0   : > { %448 = vmatmul.mubr.msk.bf16.vlgmr.msra.gmra.mrb[0].mxu1 %vm174_vm3, %v186_v30 }
 0x2a1   : > { %452 = vmatpush3.bf16.xpose.msra.mxu1 %v250_v29  ;;  %453 = vmatprep.mubr.msk.bf16.mxu1 %vm498_vm0, %v497_v0 }
 0x2a8   : > { %454 = vmatmul.mubr.msk.bf16.vlgmr.msra.gmra.mrb[4].mxu1 %vm127_vm1, %v243_v31 }
 0x373   : > { %v230_v32 = vpop.f32.mrb[0].mxu1 }
 0x374   : > { %v236_v33 = vpack.c.bf16 %v230_v32, %v230_v32  ;;  %v449_v34 = vpop.f32.mrb[1].mxu1 }
 0x375   : > { %v233_v35 = vpop.f32.mrb[2].mxu1 }
 0x376   : > { %238 = vst.msk [vmem:[%s562_s18] sm:$0xf] %vm237_vm5, %v236_v33  ;;  %v450_v36 = vpop.f32.mrb[3].mxu1 }
 0x37b   : > { %v286_v37 = vpop.f32.mrb[4].mxu1 }
 0x37c   : > { %v287_v38 = vadd.f32 %v286_v37, %v121_v10  ;;  %v455_v39 = vpop.f32.mrb[5].mxu1 }
 0x37d   : > { %v289_v40 = vpop.f32.mrb[6].mxu1 }
 0x37e   : > { %v456_v41 = vpop.f32.mrb[7].mxu1  ;;  %v292_v42 = vsel %vm174_vm3, %v287_v38, -inf }
 0x37f   : > { %293 = vmax.xlane.f32.xlu1 %v292_v42 }
 0x40c   : > { %v294_v43 = vpop.xlane.xlu1 %293 }
 0x40d   : > { %v295_v44 = vsub.f32 %v287_v38, %v294_v43 }
 0x40f   : > { %v296_v45 = vmul.f32 1.442695, %v295_v44 }
 0x411   : > { %485 = vpow2.f32 %v296_v45 }
 0x41b   : > { %v486_v46 = vpop.eup %485 }
 0x41c   : > { %v298_v47 = vsel %vm174_vm3, %v486_v46, 0.0 }
 0x41d   : > { %299 = vadd.xlane.f32.xlu0 %v298_v47 }
 0x433   : > { %304 = vrot.lane.b32.xlu0 %v538_v2, %s504_s19 }
 0x4aa   : > { %v300_v48 = vpop.xlane.xlu0 %299 }
 0x4ab   : > { %487 = vrcp.f32 %v300_v48 }
 0x4ae   : > { %v305_v49 = vpop.permute.xlu0 %304 }
 0x4af   : > { %v310_v50 = vsel %vm192_vm4, %v305_v49, 0 }
 0x4b0   : > { %458 = vmatpush3.bf16.msra.mxu0 %v310_v50 }
 0x4b5   : > { %v488_v51 = vpop.eup %487 }
 0x4b6   : > { %v302_v52 = vmul.f32 %v488_v51, %v486_v46 }
 0x4b8   : > { %v303_v53 = vpack.c.bf16 %v302_v52, %v302_v52 }
 0x4ba   : > { %460 = vmatmul.mubr.msk.bf16.vlgmr.msra.gmra.mrb[4].mxu0 %vm174_vm3, %v303_v53 }
 0x58d   : > { %v346_v54 = vpop.f32.mrb[4].mxu0 }
 0x58e   : > { %v430_v55 = vpack.c.bf16 %v346_v54, %v346_v54  ;;  %v461_v56 = vpop.f32.mrb[5].mxu0 }
 0x58f   : > { %v349_v57 = vpop.f32.mrb[6].mxu0 }
 0x590   : > { %356 = vrot.lane.b32.xlu0 %v430_v55, %s505_s20  ;;  %v462_v58 = vpop.f32.mrb[7].mxu0 }
 0x602   : > { %v357_v59 = vpop.permute.xlu0 %356 }
 0x603   : > { %360 = vst.msk [vmem:[%s562_s18] sm:$0xf] %vm359_vm6, %v357_v59 }
 0x604 PF: > { %s11_s6 = sadd.s32 1, %s495_s6  }
 0x605   : > { %p8_p4 = scmp.ge.s32.totalorder %s11_s6, 4  }
 0x607   :  { %10 = sbr.rel (!%p8_p4) target bundleno = 1 (0x1), region = 54 }

// kernel: translation_model_forward.28
= control target key start
LH: loop header
LB: loop body
LE: loop exit
PB: predicated region body
PF: predicated region fallthrough
CT: control target
= control target key end

     0   :  { %vm19_vm0 = vcmask 523264   ;;  %v151_v0 = vmov 0.0   ;;  %vm152_vm1 = vmmov 0   ;;  %vm47_vm2 = vcmask 261120   ;;  %s195_s1 = inlined_call_operand.vmem [shape: bf16[32,64], index: 1, kind: input, shape index: {}]   ;;  %s196_s0 = inlined_call_operand.vmem [shape: bf16[16,32], index: 0, kind: input, shape index: {}]   ;;  %s197_s2 = inlined_call_operand.vmem [shape: f32[1,64], index: 2, kind: input, shape index: {}]   ;;  %s198_s3 = inlined_call_operand.vmem [shape: bf16[16,64], index: 3, kind: output, shape index: {}]  }
   0x1   :  { %138 = vmatprep.subr.bf16.mxu0 %v151_v0  ;;  %v148_v1 = vld [vmem:[%s195_s1] sm:$0xff]   ;;  %142 = vmatprep.mubr.msk.bf16.mxu0 %vm152_vm1, %v151_v0  ;;  %20 = vst.msk [vmem:[#allocation2] sm:$0xff] %vm19_vm0, %v151_v0  ;;  %21 = vst.msk [vmem:[#allocation2 + $0x8] sm:$0xff] %vm19_vm0, %v151_v0  ;;  %v149_v2 = vld [vmem:[%s195_s1 + $0x8] sm:$0xff]   ;;  %vm119_vm3 = vcmask 519168  }
   0x2   :  { %139 = vmatpush3.bf16.msra.mxu0 %v148_v1  ;;  %v150_v3 = vld [vmem:[%s196_s0] sm:$0xff]  }
   0x3   :  { %140 = vmatprep.subr.bf16.mxu0 %v151_v0  ;;  %v130_v12 = vld [vmem:[%s197_s2] ss:$0 sm:$0xff] }
   0x6   :  { %141 = vmatpush3.bf16.msra.mxu0 %v149_v2 }
   0x8   :  { %v22_v4 = vld [vmem:[#allocation2] sm:$0xff]  ;;  %v23_v6 = vld [vmem:[#allocation2 + $0x8] sm:$0xff] }
   0x9   :  { %143 = vmatmul.mubr.msk.bf16.vlgmr.msra.gmra.mrb[0].mxu0 %vm47_vm2, %v150_v3 }
  0xdc   :  { %v85_v5 = vpop.f32.mrb[0].mxu0 }
  0xdd   :  { %v92_v7 = vadd.f32 %v85_v5, %v22_v4  ;;  %v144_v8 = vpop.f32.mrb[1].mxu0 }
  0xde   :  { %v88_v9 = vpop.f32.mrb[2].mxu0 }
  0xdf   :  { %95 = vst.msk [vmem:[#allocation2] sm:$0xff] %vm19_vm0, %v92_v7  ;;  %v93_v10 = vadd.f32 %v88_v9, %v23_v6  ;;  %v145_v11 = vpop.f32.mrb[3].mxu0 }
  0xe1   :  { %96 = vst.msk [vmem:[#allocation2 + $0x8] sm:$0xff] %vm19_vm0, %v93_v10 }
  0xe6   :  { %v100_v13 = vld [vmem:[#allocation2] sm:$0xff] }
  0xe7   :  { %v109_v14 = vadd.f32 %v130_v12, %v100_v13 }
  0xe8   :  { %v101_v15 = vld [vmem:[#allocation2 + $0x8] sm:$0xff] }
  0xe9   :  { %v133_v16 = vpack.c.bf16 %v109_v14, %v109_v14  ;;  %v110_v17 = vadd.f32 %v130_v12, %v101_v15 }
  0xeb   :  { %120 = vst.msk [vmem:[%s198_s3] sm:$0xf] %vm119_vm3, %v133_v16  ;;  %v134_v18 = vpack.c.bf16 %v110_v17, %v110_v17 }
  0xed   :  { %121 = vst.msk [vmem:[%s198_s3 + $0x4] sm:$0xf] %vm119_vm3, %v134_v18 }

// kernel: translation_model_forward.27
= control target key start
LH: loop header
LB: loop body
LE: loop exit
PB: predicated region body
PF: predicated region fallthrough
CT: control target
= control target key end

     0   :  { %vm19_vm0 = vcmask 261120   ;;  %v150_v0 = vmov 0.0   ;;  %vm151_vm1 = vmmov 0   ;;  %vm118_vm2 = vcmask 257024   ;;  %s195_s1 = inlined_call_operand.vmem [shape: bf16[32,32], index: 1, kind: input, shape index: {}]   ;;  %s196_s0 = inlined_call_operand.vmem [shape: bf16[16,32], index: 0, kind: input, shape index: {}]   ;;  %s197_s2 = inlined_call_operand.vmem [shape: f32[1,32], index: 2, kind: input, shape index: {}]   ;;  %s198_s3 = inlined_call_operand.vmem [shape: bf16[16,32], index: 3, kind: output, shape index: {}]  }
   0x1   :  { %137 = vmatprep.subr.bf16.mxu0 %v150_v0  ;;  %v147_v1 = vld [vmem:[%s195_s1] sm:$0xff]   ;;  %141 = vmatprep.mubr.msk.bf16.mxu0 %vm151_vm1, %v150_v0  ;;  %20 = vst.msk [vmem:[#allocation2] sm:$0xff] %vm19_vm0, %v150_v0  ;;  %21 = vst.msk [vmem:[#allocation2 + $0x8] sm:$0xff] %vm19_vm0, %v150_v0  ;;  %v148_v2 = vld [vmem:[%s195_s1 + $0x8] sm:$0xff]  }
   0x2   :  { %138 = vmatpush3.bf16.msra.mxu0 %v147_v1  ;;  %v149_v3 = vld [vmem:[%s196_s0] sm:$0xff]  }
   0x3   :  { %139 = vmatprep.subr.bf16.mxu0 %v150_v0  ;;  %v129_v12 = vld [vmem:[%s197_s2] ss:$0 sm:$0xff] }
   0x6   :  { %140 = vmatpush3.bf16.msra.mxu0 %v148_v2 }
   0x8   :  { %v22_v4 = vld [vmem:[#allocation2] sm:$0xff]  ;;  %v23_v6 = vld [vmem:[#allocation2 + $0x8] sm:$0xff] }
   0x9   :  { %142 = vmatmul.mubr.msk.bf16.vlgmr.msra.gmra.mrb[0].mxu0 %vm19_vm0, %v149_v3 }
  0xdc   :  { %v85_v5 = vpop.f32.mrb[0].mxu0 }
  0xdd   :  { %v92_v7 = vadd.f32 %v85_v5, %v22_v4  ;;  %v143_v8 = vpop.f32.mrb[1].mxu0 }
  0xde   :  { %v88_v9 = vpop.f32.mrb[2].mxu0 }
  0xdf   :  { %94 = vst.msk [vmem:[#allocation2] sm:$0xff] %vm19_vm0, %v92_v7  ;;  %v93_v10 = vadd.f32 %v88_v9, %v23_v6  ;;  %v144_v11 = vpop.f32.mrb[3].mxu0 }
  0xe1   :  { %95 = vst.msk [vmem:[#allocation2 + $0x8] sm:$0xff] %vm19_vm0, %v93_v10 }
  0xe6   :  { %v99_v13 = vld [vmem:[#allocation2] sm:$0xff] }
  0xe7   :  { %v108_v14 = vadd.f32 %v129_v12, %v99_v13 }
  0xe8   :  { %v100_v15 = vld [vmem:[#allocation2 + $0x8] sm:$0xff] }
  0xe9   :  { %v132_v16 = vpack.c.bf16 %v108_v14, %v108_v14  ;;  %v109_v17 = vadd.f32 %v129_v12, %v100_v15 }
  0xeb   :  { %119 = vst.msk [vmem:[%s198_s3] sm:$0xf] %vm118_vm2, %v132_v16  ;;  %v133_v18 = vpack.c.bf16 %v109_v17, %v109_v17 }
  0xed   :  { %120 = vst.msk [vmem:[%s198_s3 + $0x4] sm:$0xf] %vm118_vm2, %v133_v18 }

// kernel: translation_model_forward.29
= control target key start
LH: loop header
LB: loop body
LE: loop exit
PB: predicated region body
PF: predicated region fallthrough
CT: control target
= control target key end

     0   :  { %s565_s9 = smov 0   ;;  %s610_s0 = inlined_call_operand.vmem [shape: bf16[2,8,32], index: 0, kind: input, shape index: {}]   ;;  %s611_s1 = inlined_call_operand.vmem [shape: bf16[2,8,64], index: 1, kind: input, shape index: {}]   ;;  %s612_s2 = inlined_call_operand.vmem [shape: bf16[2,8,32], index: 2, kind: output, shape index: {}]  }
   0x1 LB: > { %s463_s10 = sadd.s32 4294967295, %s542_s9   ;;  %p467_p0 = scmp.ge.s32.totalorder %s542_s9, 1  ;;  %s542_s9 = sphi %s565_s9, %s12_s9  }
   0x2   : > { %p120_p1 = scmp.lt.s32.totalorder %s542_s9, 3 }
   0x4   : > { %p121_p2 = pnand %p467_p0, %p120_p1 }
   0x5   : > { %p144_p3 = scmp.lt.s32.totalorder (!%p121_p2), %s463_s10, 1  ;;  %v544_v0 = vmov (!%p121_p2), 0.0   ;;  %vm545_vm0 = vmmov (!%p121_p2), 0   ;;  %vm161_vm1 = vcmask (!%p121_p2), 130048   ;;  %vm208_vm2 = vcmask (!%p121_p2), 64512   ;;  %s546_s18 = smov (!%p121_p2), 96  }
   0x6   : > { %124 = sbr.rel (%p121_p2) target bundleno = 1419 (0x58b), region = 28  ;;  %489 = vmatprep.subr.bf16.mxu0 (!%p121_p2), %v544_v0  ;;  %491 = vmatprep.mubr.msk.bf16.mxu0 (!%p121_p2), %vm545_vm0, %v544_v0  ;;  %s547_s19 = smov (!%p121_p2), 112   ;;  %vm229_vm3 = vcmask (!%p121_p2), 1043456   ;;  %vm274_vm4 = vcmask (!%p121_p2), 125952   ;;  %vm396_vm5 = vcmask (!%p121_p2), 257152  }
   0x7   : > { %495 = vmatprep.subr.bf16.mxu1 (!%p121_p2), %v544_v0  ;;  %497 = vmatprep.mubr.msk.bf16.mxu1 (!%p121_p2), %vm545_vm0, %v544_v0  ;;  %s548_s23 = smov (!%p121_p2), 80   ;;  %s549_s24 = smov (!%p121_p2), 16  }
   0xd   : > { %s614_s10 = smov (!%p144_p3, %s463_s10), 1 }
   0xe   : > { %s575_s11 = sshll.u32 %s614_s10, 2 }
   0xf   : > { %s147_s14 = scalar_lea.vmem %s610_s0, %s575_s11  ;;  %s151_s17 = scalar_lea.vmem %s611_s1, %s575_s11 }
  0x10   : > { %v160_v1 = vld [vmem:[%s151_s17] sm:$0xf]  ;;  %s599_s22 = scalar_lea.vmem %s612_s2, %s575_s11 }
  0x11   : > { %v166_v2 = vsel %vm161_vm1, %v160_v1, 0  ;;  %v158_v3 = vld [vmem:[%s147_s14] sm:$0xf]  ;;  %v472_v10 = vcombine.low %v160_v1, %v160_v1 }
  0x12   : > { %490 = vmatpush3.bf16.xpose.msra.mxu0 %v166_v2  ;;  %v159_v4 = vmul.bf16 1048592000, %v158_v3 }
  0x13   : > { %507 = vmatprep.subr.bf16.mxu0 %v544_v0  ;;  %224 = vrot.lane.b32.xlu1 %v472_v10, %s546_s18 }
  0x14   : > { %v474_v18 = vcombine.low %v159_v4, %v159_v4 }
  0x17   : > { %281 = vrot.lane.b32.xlu1 %v472_v10, %s547_s19 }
  0x19   : > { %492 = vmatmul.mubr.msk.bf16.vlgmr.msra.gmra.mrb[0].mxu0 %vm161_vm1, %v159_v4 }
  0x1a   : > { %509 = vmatprep.mubr.msk.bf16.mxu0 %vm545_vm0, %v544_v0 }
  0x85   : > { %v225_v16 = vpop.permute.xlu1 %224 }
  0x86   : > { %v231_v17 = vsel %vm229_vm3, %v225_v16, 0 }
  0x87   : > { %496 = vmatpush3.bf16.msra.mxu1 %v231_v17 }
  0x88   : > { %501 = vmatprep.subr.bf16.mxu1 %v544_v0 }
  0x89   : > { %v282_v21 = vpop.permute.xlu1 %281 }
  0x8a   : > { %v287_v23 = vsel %vm161_vm1, %v282_v21, 0 }
  0xec   : > { %v202_v5 = vpop.f32.mrb[0].mxu0 }
  0xed   : > { %v493_v6 = vpop.f32.mrb[1].mxu0  ;;  %v209_v7 = vsel %vm208_vm2, %v202_v5, -inf }
  0xee   : > { %210 = vmax.xlane.f32.xlu0 %v209_v7  ;;  %v205_v8 = vpop.f32.mrb[2].mxu0 }
  0xef   : > { %v494_v9 = vpop.f32.mrb[3].mxu0 }
 0x17b   : > { %v211_v11 = vpop.xlane.xlu0 %210 }
 0x17c   : > { %v212_v12 = vsub.f32 %v202_v5, %v211_v11 }
 0x17e   : > { %v213_v13 = vmul.f32 1.442695, %v212_v12 }
 0x180   : > { %528 = vpow2.f32 %v213_v13 }
 0x18a   : > { %v529_v14 = vpop.eup %528 }
 0x18b   : > { %v215_v15 = vsel %vm208_vm2, %v529_v14, 0.0 }
 0x18c   : > { %216 = vadd.xlane.f32.xlu0 %v215_v15 }
 0x1a2   : > { %279 = vrot.lane.b32.xlu0 %v474_v18, %s547_s19 }
 0x219   : > { %v217_v19 = vpop.xlane.xlu0 %216 }
 0x21a   : > { %530 = vrcp.f32 %v217_v19 }
 0x21d   : > { %v280_v25 = vpop.permute.xlu0 %279 }
 0x224   : > { %v531_v20 = vpop.eup %530 }
 0x225   : > { %v219_v22 = vmul.f32 %v531_v20, %v529_v14 }
 0x227   : > { %v220_v24 = vpack.c.bf16 %v219_v22, %v219_v22 }
 0x229   : > { %498 = vmatmul.mubr.msk.bf16.vlgmr.msra.gmra.mrb[0].mxu1 %vm208_vm2, %v220_v24 }
 0x22a   : > { %502 = vmatpush3.bf16.xpose.msra.mxu1 %v287_v23  ;;  %503 = vmatprep.mubr.msk.bf16.mxu1 %vm545_vm0, %v544_v0 }
 0x231   : > { %504 = vmatmul.mubr.msk.bf16.vlgmr.msra.gmra.mrb[4].mxu1 %vm161_vm1, %v280_v25 }
 0x2fc   : > { %v267_v26 = vpop.f32.mrb[0].mxu1 }
 0x2fd   : > { %v273_v27 = vpack.c.bf16 %v267_v26, %v267_v26  ;;  %v499_v28 = vpop.f32.mrb[1].mxu1 }
 0x2fe   : > { %v270_v29 = vpop.f32.mrb[2].mxu1 }
 0x2ff   : > { %275 = vst.msk [vmem:[%s599_s22] sm:$0xf] %vm274_vm4, %v273_v27  ;;  %v500_v30 = vpop.f32.mrb[3].mxu1 }
 0x304   : > { %v323_v31 = vpop.f32.mrb[4].mxu1 }
 0x305   : > { %v505_v32 = vpop.f32.mrb[5].mxu1  ;;  %v329_v33 = vsel %vm208_vm2, %v323_v31, -inf }
 0x306   : > { %330 = vmax.xlane.f32.xlu1 %v329_v33  ;;  %v326_v34 = vpop.f32.mrb[6].mxu1 }
 0x307   : > { %v506_v35 = vpop.f32.mrb[7].mxu1 }
 0x317   : > { %341 = vrot.lane.b32.xlu1 %v472_v10, %s548_s23 }
 0x393   : > { %v331_v36 = vpop.xlane.xlu1 %330 }
 0x394   : > { %v332_v37 = vsub.f32 %v323_v31, %v331_v36 }
 0x396   : > { %v333_v38 = vmul.f32 1.442695, %v332_v37 }
 0x397   : > { %v342_v41 = vpop.permute.xlu1 %341 }
 0x398   : > { %532 = vpow2.f32 %v333_v38  ;;  %v347_v42 = vsel %vm229_vm3, %v342_v41, 0 }
 0x399   : > { %508 = vmatpush3.bf16.msra.mxu0 %v347_v42 }
 0x3a2   : > { %v533_v39 = vpop.eup %532 }
 0x3a3   : > { %v335_v40 = vsel %vm208_vm2, %v533_v39, 0.0 }
 0x3a4   : > { %336 = vadd.xlane.f32.xlu0 %v335_v40 }
 0x431   : > { %v337_v43 = vpop.xlane.xlu0 %336 }
 0x432   : > { %534 = vrcp.f32 %v337_v43 }
 0x43c   : > { %v535_v44 = vpop.eup %534 }
 0x43d   : > { %v339_v45 = vmul.f32 %v535_v44, %v533_v39 }
 0x43f   : > { %v340_v46 = vpack.c.bf16 %v339_v45, %v339_v45 }
 0x441   : > { %510 = vmatmul.mubr.msk.bf16.vlgmr.msra.gmra.mrb[4].mxu0 %vm208_vm2, %v340_v46 }
 0x514   : > { %v383_v47 = vpop.f32.mrb[4].mxu0 }
 0x515   : > { %v480_v48 = vpack.c.bf16 %v383_v47, %v383_v47  ;;  %v511_v49 = vpop.f32.mrb[5].mxu0 }
 0x516   : > { %v386_v50 = vpop.f32.mrb[6].mxu0 }
 0x517   : > { %393 = vrot.lane.b32.xlu0 %v480_v48, %s549_s24  ;;  %v512_v51 = vpop.f32.mrb[7].mxu0 }
 0x589   : > { %v394_v52 = vpop.permute.xlu0 %393 }
 0x58a   : > { %397 = vst.msk [vmem:[%s599_s22] sm:$0xf] %vm396_vm5, %v394_v52 }
 0x58b PF: > { %s12_s9 = sadd.s32 1, %s542_s9  }
 0x58c   : > { %p9_p4 = scmp.ge.s32.totalorder %s12_s9, 4  }
 0x58e   :  { %11 = sbr.rel (!%p9_p4) target bundleno = 1 (0x1), region = 61 }

// kernel: translation_model_forward.33
= control target key start
LH: loop header
LB: loop body
LE: loop exit
PB: predicated region body
PF: predicated region fallthrough
CT: control target
= control target key end

     0   :  { %11 = vsyncpa [#allocation7], 0  ;;  %v364_v1 = vmov 0.0   ;;  %vm365_vm0 = vmmov 0   ;;  %s483_s0 = inlined_call_operand.vmem [shape: bf16[16,32], index: 0, kind: input, shape index: {}]   ;;  %s484_s1 = inlined_call_operand.vmem [shape: bf16[32,64], index: 1, kind: input, shape index: {}]   ;;  %s485_s2 = inlined_call_operand.vmem [shape: f32[1,64], index: 2, kind: input, shape index: {}]   ;;  %s486_s3 = inlined_call_operand.vmem [shape: s32[16,1], index: 3, kind: input, shape index: {}]   ;;  %s487_s4 = inlined_call_operand.hbm [shape: bf16[16,64], index: 4, kind: output, shape index: {0}]   ;;  %s488_s5 = inlined_call_operand.hbm [shape: f32[1,1], index: 5, kind: output, shape index: {1}]  }
   0x1   :  { %v301_v0 = vld [vmem:[%s484_s1] sm:$0xff]   ;;  %283 = vmatprep.subr.bf16.mxu0 %v364_v1  ;;  %v302_v2 = vld [vmem:[%s484_s1 + $0x8] sm:$0xff]   ;;  %287 = vmatprep.mubr.msk.bf16.mxu0 %vm365_vm0, %v364_v1 }
   0x2   :  { %284 = vmatpush3.bf16.msra.mxu0 %v301_v0 }
   0x3   :  { %285 = vmatprep.subr.bf16.mxu0 %v364_v1 }
   0x4   :  { %12 = vsyncpa [#allocation9], 0  ;;  %v303_v3 = vld [vmem:[%s483_s0] sm:$0xff]   ;;  %vm70_vm1 = vcmask 261120   ;;  %v366_v4 = vmov 0   ;;  %vm33_vm2 = vcmask 7168   ;;  %v176_v25 = vlaneseq }
   0x5   :  { %300 = vset.pattern.permute.xlu0 %v366_v4  ;;  %299 = vset.pattern.permute.xlu1 %v366_v4  ;;  %v367_v5 = vmov -1e+30   ;;  %36 = vst.msk [vmem:[#allocation3] sm:$0xff] %vm33_vm2, %v364_v1  ;;  %37 = vst.msk [vmem:[#allocation3 + $0x8] sm:$0xff] %vm33_vm2, %v364_v1  ;;  %v271_v6 = vld [vmem:[%s485_s2] ss:$0 sm:$0xff] }
   0x6   :  { %286 = vmatpush3.bf16.msra.mxu0 %v302_v2  ;;  %34 = vst.msk [vmem:[#allocation2] sm:$0xff] %vm33_vm2, %v367_v5  ;;  %35 = vst.msk [vmem:[#allocation2 + $0x8] sm:$0xff] %vm33_vm2, %v367_v5  ;;  %vm128_vm3 = vcmask 523264   ;;  %vm123_vm4 = vcmask 519168   ;;  %v183_v17 = vld [vmem:[%s486_s3] sm:$0xff]  ;;  %v184_v27 = vld [vmem:[%s486_s3 + $0x8] sm:$0xff] }
   0x7   :  { %38 = vst.msk [vmem:[#allocation4] sm:$0xff] %vm33_vm2, %v364_v1  ;;  %39 = vst.msk [vmem:[#allocation4 + $0x8] sm:$0xff] %vm33_vm2, %v364_v1  ;;  %v177_v28 = vand.u32 127, %v176_v25  ;;  %vm28_vm7 = vcmask 0   ;;  %s368_s3 = smov [#allocation6]  }
   0x8   :  { %s246_s27 = sshll.u32 %s368_s3, 4  ;;  %29 = vst.msk [vmem:[#allocation5] sm:$0x1] %vm28_vm7, %v364_v1  ;;  %s247_s27 = int_to_ptr.vmem [resolvable:$true] %s246_s27 }
   0x9   :  { %288 = vmatmul.mubr.msk.bf16.vlgmr.msra.gmra.mrb[0].mxu0 %vm70_vm1, %v303_v3  ;;  %s316_s28 = scalar_lea.vmem %s247_s27, 128  ;;  %p321_p1 = scmp.lt.s32.totalorder %s247_s27, %s247_s27 }
   0xa   :  { %p317_p0 = scmp.ne.s32.totalorder %s247_s27, %s316_s28  ;;  %p322_p2 = scmp.lt.s32.totalorder %s316_s28, %s316_s28 }
   0xc   :  { %p323_p3 = por %p322_p2, %p321_p1 }
   0xd   :  { %v432_v18 = vld [vmem:[#allocation2] sm:$0xff]  ;;  %v435_v21 = vld [vmem:[#allocation2 + $0x8] sm:$0xff] }
   0xe   :  { %v181_v45 = vld [vmem:[#allocation4] sm:$0xff]  ;;  %p324_p4 = pnand %p323_p3, %p317_p0 }
  0xdc   :  { %v108_v7 = vpop.f32.mrb[0].mxu0 }
  0xdd   :  { %v109_v8 = vadd.f32 %v271_v6, %v108_v7  ;;  %v289_v9 = vpop.f32.mrb[1].mxu0 }
  0xde   :  { %v111_v10 = vpop.f32.mrb[2].mxu0 }
  0xdf   :  { %v112_v11 = vadd.f32 %v271_v6, %v111_v10  ;;  %v290_v12 = vpop.f32.mrb[3].mxu0  ;;  %v129_v13 = vsel %vm128_vm3, %v109_v8, -inf  ;;  %v278_v14 = vpack.c.bf16 %v109_v8, %v109_v8 }
  0xe0   :  { %130 = vmax.xlane.f32.xlu0 %v129_v13 }
  0xe1   :  { %v279_v15 = vpack.c.bf16 %v112_v11, %v112_v11  ;;  %124 = vst.msk [vmem:[#allocation6] sm:$0xf] %vm123_vm4, %v278_v14  ;;  %v132_v16 = vsel %vm128_vm3, %v112_v11, -inf }
  0xe3   :  { %125 = vst.msk [vmem:[#allocation6 + $0x4] sm:$0xf] %vm123_vm4, %v279_v15 }
  0xe4   :  { %133 = vmax.xlane.f32.xlu0 %v132_v16 }
  0xfa   :  { %186 = vperm.xlu0 %300, %v183_v17  }
 0x16d   :  { %v131_v19 = vpop.xlane.xlu0 %130 }
 0x16e   :  { %v135_v20 = vmax.f32 %v432_v18, %v131_v19 }
 0x170   :  { %v139_v22 = vsub.f32 %v432_v18, %v135_v20  ;;  %174 = vst.msk [vmem:[#allocation2] sm:$0xff] %vm33_vm2, %v135_v20  ;;  %149 = vperm.xlu1 %299, %v135_v20  }
 0x171   :  { %v134_v23 = vpop.xlane.xlu0 %133 }
 0x172   :  { %v136_v24 = vmax.f32 %v435_v21, %v134_v23 }
 0x174   :  { %v140_v26 = vsub.f32 %v435_v21, %v136_v24  ;;  %175 = vst.msk [vmem:[#allocation2 + $0x8] sm:$0xff] %vm33_vm2, %v136_v24  ;;  %154 = vperm.xlu1 %299, %v136_v24  }
 0x178   :  { %189 = vperm.xlu1 %299, %v184_v27  }
 0x179   :  { %v187_v29 = vpop.permute.xlu0 %186 }
 0x17a   :  { %vm191_vm5 = vcmp.eq.s32.totalorder %v177_v28, %v187_v29 }
 0x17b   :  { %v193_v30 = vsel %vm191_vm5, %v109_v8, 0.0 }
 0x17c   :  { %v195_v31 = vsel %vm128_vm3, %v193_v30, 0.0 }
 0x17d   :  { %196 = vadd.xlane.f32.xlu0 %v195_v31 }
 0x1ef   :  { %v150_v32 = vpop.permute.xlu1 %149 }
 0x1f0   :  { %v157_v33 = vsub.f32 %v109_v8, %v150_v32 }
 0x1f2   :  { %v159_v34 = vmul.f32 1.442695, %v157_v33 }
 0x1f3   :  { %v155_v35 = vpop.permute.xlu1 %154 }
 0x1f4   :  { %304 = vpow2.f32 %v159_v34  ;;  %v158_v36 = vsub.f32 %v112_v11, %v155_v35 }
 0x1f6   :  { %v161_v37 = vmul.f32 1.442695, %v158_v36 }
 0x1f7   :  { %v190_v39 = vpop.permute.xlu1 %189 }
 0x1f8   :  { %306 = vpow2.f32 %v161_v37  ;;  %vm192_vm6 = vcmp.eq.s32.totalorder %v177_v28, %v190_v39 }
 0x1f9   :  { %v194_v43 = vsel %vm192_vm6, %v112_v11, 0.0 }
 0x1fa   :  { %v198_v44 = vsel %vm128_vm3, %v194_v43, 0.0 }
 0x1fe   :  { %v305_v38 = vpop.eup %304 }
 0x1ff   :  { %v163_v40 = vsel %vm128_vm3, %v305_v38, 0.0 }
 0x200   :  { %164 = vadd.xlane.f32.xlu1 %v163_v40 }
 0x202   :  { %v307_v41 = vpop.eup %306 }
 0x203   :  { %v166_v42 = vsel %vm128_vm3, %v307_v41, 0.0 }
 0x204   :  { %167 = vadd.xlane.f32.xlu1 %v166_v42 }
 0x208   :  { %199 = vadd.xlane.f32.xlu1 %v198_v44 }
 0x20a   :  { %v197_v46 = vpop.xlane.xlu0 %196 }
 0x20b   :  { %v201_v47 = vadd.f32 %v197_v46, %v181_v45 }
 0x20d   :  { %203 = vst.msk [vmem:[#allocation4] sm:$0xff] %vm33_vm2, %v201_v47 }
 0x20e   :  { %327 = shalt.err (!%p324_p4)
}
 0x20f   :  { %s328_s6 = scalar_lea.hbm %s487_s4, 128 }
 0x210   :  { %p329_p5 = scmp.ne.s32.totalorder %s487_s4, %s328_s6  ;;  %p332_p6 = scmp.lt.u32.totalorder %s328_s6, %s487_s4 }
 0x212   :  { %p334_p7 = pnand %p332_p6, %p329_p5 }
 0x214   :  { %337 = shalt.err (!%p334_p7)
}
 0x215   :  { %s369_s11 = smov 64   ;;  %s370_s12 = smov 4   ;;  %v141_v48 = vmul.f32 1.442695, %v139_v22  ;;  %v143_v49 = vmul.f32 1.442695, %v140_v26 }
 0x216   :  { %252 = dma.vmem_to_hbm [thread:$0]  %s247_s27, 128, %s487_s4, [#allocation7], %s369_s11, %s369_s11, %s370_s12   ;;  %v137_v51 = vld [vmem:[#allocation3] sm:$0xff]  ;;  %v138_v55 = vld [vmem:[#allocation3 + $0x8] sm:$0xff]  ;;  %v182_v60 = vld [vmem:[#allocation4 + $0x8] sm:$0xff] }
 0x217   :  { %308 = vpow2.f32 %v141_v48  ;;  %v208_v3 = vld [vmem:[#allocation2] sm:$0xff]  ;;  %v209_v7 = vld [vmem:[#allocation2 + $0x8] sm:$0xff]  ;;  %v218_v21 = vld [vmem:[#allocation5] sm:$0x1]  ;;  %s371_s4 = smov [#allocation8]  }
 0x218   :  { %310 = vpow2.f32 %v143_v49  ;;  %v219_v8 = vld [vmem:[#allocation4] sm:$0xff]  ;;  %s259_s15 = sshll.u32 %s371_s4, 4  ;;  %s260_s15 = int_to_ptr.vmem [resolvable:$true] %s259_s15 }
 0x219   :  { %s338_s16 = scalar_lea.vmem %s260_s15, 16  ;;  %s342_s17 = scalar_lea.vmem %s260_s15, 32 }
 0x21a   :  { %p339_p8 = scmp.ne.s32.totalorder %s260_s15, %s338_s16  ;;  %p343_p9 = scmp.lt.s32.totalorder %s260_s15, %s260_s15 }
 0x21b   :  { %p344_p10 = scmp.lt.s32.totalorder %s342_s17, %s338_s16 }
 0x21d   :  { %p345_p11 = por %p344_p10, %p343_p9 }
 0x21f   :  { %p346_p12 = pnand %p345_p11, %p339_p8 }
 0x221   :  { %v309_v50 = vpop.eup %308 }
 0x222   :  { %v145_v52 = vmul.f32 %v309_v50, %v137_v51  ;;  %v311_v53 = vpop.eup %310 }
 0x223   :  { %v146_v57 = vmul.f32 %v311_v53, %v138_v55 }
 0x28d   :  { %v165_v54 = vpop.xlane.xlu1 %164 }
 0x28e   :  { %v169_v56 = vadd.f32 %v165_v54, %v145_v52 }
 0x290   :  { %172 = vst.msk [vmem:[#allocation3] sm:$0xff] %vm33_vm2, %v169_v56 }
 0x291   :  { %v168_v58 = vpop.xlane.xlu1 %167 }
 0x292   :  { %v170_v59 = vadd.f32 %v168_v58, %v146_v57 }
 0x294   :  { %173 = vst.msk [vmem:[#allocation3 + $0x8] sm:$0xff] %vm33_vm2, %v170_v59 }
 0x295   :  { %v200_v61 = vpop.xlane.xlu1 %199 }
 0x296   :  { %v202_v62 = vadd.f32 %v200_v61, %v182_v60 }
 0x297   :  { %v210_v63 = vld [vmem:[#allocation3] sm:$0xff] }
 0x298   :  { %204 = vst.msk [vmem:[#allocation4 + $0x8] sm:$0xff] %vm33_vm2, %v202_v62  ;;  %312 = vlog2.f32 %v210_v63 }
 0x29b   :  { %v211_v0 = vld [vmem:[#allocation3 + $0x8] sm:$0xff] }
 0x29c   :  { %314 = vlog2.f32 %v211_v0 }
 0x29f   :  { %v220_v11 = vld [vmem:[#allocation4 + $0x8] sm:$0xff] }
 0x2a2   :  { %v313_v1 = vpop.eup %312 }
 0x2a3   :  { %v213_v2 = vmul.f32 0.6931472, %v313_v1 }
 0x2a5   :  { %v216_v4 = vadd.f32 %v213_v2, %v208_v3 }
 0x2a6   :  { %v315_v5 = vpop.eup %314 }
 0x2a7   :  { %v215_v6 = vmul.f32 0.6931472, %v315_v5  ;;  %v221_v10 = vsub.f32 %v216_v4, %v219_v8 }
 0x2a9   :  { %v217_v9 = vadd.f32 %v215_v6, %v209_v7  ;;  %v223_v13 = vsel %vm33_vm2, %v221_v10, 0.0 }
 0x2ab   :  { %v222_v12 = vsub.f32 %v217_v9, %v220_v11 }
 0x2ad   :  { %v224_v14 = vsel %vm33_vm2, %v222_v12, 0.0 }
 0x2ae   :  { %v225_v15 = vadd.f32 %v224_v14, %v223_v13 }
 0x2b0   :  { %v226_v16 = vrot.slane %v225_v15, 4 }
 0x2b2   :  { %v227_v17 = vadd.f32 %v226_v16, %v225_v15 }
 0x2b4   :  { %v228_v18 = vrot.slane %v227_v17, 2 }
 0x2b6   :  { %v229_v19 = vadd.f32 %v228_v18, %v227_v17 }
 0x2b8   :  { %v230_v20 = vrot.slane %v229_v19, 1 }
 0x2ba   :  { %v231_v22 = vadd.f32 %v230_v20, %v229_v19 }
 0x2bc   :  { %v232_v23 = vadd.f32 %v231_v22, %v218_v21 }
 0x2be   :  { %234 = vst.msk [vmem:[#allocation5] sm:$0x1] %vm28_vm7, %v232_v23 }
 0x2c5   :  { %v237_v24 = vld [vmem:[#allocation5] sm:$0x1] }
 0x2c6   :  { %v238_v25 = vmul.f32 0.0625, %v237_v24 }
 0x2c8   :  { %240 = vst.msk [vmem:[#allocation8] sm:$0x1] %vm28_vm7, %v238_v25 }
 0x2c9   :  { %349 = shalt.err (!%p346_p12)
}
 0x2ca   :  { %s350_s20 = scalar_lea.hbm %s488_s5, 16 }
 0x2cb   :  { %p351_p13 = scmp.ne.s32.totalorder %s488_s5, %s350_s20  ;;  %p354_p0 = scmp.lt.u32.totalorder %s350_s20, %s488_s5 }
 0x2cd   :  { %p356_p1 = pnand %p354_p0, %p351_p13 }
 0x2cf   :  { %359 = shalt.err (!%p356_p1)
}
 0x2d0   :  { %262 = dma.vmem_to_hbm [thread:$0]  %s260_s15, 16, %s488_s5, [#allocation9]  }
 0x2d1   :  { %360 = dma.done.wait [#allocation7], 128  }
 0x2d2   :  { %361 = vsyncadd [#allocation7], 4294967168 }
 0x2d3   :  { %362 = dma.done.wait [#allocation9], 16  }
 0x2d4   :  { %363 = vsyncadd [#allocation9], 4294967280 }
 0x2d5   :  { %269 = vsyncpa [#allocation7], 1 }
 0x2d6   :  { %270 = vsyncpa [#allocation9], 1 }

</bundles_post_ra>
